<compile_context>
chip_gen: v7x
topology: tpu7x:2x2x1
jax: 0.10.0
libtpu: 0.0.40
codegen_flags: <defaults>
</compile_context>

<pallas_src>
import jax
import jax.numpy as jnp
import numpy as np
from jax.experimental import pallas as pl
from jax.experimental.pallas import tpu as pltpu


# Union of the dilation-1 and dilation-2 3x3 tap offsets (17 distinct taps,
# centre tap shared), grouped by dx so the column (sublane) shift is hoisted
# out of the dy loop inside the kernel.
_DX_GROUPS = (
    (-2, (-2, 0, 2)),
    (-1, (-1, 0, 1)),
    (0,  (-2, -1, 0, 1, 2)),
    (1,  (-1, 0, 1)),
    (2,  (-2, 0, 2)),
)
_TAPS = tuple((dy, dx) for dx, dys in _DX_GROUPS for dy in dys)   # 17 taps
_INT = 8   # interior start column in the padded scratch (sublane aligned)


def _round_up(x, m):
    return (x + m - 1) // m * m


def _row_tile(H, W):
    """Row-tile height (divisor of H, ~256-512 flattened rows) and the
    stage-1 write-back delay in tiles (= ceil(2 / th))."""
    th = max(1, min(H, 512 // max(W, 1)))
    while H % th:
        th -= 1
    delay = -(-2 // th)
    return th, delay


def _resblock_kernel(x_ref, w_ref, b_ref, out_ref, pad_ref):
    # Block shapes (per grid step = one batch element):
    #   x_ref   : (1, H, W, C)        input block (also the residual)
    #   w_ref   : (2, 17, C, C)       per-stage, per-tap combined weights
    #   b_ref   : (2, 1, C)           per-stage combined bias (f32)
    #   out_ref : (1, H, W, C)
    #   pad_ref : (H+4, Wpad, C)      VMEM halo scratch, reused by both stages
    _, H, W, C = x_ref.shape
    Wpad = pad_ref.shape[1]
    cdt = pad_ref.dtype
    c0 = _INT
    th, delay = _row_tile(H, W)
    n_tiles = H // th
    n_taps = len(_TAPS)

    # ---- zero the 2-wide halo (re-done every step; see header for why) ----
    zrow = jnp.zeros((2, Wpad, C), cdt)
    pad_ref[0:2, :, :] = zrow
    pad_ref[H + 2:H + 4, :, :] = zrow
    zcol = jnp.zeros((H, 2, C), cdt)
    pad_ref[2:2 + H, c0 - 2:c0, :] = zcol
    pad_ref[2:2 + H, c0 + W:c0 + W + 2, :] = zcol

    # ---- stage input: x into the sublane-aligned interior ----
    pad_ref[2:2 + H, c0:c0 + W, :] = x_ref[0].astype(cdt)

    def dual_conv(stage, store_tile):
        """Both dilated 3x3 convs of one stage fused into one lane-dense
        (th*W, C) f32 accumulator per row tile: left C/2 output lanes hold the
        dilation-1 conv, right C/2 the dilation-2 conv (34 matmuls fused to
        17 via the shared centre tap and zero-filled weight halves)."""
        bias = b_ref[stage].astype(jnp.float32)                 # (1, C)
        w_taps = [w_ref[stage, k] for k in range(n_taps)]       # 17 x (C, C)
        for t in range(n_tiles):
            r0 = t * th
            acc = jnp.zeros((th * W, C), jnp.float32)
            k = 0
            for dx, dys in _DX_GROUPS:
                dy_lo, dy_hi = dys[0], dys[-1]
                # ONE column (sublane) shift per dx group per tile; the dy
                # taps below are cheap leading-dim offsets into `slab`.
                slab = pad_ref[2 + r0 + dy_lo: 2 + r0 + dy_hi + th,
                               c0 + dx: c0 + dx + W, :]
                for dy in dys:
                    patch = slab[dy - dy_lo: dy - dy_lo + th]
                    acc = acc + jnp.dot(patch.reshape(th * W, C), w_taps[k],
                                        preferred_element_type=jnp.float32)
                    k += 1
            store_tile(r0, acc + bias)

    # ---- stage 1: dual dilated conv + ReLU, written back into pad_ref ----
    # Writes are delayed by ceil(2/th) tiles so later tiles still read the
    # original input rows that their dy = -1/-2 taps need.
    # TODO(synk): Dropout(0.5) after stage 1 is training-only (inference = identity).
    pending = []

    def flush_one():
        rr, mm = pending.pop(0)
        pad_ref[2 + rr:2 + rr + th, c0:c0 + W, :] = mm

    def store_mid(r0, acc):
        mid = jnp.maximum(acc, 0.0).reshape(th, W, C).astype(cdt)
        pending.append((r0, mid))
        if len(pending) > delay:
            flush_one()

    dual_conv(0, store_mid)
    while pending:
        flush_one()

    # ---- stage 2: dual dilated conv + residual add (f32) ----
    def store_out(r0, acc):
        xt = x_ref[0, r0:r0 + th, :, :].astype(jnp.float32).reshape(th * W, C)
        out_ref[0, r0:r0 + th, :, :] = (
            (xt + acc).reshape(th, W, C).astype(out_ref.dtype))

    dual_conv(1, store_out)


def _combine_stage_params(w_d1, b_d1, w_d2, b_d2):
    """Merge the dilation-1 / dilation-2 convs of one stage into per-tap
    (Cin, C) weights over the 17 union offsets (zeros where a conv has no tap
    at that offset), so both output halves accumulate lane-densely."""
    cin, ch = w_d1.shape[2], w_d1.shape[3]
    zeros = jnp.zeros((cin, ch), w_d1.dtype)
    taps = []
    for dy, dx in _TAPS:
        left = w_d1[dy + 1, dx + 1] if (abs(dy) <= 1 and abs(dx) <= 1) else zeros
        right = (w_d2[dy // 2 + 1, dx // 2 + 1]
                 if (dy % 2 == 0 and dx % 2 == 0) else zeros)
        taps.append(jnp.concatenate([left, right], axis=-1))
    w = jnp.stack(taps, axis=0)                        # (17, Cin, C)
    b = jnp.concatenate([b_d1, b_d2]).reshape(1, -1)   # (1, C)
    return w, b


def resnet_block_dilation2_split(x_nchw, params, *, use_bf16=False):
    """x_nchw: (B, C, H, W) float32. params: dict of HWIO conv weights / biases.

    use_bf16 stores the pad scratch + weights in bf16 (recommended on v6e/v7x:
    halves their VMEM and unlocks the full bf16 MXU rate; accumulation, bias,
    ReLU and the residual add stay in f32).  Expect ~1e-2 relative error vs.
    the f32 reference in that mode.
    """
    B, C, H, W = x_nchw.shape
    x_nhwc = jnp.transpose(x_nchw, (0, 2, 3, 1))

    w1, b1 = _combine_stage_params(params["w1a"], params["b1a"],
                                   params["w1b"], params["b1b"])
    w2, b2 = _combine_stage_params(params["w2a"], params["b2a"],
                                   params["w2b"], params["b2b"])
    cdt = jnp.bfloat16 if use_bf16 else jnp.float32
    ws = jnp.stack([w1, w2], axis=0).astype(cdt)              # (2, 17, C, C)
    bs = jnp.stack([b1, b2], axis=0).astype(jnp.float32)      # (2, 1, C)

    n_taps = len(_TAPS)
    Wpad = _round_up(W, 8) + 16
    th, delay = _row_tile(H, W)
    itemsize = 2 if use_bf16 else 4
    xbytes = x_nchw.dtype.itemsize

    # VMEM budget: double-buffered in/out blocks + weights + halo scratch +
    # live per-tile temporaries (dx slab, f32 acc, pending mid tiles) + margin.
    blk_bytes = H * W * C * xbytes
    scratch_bytes = (H + 4) * Wpad * C * itemsize
    w_bytes = 2 * n_taps * C * C * itemsize + 2 * C * 4
    tile_bytes = ((th + 4) * W * C * itemsize          # dx-group slab
                  + (delay + 2) * th * W * C * 4)      # acc + pending mids
    vmem_est = 2 * 2 * blk_bytes + scratch_bytes + 2 * w_bytes + tile_bytes + (4 << 20)
    try:
        vmem_cap = int(getattr(pltpu.get_tpu_info(), "vmem_capacity_bytes",
                               128 << 20))
    except Exception:      # hardware query unavailable (e.g. interpret mode)
        vmem_cap = 128 << 20
    vmem_limit = int(min(max(vmem_est, 16 << 20), vmem_cap * 3 // 4))

    # TODO(synk): for large images (e.g. 256x256x128) add an H-tiled grid axis
    # with a 2-row overlapping halo (pl.ANY input + manual make_async_copy of
    # the boundary rows) so per-step blocks fit v7x's 64 MiB VMEM and both of
    # its TensorCores get >=2 parallel steps even at batch 1.
    # TODO(synk): single-buffer the grid-invariant weight/bias blocks with
    # pipeline_mode=pl.Buffered(1) once verified on the target jax version.
    # TODO(synk): for production C < 128, a lane-dense (H, W*C) slab layout
    # with a block-banded weight would recover MXU/VPU lane utilization.
    out_nhwc = pl.pallas_call(
        _resblock_kernel,
        out_shape=jax.ShapeDtypeStruct((B, H, W, C), x_nchw.dtype),
        grid_spec=pltpu.PrefetchScalarGridSpec(
            num_scalar_prefetch=0,
            grid=(B,),
            in_specs=[
                pl.BlockSpec((1, H, W, C), lambda b: (b, 0, 0, 0)),
                pl.BlockSpec((2, n_taps, C, C), lambda b: (0, 0, 0, 0)),
                pl.BlockSpec((2, 1, C), lambda b: (0, 0, 0)),
            ],
            out_specs=pl.BlockSpec((1, H, W, C), lambda b: (b, 0, 0, 0)),
            scratch_shapes=[pltpu.VMEM((H + 4, Wpad, C), cdt)],
        ),
        compiler_params=pltpu.CompilerParams(
            dimension_semantics=("parallel",),
            vmem_limit_bytes=vmem_limit),
    )(x_nhwc, ws, bs)

    return jnp.transpose(out_nhwc, (0, 3, 1, 2))


# ---------------- pure-JAX reference (for correctness check) ----------------
def _conv_ref(x_nchw, w_hwio, bias, dil):
    w_oihw = jnp.transpose(w_hwio, (3, 2, 0, 1))
    y = jax.lax.conv_general_dilated(
        x_nchw, w_oihw, window_strides=(1, 1),
        padding=((dil, dil), (dil, dil)), rhs_dilation=(dil, dil),
        dimension_numbers=("NCHW", "OIHW", "NCHW"))
    return y + bias.reshape(1, -1, 1, 1)


def _ref_forward(x, p):
    a = jax.nn.relu(_conv_ref(x, p["w1a"], p["b1a"], 1))
    b = jax.nn.relu(_conv_ref(x, p["w1b"], p["b1b"], 2))
    mid = jnp.concatenate([a, b], axis=1)
    c = _conv_ref(mid, p["w2a"], p["b2a"], 1)
    d = _conv_ref(mid, p["w2b"], p["b2b"], 2)
    return x + jnp.concatenate([c, d], axis=1)


if __name__ == "__main__":
    B, dim, H, W = 2, 8, 16, 16
    Ch = dim // 2

    key = jax.random.PRNGKey(0)
    ks = jax.random.split(key, 9)
    x = jax.random.normal(ks[0], (B, dim, H, W), jnp.float32)

    def winit(k):   # weights in HWIO layout: (3, 3, Cin, Cout)
        return 0.1 * jax.random.normal(k, (3, 3, dim, Ch), jnp.float32)

    params = {
        "w1a": winit(ks[1]), "b1a": 0.01 * jax.random.normal(ks[2], (Ch,), jnp.float32),
        "w1b": winit(ks[3]), "b1b": 0.01 * jax.random.normal(ks[4], (Ch,), jnp.float32),
        "w2a": winit(ks[5]), "b2a": 0.01 * jax.random.normal(ks[6], (Ch,), jnp.float32),
        "w2b": winit(ks[7]), "b2b": 0.01 * jax.random.normal(ks[8], (Ch,), jnp.float32),
    }

    out = jax.block_until_ready(resnet_block_dilation2_split(x, params))
    ref = jax.block_until_ready(_ref_forward(x, params))

    assert out.shape == x.shape == ref.shape
    np.testing.assert_allclose(np.asarray(out), np.asarray(ref), rtol=1e-4, atol=1e-4)
    print("KERNEL_OK")
</pallas_src>

<mosaic_0001>
module attributes {stable_mosaic.version = 11 : i64} {
  func.func @_resblock_kernel(%arg0: i32, %arg1: memref<1x16x16x8xf32, #tpu.memory_space<vmem>>, %arg2: memref<2x17x8x8xf32, #tpu.memory_space<vmem>>, %arg3: memref<2x1x8xf32, #tpu.memory_space<vmem>>, %arg4: memref<1x16x16x8xf32, #tpu.memory_space<vmem>>, %arg5: memref<20x32x8xf32, #tpu.memory_space<vmem>>) attributes {dimension_semantics = [#tpu.dimension_semantics<parallel>], iteration_bounds = array<i64: 2>, scalar_prefetch = 0 : i64, scratch_operands = 1 : i64, tpu.core_type = #tpu.core_type<tc>, window_params = [{transform_indices = @transform_0, window_bounds = array<i64: 1, 16, 16, 8>}, {pipeline_mode = #tpu.pipeline_mode<synchronous>, transform_indices = @transform_1, window_bounds = array<i64: 2, 17, 8, 8>}, {pipeline_mode = #tpu.pipeline_mode<synchronous>, transform_indices = @transform_2, window_bounds = array<i64: 2, 1, 8>}, {transform_indices = @transform_3, window_bounds = array<i64: 1, 16, 16, 8>}]} {
    %cst = arith.constant 0.000000e+00 : f32
    %0 = vector.broadcast %cst : f32 to vector<2x32x8xf32>
    %c0 = arith.constant 0 : index
    %c0_0 = arith.constant 0 : index
    %c0_1 = arith.constant 0 : index
    %1 = vector.load %arg5[%c0, %c0_0, %c0_1] : memref<20x32x8xf32, #tpu.memory_space<vmem>>, vector<2x32x8xf32>
    tpu.vector_store %arg5[%c0, %c0_0, %c0_1], %0 {strides = array<i32>} : memref<20x32x8xf32, #tpu.memory_space<vmem>>, vector<2x32x8xf32>,
    %c18 = arith.constant 18 : index
    %c0_2 = arith.constant 0 : index
    %c0_3 = arith.constant 0 : index
    %2 = vector.load %arg5[%c18, %c0_2, %c0_3] : memref<20x32x8xf32, #tpu.memory_space<vmem>>, vector<2x32x8xf32>
    tpu.vector_store %arg5[%c18, %c0_2, %c0_3], %0 {strides = array<i32>} : memref<20x32x8xf32, #tpu.memory_space<vmem>>, vector<2x32x8xf32>,
    %cst_4 = arith.constant 0.000000e+00 : f32
    %3 = vector.broadcast %cst_4 : f32 to vector<16x2x8xf32>
    %c2 = arith.constant 2 : index
    %c6 = arith.constant 6 : index
    %c0_5 = arith.constant 0 : index
    %4 = vector.load %arg5[%c2, %c6, %c0_5] : memref<20x32x8xf32, #tpu.memory_space<vmem>>, vector<16x2x8xf32>
    tpu.vector_store %arg5[%c2, %c6, %c0_5], %3 {strides = array<i32>} : memref<20x32x8xf32, #tpu.memory_space<vmem>>, vector<16x2x8xf32>,
    %c2_6 = arith.constant 2 : index
    %c24 = arith.constant 24 : index
    %c0_7 = arith.constant 0 : index
    %5 = vector.load %arg5[%c2_6, %c24, %c0_7] : memref<20x32x8xf32, #tpu.memory_space<vmem>>, vector<16x2x8xf32>
    tpu.vector_store %arg5[%c2_6, %c24, %c0_7], %3 {strides = array<i32>} : memref<20x32x8xf32, #tpu.memory_space<vmem>>, vector<16x2x8xf32>,
    %c0_8 = arith.constant 0 : index
    %c0_9 = arith.constant 0 : index
    %c0_10 = arith.constant 0 : index
    %c0_11 = arith.constant 0 : index
    %6 = vector.load %arg1[%c0_8, %c0_9, %c0_10, %c0_11] : memref<1x16x16x8xf32, #tpu.memory_space<vmem>>, vector<1x16x16x8xf32>
    %7 = vector.shape_cast %6 : vector<1x16x16x8xf32> to vector<16x16x8xf32>
    %c2_12 = arith.constant 2 : index
    %c8 = arith.constant 8 : index
    %c0_13 = arith.constant 0 : index
    %8 = vector.load %arg5[%c2_12, %c8, %c0_13] : memref<20x32x8xf32, #tpu.memory_space<vmem>>, vector<16x16x8xf32>
    tpu.vector_store %arg5[%c2_12, %c8, %c0_13], %7 {strides = array<i32>} : memref<20x32x8xf32, #tpu.memory_space<vmem>>, vector<16x16x8xf32>,
    %c0_14 = arith.constant 0 : index
    %c0_15 = arith.constant 0 : index
    %c0_16 = arith.constant 0 : index
    %9 = vector.load %arg3[%c0_14, %c0_15, %c0_16] : memref<2x1x8xf32, #tpu.memory_space<vmem>>, vector<1x1x8xf32>
    %10 = vector.shape_cast %9 : vector<1x1x8xf32> to vector<1x8xf32>
    %c0_17 = arith.constant 0 : index
    %c0_18 = arith.constant 0 : index
    %c0_19 = arith.constant 0 : index
    %c0_20 = arith.constant 0 : index
    %11 = vector.load %arg2[%c0_17, %c0_18, %c0_19, %c0_20] : memref<2x17x8x8xf32, #tpu.memory_space<vmem>>, vector<1x1x8x8xf32>
    %12 = vector.shape_cast %11 : vector<1x1x8x8xf32> to vector<8x8xf32>
    %c0_21 = arith.constant 0 : index
    %c1 = arith.constant 1 : index
    %c0_22 = arith.constant 0 : index
    %c0_23 = arith.constant 0 : index
    %13 = vector.load %arg2[%c0_21, %c1, %c0_22, %c0_23] : memref<2x17x8x8xf32, #tpu.memory_space<vmem>>, vector<1x1x8x8xf32>
    %14 = vector.shape_cast %13 : vector<1x1x8x8xf32> to vector<8x8xf32>
    %c0_24 = arith.constant 0 : index
    %c2_25 = arith.constant 2 : index
    %c0_26 = arith.constant 0 : index
    %c0_27 = arith.constant 0 : index
    %15 = vector.load %arg2[%c0_24, %c2_25, %c0_26, %c0_27] : memref<2x17x8x8xf32, #tpu.memory_space<vmem>>, vector<1x1x8x8xf32>
    %16 = vector.shape_cast %15 : vector<1x1x8x8xf32> to vector<8x8xf32>
    %c0_28 = arith.constant 0 : index
    %c3 = arith.constant 3 : index
    %c0_29 = arith.constant 0 : index
    %c0_30 = arith.constant 0 : index
    %17 = vector.load %arg2[%c0_28, %c3, %c0_29, %c0_30] : memref<2x17x8x8xf32, #tpu.memory_space<vmem>>, vector<1x1x8x8xf32>
    %18 = vector.shape_cast %17 : vector<1x1x8x8xf32> to vector<8x8xf32>
    %c0_31 = arith.constant 0 : index
    %c4 = arith.constant 4 : index
    %c0_32 = arith.constant 0 : index
    %c0_33 = arith.constant 0 : index
    %19 = vector.load %arg2[%c0_31, %c4, %c0_32, %c0_33] : memref<2x17x8x8xf32, #tpu.memory_space<vmem>>, vector<1x1x8x8xf32>
    %20 = vector.shape_cast %19 : vector<1x1x8x8xf32> to vector<8x8xf32>
    %c0_34 = arith.constant 0 : index
    %c5 = arith.constant 5 : index
    %c0_35 = arith.constant 0 : index
    %c0_36 = arith.constant 0 : index
    %21 = vector.load %arg2[%c0_34, %c5, %c0_35, %c0_36] : memref<2x17x8x8xf32, #tpu.memory_space<vmem>>, vector<1x1x8x8xf32>
    %22 = vector.shape_cast %21 : vector<1x1x8x8xf32> to vector<8x8xf32>
    %c0_37 = arith.constant 0 : index
    %c6_38 = arith.constant 6 : index
    %c0_39 = arith.constant 0 : index
    %c0_40 = arith.constant 0 : index
    %23 = vector.load %arg2[%c0_37, %c6_38, %c0_39, %c0_40] : memref<2x17x8x8xf32, #tpu.memory_space<vmem>>, vector<1x1x8x8xf32>
    %24 = vector.shape_cast %23 : vector<1x1x8x8xf32> to vector<8x8xf32>
    %c0_41 = arith.constant 0 : index
    %c7 = arith.constant 7 : index
    %c0_42 = arith.constant 0 : index
    %c0_43 = arith.constant 0 : index
    %25 = vector.load %arg2[%c0_41, %c7, %c0_42, %c0_43] : memref<2x17x8x8xf32, #tpu.memory_space<vmem>>, vector<1x1x8x8xf32>
    %26 = vector.shape_cast %25 : vector<1x1x8x8xf32> to vector<8x8xf32>
    %c0_44 = arith.constant 0 : index
    %c8_45 = arith.constant 8 : index
    %c0_46 = arith.constant 0 : index
    %c0_47 = arith.constant 0 : index
    %27 = vector.load %arg2[%c0_44, %c8_45, %c0_46, %c0_47] : memref<2x17x8x8xf32, #tpu.memory_space<vmem>>, vector<1x1x8x8xf32>
    %28 = vector.shape_cast %27 : vector<1x1x8x8xf32> to vector<8x8xf32>
    %c0_48 = arith.constant 0 : index
    %c9 = arith.constant 9 : index
    %c0_49 = arith.constant 0 : index
    %c0_50 = arith.constant 0 : index
    %29 = vector.load %arg2[%c0_48, %c9, %c0_49, %c0_50] : memref<2x17x8x8xf32, #tpu.memory_space<vmem>>, vector<1x1x8x8xf32>
    %30 = vector.shape_cast %29 : vector<1x1x8x8xf32> to vector<8x8xf32>
    %c0_51 = arith.constant 0 : index
    %c10 = arith.constant 10 : index
    %c0_52 = arith.constant 0 : index
    %c0_53 = arith.constant 0 : index
    %31 = vector.load %arg2[%c0_51, %c10, %c0_52, %c0_53] : memref<2x17x8x8xf32, #tpu.memory_space<vmem>>, vector<1x1x8x8xf32>
    %32 = vector.shape_cast %31 : vector<1x1x8x8xf32> to vector<8x8xf32>
    %c0_54 = arith.constant 0 : index
    %c11 = arith.constant 11 : index
    %c0_55 = arith.constant 0 : index
    %c0_56 = arith.constant 0 : index
    %33 = vector.load %arg2[%c0_54, %c11, %c0_55, %c0_56] : memref<2x17x8x8xf32, #tpu.memory_space<vmem>>, vector<1x1x8x8xf32>
    %34 = vector.shape_cast %33 : vector<1x1x8x8xf32> to vector<8x8xf32>
    %c0_57 = arith.constant 0 : index
    %c12 = arith.constant 12 : index
    %c0_58 = arith.constant 0 : index
    %c0_59 = arith.constant 0 : index
    %35 = vector.load %arg2[%c0_57, %c12, %c0_58, %c0_59] : memref<2x17x8x8xf32, #tpu.memory_space<vmem>>, vector<1x1x8x8xf32>
    %36 = vector.shape_cast %35 : vector<1x1x8x8xf32> to vector<8x8xf32>
    %c0_60 = arith.constant 0 : index
    %c13 = arith.constant 13 : index
    %c0_61 = arith.constant 0 : index
    %c0_62 = arith.constant 0 : index
    %37 = vector.load %arg2[%c0_60, %c13, %c0_61, %c0_62] : memref<2x17x8x8xf32, #tpu.memory_space<vmem>>, vector<1x1x8x8xf32>
    %38 = vector.shape_cast %37 : vector<1x1x8x8xf32> to vector<8x8xf32>
    %c0_63 = arith.constant 0 : index
    %c14 = arith.constant 14 : index
    %c0_64 = arith.constant 0 : index
    %c0_65 = arith.constant 0 : index
    %39 = vector.load %arg2[%c0_63, %c14, %c0_64, %c0_65] : memref<2x17x8x8xf32, #tpu.memory_space<vmem>>, vector<1x1x8x8xf32>
    %40 = vector.shape_cast %39 : vector<1x1x8x8xf32> to vector<8x8xf32>
    %c0_66 = arith.constant 0 : index
    %c15 = arith.constant 15 : index
    %c0_67 = arith.constant 0 : index
    %c0_68 = arith.constant 0 : index
    %41 = vector.load %arg2[%c0_66, %c15, %c0_67, %c0_68] : memref<2x17x8x8xf32, #tpu.memory_space<vmem>>, vector<1x1x8x8xf32>
    %42 = vector.shape_cast %41 : vector<1x1x8x8xf32> to vector<8x8xf32>
    %c0_69 = arith.constant 0 : index
    %c16 = arith.constant 16 : index
    %c0_70 = arith.constant 0 : index
    %c0_71 = arith.constant 0 : index
    %43 = vector.load %arg2[%c0_69, %c16, %c0_70, %c0_71] : memref<2x17x8x8xf32, #tpu.memory_space<vmem>>, vector<1x1x8x8xf32>
    %44 = vector.shape_cast %43 : vector<1x1x8x8xf32> to vector<8x8xf32>
    %cst_72 = arith.constant 0.000000e+00 : f32
    %45 = vector.broadcast %cst_72 : f32 to vector<256x8xf32>
    %c0_73 = arith.constant 0 : index
    %c6_74 = arith.constant 6 : index
    %c0_75 = arith.constant 0 : index
    %46 = vector.load %arg5[%c0_73, %c6_74, %c0_75] : memref<20x32x8xf32, #tpu.memory_space<vmem>>, vector<20x16x8xf32>
    %47 = vector.extract_strided_slice %46 {offsets = [0, 0, 0], sizes = [16, 16, 8], strides = [1, 1, 1]} : vector<20x16x8xf32> to vector<16x16x8xf32>
    %48 = vector.shape_cast %47 : vector<16x16x8xf32> to vector<256x8xf32>
    %cst_76 = arith.constant dense<0.000000e+00> : vector<256x8xf32>
    %49 = tpu.matmul %48, %12, %cst_76 {dimension_numbers = #tpu.dot_dimension_numbers<[1], [0], [0], [1], [0, 0, 1, 1], [], []>} : vector<256x8xf32>, vector<8x8xf32>, vector<256x8xf32> -> vector<256x8xf32>
    %50 = arith.addf %45, %49 : vector<256x8xf32>
    %51 = vector.extract_strided_slice %46 {offsets = [2, 0, 0], sizes = [16, 16, 8], strides = [1, 1, 1]} : vector<20x16x8xf32> to vector<16x16x8xf32>
    %52 = vector.shape_cast %51 : vector<16x16x8xf32> to vector<256x8xf32>
    %cst_77 = arith.constant dense<0.000000e+00> : vector<256x8xf32>
    %53 = tpu.matmul %52, %14, %cst_77 {dimension_numbers = #tpu.dot_dimension_numbers<[1], [0], [0], [1], [0, 0, 1, 1], [], []>} : vector<256x8xf32>, vector<8x8xf32>, vector<256x8xf32> -> vector<256x8xf32>
    %54 = arith.addf %50, %53 : vector<256x8xf32>
    %55 = vector.extract_strided_slice %46 {offsets = [4, 0, 0], sizes = [16, 16, 8], strides = [1, 1, 1]} : vector<20x16x8xf32> to vector<16x16x8xf32>
    %56 = vector.shape_cast %55 : vector<16x16x8xf32> to vector<256x8xf32>
    %cst_78 = arith.constant dense<0.000000e+00> : vector<256x8xf32>
    %57 = tpu.matmul %56, %16, %cst_78 {dimension_numbers = #tpu.dot_dimension_numbers<[1], [0], [0], [1], [0, 0, 1, 1], [], []>} : vector<256x8xf32>, vector<8x8xf32>, vector<256x8xf32> -> vector<256x8xf32>
    %58 = arith.addf %54, %57 : vector<256x8xf32>
    %c1_79 = arith.constant 1 : index
    %c7_80 = arith.constant 7 : index
    %c0_81 = arith.constant 0 : index
    %59 = vector.load %arg5[%c1_79, %c7_80, %c0_81] : memref<20x32x8xf32, #tpu.memory_space<vmem>>, vector<18x16x8xf32>
    %60 = vector.extract_strided_slice %59 {offsets = [0, 0, 0], sizes = [16, 16, 8], strides = [1, 1, 1]} : vector<18x16x8xf32> to vector<16x16x8xf32>
    %61 = vector.shape_cast %60 : vector<16x16x8xf32> to vector<256x8xf32>
    %cst_82 = arith.constant dense<0.000000e+00> : vector<256x8xf32>
    %62 = tpu.matmul %61, %18, %cst_82 {dimension_numbers = #tpu.dot_dimension_numbers<[1], [0], [0], [1], [0, 0, 1, 1], [], []>} : vector<256x8xf32>, vector<8x8xf32>, vector<256x8xf32> -> vector<256x8xf32>
    %63 = arith.addf %58, %62 : vector<256x8xf32>
    %64 = vector.extract_strided_slice %59 {offsets = [1, 0, 0], sizes = [16, 16, 8], strides = [1, 1, 1]} : vector<18x16x8xf32> to vector<16x16x8xf32>
    %65 = vector.shape_cast %64 : vector<16x16x8xf32> to vector<256x8xf32>
    %cst_83 = arith.constant dense<0.000000e+00> : vector<256x8xf32>
    %66 = tpu.matmul %65, %20, %cst_83 {dimension_numbers = #tpu.dot_dimension_numbers<[1], [0], [0], [1], [0, 0, 1, 1], [], []>} : vector<256x8xf32>, vector<8x8xf32>, vector<256x8xf32> -> vector<256x8xf32>
    %67 = arith.addf %63, %66 : vector<256x8xf32>
    %68 = vector.extract_strided_slice %59 {offsets = [2, 0, 0], sizes = [16, 16, 8], strides = [1, 1, 1]} : vector<18x16x8xf32> to vector<16x16x8xf32>
    %69 = vector.shape_cast %68 : vector<16x16x8xf32> to vector<256x8xf32>
    %cst_84 = arith.constant dense<0.000000e+00> : vector<256x8xf32>
    %70 = tpu.matmul %69, %22, %cst_84 {dimension_numbers = #tpu.dot_dimension_numbers<[1], [0], [0], [1], [0, 0, 1, 1], [], []>} : vector<256x8xf32>, vector<8x8xf32>, vector<256x8xf32> -> vector<256x8xf32>
    %71 = arith.addf %67, %70 : vector<256x8xf32>
    %c0_85 = arith.constant 0 : index
    %c8_86 = arith.constant 8 : index
    %c0_87 = arith.constant 0 : index
    %72 = vector.load %arg5[%c0_85, %c8_86, %c0_87] : memref<20x32x8xf32, #tpu.memory_space<vmem>>, vector<20x16x8xf32>
    %73 = vector.extract_strided_slice %72 {offsets = [0, 0, 0], sizes = [16, 16, 8], strides = [1, 1, 1]} : vector<20x16x8xf32> to vector<16x16x8xf32>
    %74 = vector.shape_cast %73 : vector<16x16x8xf32> to vector<256x8xf32>
    %cst_88 = arith.constant dense<0.000000e+00> : vector<256x8xf32>
    %75 = tpu.matmul %74, %24, %cst_88 {dimension_numbers = #tpu.dot_dimension_numbers<[1], [0], [0], [1], [0, 0, 1, 1], [], []>} : vector<256x8xf32>, vector<8x8xf32>, vector<256x8xf32> -> vector<256x8xf32>
    %76 = arith.addf %71, %75 : vector<256x8xf32>
    %77 = vector.extract_strided_slice %72 {offsets = [1, 0, 0], sizes = [16, 16, 8], strides = [1, 1, 1]} : vector<20x16x8xf32> to vector<16x16x8xf32>
    %78 = vector.shape_cast %77 : vector<16x16x8xf32> to vector<256x8xf32>
    %cst_89 = arith.constant dense<0.000000e+00> : vector<256x8xf32>
    %79 = tpu.matmul %78, %26, %cst_89 {dimension_numbers = #tpu.dot_dimension_numbers<[1], [0], [0], [1], [0, 0, 1, 1], [], []>} : vector<256x8xf32>, vector<8x8xf32>, vector<256x8xf32> -> vector<256x8xf32>
    %80 = arith.addf %76, %79 : vector<256x8xf32>
    %81 = vector.extract_strided_slice %72 {offsets = [2, 0, 0], sizes = [16, 16, 8], strides = [1, 1, 1]} : vector<20x16x8xf32> to vector<16x16x8xf32>
    %82 = vector.shape_cast %81 : vector<16x16x8xf32> to vector<256x8xf32>
    %cst_90 = arith.constant dense<0.000000e+00> : vector<256x8xf32>
    %83 = tpu.matmul %82, %28, %cst_90 {dimension_numbers = #tpu.dot_dimension_numbers<[1], [0], [0], [1], [0, 0, 1, 1], [], []>} : vector<256x8xf32>, vector<8x8xf32>, vector<256x8xf32> -> vector<256x8xf32>
    %84 = arith.addf %80, %83 : vector<256x8xf32>
    %85 = vector.extract_strided_slice %72 {offsets = [3, 0, 0], sizes = [16, 16, 8], strides = [1, 1, 1]} : vector<20x16x8xf32> to vector<16x16x8xf32>
    %86 = vector.shape_cast %85 : vector<16x16x8xf32> to vector<256x8xf32>
    %cst_91 = arith.constant dense<0.000000e+00> : vector<256x8xf32>
    %87 = tpu.matmul %86, %30, %cst_91 {dimension_numbers = #tpu.dot_dimension_numbers<[1], [0], [0], [1], [0, 0, 1, 1], [], []>} : vector<256x8xf32>, vector<8x8xf32>, vector<256x8xf32> -> vector<256x8xf32>
    %88 = arith.addf %84, %87 : vector<256x8xf32>
    %89 = vector.extract_strided_slice %72 {offsets = [4, 0, 0], sizes = [16, 16, 8], strides = [1, 1, 1]} : vector<20x16x8xf32> to vector<16x16x8xf32>
    %90 = vector.shape_cast %89 : vector<16x16x8xf32> to vector<256x8xf32>
    %cst_92 = arith.constant dense<0.000000e+00> : vector<256x8xf32>
    %91 = tpu.matmul %90, %32, %cst_92 {dimension_numbers = #tpu.dot_dimension_numbers<[1], [0], [0], [1], [0, 0, 1, 1], [], []>} : vector<256x8xf32>, vector<8x8xf32>, vector<256x8xf32> -> vector<256x8xf32>
    %92 = arith.addf %88, %91 : vector<256x8xf32>
    %c1_93 = arith.constant 1 : index
    %c9_94 = arith.constant 9 : index
    %c0_95 = arith.constant 0 : index
    %93 = vector.load %arg5[%c1_93, %c9_94, %c0_95] : memref<20x32x8xf32, #tpu.memory_space<vmem>>, vector<18x16x8xf32>
    %94 = vector.extract_strided_slice %93 {offsets = [0, 0, 0], sizes = [16, 16, 8], strides = [1, 1, 1]} : vector<18x16x8xf32> to vector<16x16x8xf32>
    %95 = vector.shape_cast %94 : vector<16x16x8xf32> to vector<256x8xf32>
    %cst_96 = arith.constant dense<0.000000e+00> : vector<256x8xf32>
    %96 = tpu.matmul %95, %34, %cst_96 {dimension_numbers = #tpu.dot_dimension_numbers<[1], [0], [0], [1], [0, 0, 1, 1], [], []>} : vector<256x8xf32>, vector<8x8xf32>, vector<256x8xf32> -> vector<256x8xf32>
    %97 = arith.addf %92, %96 : vector<256x8xf32>
    %98 = vector.extract_strided_slice %93 {offsets = [1, 0, 0], sizes = [16, 16, 8], strides = [1, 1, 1]} : vector<18x16x8xf32> to vector<16x16x8xf32>
    %99 = vector.shape_cast %98 : vector<16x16x8xf32> to vector<256x8xf32>
    %cst_97 = arith.constant dense<0.000000e+00> : vector<256x8xf32>
    %100 = tpu.matmul %99, %36, %cst_97 {dimension_numbers = #tpu.dot_dimension_numbers<[1], [0], [0], [1], [0, 0, 1, 1], [], []>} : vector<256x8xf32>, vector<8x8xf32>, vector<256x8xf32> -> vector<256x8xf32>
    %101 = arith.addf %97, %100 : vector<256x8xf32>
    %102 = vector.extract_strided_slice %93 {offsets = [2, 0, 0], sizes = [16, 16, 8], strides = [1, 1, 1]} : vector<18x16x8xf32> to vector<16x16x8xf32>
    %103 = vector.shape_cast %102 : vector<16x16x8xf32> to vector<256x8xf32>
    %cst_98 = arith.constant dense<0.000000e+00> : vector<256x8xf32>
    %104 = tpu.matmul %103, %38, %cst_98 {dimension_numbers = #tpu.dot_dimension_numbers<[1], [0], [0], [1], [0, 0, 1, 1], [], []>} : vector<256x8xf32>, vector<8x8xf32>, vector<256x8xf32> -> vector<256x8xf32>
    %105 = arith.addf %101, %104 : vector<256x8xf32>
    %c0_99 = arith.constant 0 : index
    %c10_100 = arith.constant 10 : index
    %c0_101 = arith.constant 0 : index
    %106 = vector.load %arg5[%c0_99, %c10_100, %c0_101] : memref<20x32x8xf32, #tpu.memory_space<vmem>>, vector<20x16x8xf32>
    %107 = vector.extract_strided_slice %106 {offsets = [0, 0, 0], sizes = [16, 16, 8], strides = [1, 1, 1]} : vector<20x16x8xf32> to vector<16x16x8xf32>
    %108 = vector.shape_cast %107 : vector<16x16x8xf32> to vector<256x8xf32>
    %cst_102 = arith.constant dense<0.000000e+00> : vector<256x8xf32>
    %109 = tpu.matmul %108, %40, %cst_102 {dimension_numbers = #tpu.dot_dimension_numbers<[1], [0], [0], [1], [0, 0, 1, 1], [], []>} : vector<256x8xf32>, vector<8x8xf32>, vector<256x8xf32> -> vector<256x8xf32>
    %110 = arith.addf %105, %109 : vector<256x8xf32>
    %111 = vector.extract_strided_slice %106 {offsets = [2, 0, 0], sizes = [16, 16, 8], strides = [1, 1, 1]} : vector<20x16x8xf32> to vector<16x16x8xf32>
    %112 = vector.shape_cast %111 : vector<16x16x8xf32> to vector<256x8xf32>
    %cst_103 = arith.constant dense<0.000000e+00> : vector<256x8xf32>
    %113 = tpu.matmul %112, %42, %cst_103 {dimension_numbers = #tpu.dot_dimension_numbers<[1], [0], [0], [1], [0, 0, 1, 1], [], []>} : vector<256x8xf32>, vector<8x8xf32>, vector<256x8xf32> -> vector<256x8xf32>
    %114 = arith.addf %110, %113 : vector<256x8xf32>
    %115 = vector.extract_strided_slice %106 {offsets = [4, 0, 0], sizes = [16, 16, 8], strides = [1, 1, 1]} : vector<20x16x8xf32> to vector<16x16x8xf32>
    %116 = vector.shape_cast %115 : vector<16x16x8xf32> to vector<256x8xf32>
    %cst_104 = arith.constant dense<0.000000e+00> : vector<256x8xf32>
    %117 = tpu.matmul %116, %44, %cst_104 {dimension_numbers = #tpu.dot_dimension_numbers<[1], [0], [0], [1], [0, 0, 1, 1], [], []>} : vector<256x8xf32>, vector<8x8xf32>, vector<256x8xf32> -> vector<256x8xf32>
    %118 = arith.addf %114, %117 : vector<256x8xf32>
    %119 = vector.broadcast %10 : vector<1x8xf32> to vector<256x8xf32>
    %120 = arith.addf %118, %119 : vector<256x8xf32>
    %cst_105 = arith.constant 0.000000e+00 : f32
    %121 = vector.broadcast %cst_105 : f32 to vector<256x8xf32>
    %122 = arith.maximumf %120, %121 : vector<256x8xf32>
    %123 = vector.shape_cast %122 : vector<256x8xf32> to vector<16x16x8xf32>
    %c2_106 = arith.constant 2 : index
    %c8_107 = arith.constant 8 : index
    %c0_108 = arith.constant 0 : index
    %124 = vector.load %arg5[%c2_106, %c8_107, %c0_108] : memref<20x32x8xf32, #tpu.memory_space<vmem>>, vector<16x16x8xf32>
    tpu.vector_store %arg5[%c2_106, %c8_107, %c0_108], %123 {strides = array<i32>} : memref<20x32x8xf32, #tpu.memory_space<vmem>>, vector<16x16x8xf32>,
    %c1_109 = arith.constant 1 : index
    %c0_110 = arith.constant 0 : index
    %c0_111 = arith.constant 0 : index
    %125 = vector.load %arg3[%c1_109, %c0_110, %c0_111] : memref<2x1x8xf32, #tpu.memory_space<vmem>>, vector<1x1x8xf32>
    %126 = vector.shape_cast %125 : vector<1x1x8xf32> to vector<1x8xf32>
    %c1_112 = arith.constant 1 : index
    %c0_113 = arith.constant 0 : index
    %c0_114 = arith.constant 0 : index
    %c0_115 = arith.constant 0 : index
    %127 = vector.load %arg2[%c1_112, %c0_113, %c0_114, %c0_115] : memref<2x17x8x8xf32, #tpu.memory_space<vmem>>, vector<1x1x8x8xf32>
    %128 = vector.shape_cast %127 : vector<1x1x8x8xf32> to vector<8x8xf32>
    %c1_116 = arith.constant 1 : index
    %c1_117 = arith.constant 1 : index
    %c0_118 = arith.constant 0 : index
    %c0_119 = arith.constant 0 : index
    %129 = vector.load %arg2[%c1_116, %c1_117, %c0_118, %c0_119] : memref<2x17x8x8xf32, #tpu.memory_space<vmem>>, vector<1x1x8x8xf32>
    %130 = vector.shape_cast %129 : vector<1x1x8x8xf32> to vector<8x8xf32>
    %c1_120 = arith.constant 1 : index
    %c2_121 = arith.constant 2 : index
    %c0_122 = arith.constant 0 : index
    %c0_123 = arith.constant 0 : index
    %131 = vector.load %arg2[%c1_120, %c2_121, %c0_122, %c0_123] : memref<2x17x8x8xf32, #tpu.memory_space<vmem>>, vector<1x1x8x8xf32>
    %132 = vector.shape_cast %131 : vector<1x1x8x8xf32> to vector<8x8xf32>
    %c1_124 = arith.constant 1 : index
    %c3_125 = arith.constant 3 : index
    %c0_126 = arith.constant 0 : index
    %c0_127 = arith.constant 0 : index
    %133 = vector.load %arg2[%c1_124, %c3_125, %c0_126, %c0_127] : memref<2x17x8x8xf32, #tpu.memory_space<vmem>>, vector<1x1x8x8xf32>
    %134 = vector.shape_cast %133 : vector<1x1x8x8xf32> to vector<8x8xf32>
    %c1_128 = arith.constant 1 : index
    %c4_129 = arith.constant 4 : index
    %c0_130 = arith.constant 0 : index
    %c0_131 = arith.constant 0 : index
    %135 = vector.load %arg2[%c1_128, %c4_129, %c0_130, %c0_131] : memref<2x17x8x8xf32, #tpu.memory_space<vmem>>, vector<1x1x8x8xf32>
    %136 = vector.shape_cast %135 : vector<1x1x8x8xf32> to vector<8x8xf32>
    %c1_132 = arith.constant 1 : index
    %c5_133 = arith.constant 5 : index
    %c0_134 = arith.constant 0 : index
    %c0_135 = arith.constant 0 : index
    %137 = vector.load %arg2[%c1_132, %c5_133, %c0_134, %c0_135] : memref<2x17x8x8xf32, #tpu.memory_space<vmem>>, vector<1x1x8x8xf32>
    %138 = vector.shape_cast %137 : vector<1x1x8x8xf32> to vector<8x8xf32>
    %c1_136 = arith.constant 1 : index
    %c6_137 = arith.constant 6 : index
    %c0_138 = arith.constant 0 : index
    %c0_139 = arith.constant 0 : index
    %139 = vector.load %arg2[%c1_136, %c6_137, %c0_138, %c0_139] : memref<2x17x8x8xf32, #tpu.memory_space<vmem>>, vector<1x1x8x8xf32>
    %140 = vector.shape_cast %139 : vector<1x1x8x8xf32> to vector<8x8xf32>
    %c1_140 = arith.constant 1 : index
    %c7_141 = arith.constant 7 : index
    %c0_142 = arith.constant 0 : index
    %c0_143 = arith.constant 0 : index
    %141 = vector.load %arg2[%c1_140, %c7_141, %c0_142, %c0_143] : memref<2x17x8x8xf32, #tpu.memory_space<vmem>>, vector<1x1x8x8xf32>
    %142 = vector.shape_cast %141 : vector<1x1x8x8xf32> to vector<8x8xf32>
    %c1_144 = arith.constant 1 : index
    %c8_145 = arith.constant 8 : index
    %c0_146 = arith.constant 0 : index
    %c0_147 = arith.constant 0 : index
    %143 = vector.load %arg2[%c1_144, %c8_145, %c0_146, %c0_147] : memref<2x17x8x8xf32, #tpu.memory_space<vmem>>, vector<1x1x8x8xf32>
    %144 = vector.shape_cast %143 : vector<1x1x8x8xf32> to vector<8x8xf32>
    %c1_148 = arith.constant 1 : index
    %c9_149 = arith.constant 9 : index
    %c0_150 = arith.constant 0 : index
    %c0_151 = arith.constant 0 : index
    %145 = vector.load %arg2[%c1_148, %c9_149, %c0_150, %c0_151] : memref<2x17x8x8xf32, #tpu.memory_space<vmem>>, vector<1x1x8x8xf32>
    %146 = vector.shape_cast %145 : vector<1x1x8x8xf32> to vector<8x8xf32>
    %c1_152 = arith.constant 1 : index
    %c10_153 = arith.constant 10 : index
    %c0_154 = arith.constant 0 : index
    %c0_155 = arith.constant 0 : index
    %147 = vector.load %arg2[%c1_152, %c10_153, %c0_154, %c0_155] : memref<2x17x8x8xf32, #tpu.memory_space<vmem>>, vector<1x1x8x8xf32>
    %148 = vector.shape_cast %147 : vector<1x1x8x8xf32> to vector<8x8xf32>
    %c1_156 = arith.constant 1 : index
    %c11_157 = arith.constant 11 : index
    %c0_158 = arith.constant 0 : index
    %c0_159 = arith.constant 0 : index
    %149 = vector.load %arg2[%c1_156, %c11_157, %c0_158, %c0_159] : memref<2x17x8x8xf32, #tpu.memory_space<vmem>>, vector<1x1x8x8xf32>
    %150 = vector.shape_cast %149 : vector<1x1x8x8xf32> to vector<8x8xf32>
    %c1_160 = arith.constant 1 : index
    %c12_161 = arith.constant 12 : index
    %c0_162 = arith.constant 0 : index
    %c0_163 = arith.constant 0 : index
    %151 = vector.load %arg2[%c1_160, %c12_161, %c0_162, %c0_163] : memref<2x17x8x8xf32, #tpu.memory_space<vmem>>, vector<1x1x8x8xf32>
    %152 = vector.shape_cast %151 : vector<1x1x8x8xf32> to vector<8x8xf32>
    %c1_164 = arith.constant 1 : index
    %c13_165 = arith.constant 13 : index
    %c0_166 = arith.constant 0 : index
    %c0_167 = arith.constant 0 : index
    %153 = vector.load %arg2[%c1_164, %c13_165, %c0_166, %c0_167] : memref<2x17x8x8xf32, #tpu.memory_space<vmem>>, vector<1x1x8x8xf32>
    %154 = vector.shape_cast %153 : vector<1x1x8x8xf32> to vector<8x8xf32>
    %c1_168 = arith.constant 1 : index
    %c14_169 = arith.constant 14 : index
    %c0_170 = arith.constant 0 : index
    %c0_171 = arith.constant 0 : index
    %155 = vector.load %arg2[%c1_168, %c14_169, %c0_170, %c0_171] : memref<2x17x8x8xf32, #tpu.memory_space<vmem>>, vector<1x1x8x8xf32>
    %156 = vector.shape_cast %155 : vector<1x1x8x8xf32> to vector<8x8xf32>
    %c1_172 = arith.constant 1 : index
    %c15_173 = arith.constant 15 : index
    %c0_174 = arith.constant 0 : index
    %c0_175 = arith.constant 0 : index
    %157 = vector.load %arg2[%c1_172, %c15_173, %c0_174, %c0_175] : memref<2x17x8x8xf32, #tpu.memory_space<vmem>>, vector<1x1x8x8xf32>
    %158 = vector.shape_cast %157 : vector<1x1x8x8xf32> to vector<8x8xf32>
    %c1_176 = arith.constant 1 : index
    %c16_177 = arith.constant 16 : index
    %c0_178 = arith.constant 0 : index
    %c0_179 = arith.constant 0 : index
    %159 = vector.load %arg2[%c1_176, %c16_177, %c0_178, %c0_179] : memref<2x17x8x8xf32, #tpu.memory_space<vmem>>, vector<1x1x8x8xf32>
    %160 = vector.shape_cast %159 : vector<1x1x8x8xf32> to vector<8x8xf32>
    %cst_180 = arith.constant 0.000000e+00 : f32
    %161 = vector.broadcast %cst_180 : f32 to vector<256x8xf32>
    %c0_181 = arith.constant 0 : index
    %c6_182 = arith.constant 6 : index
    %c0_183 = arith.constant 0 : index
    %162 = vector.load %arg5[%c0_181, %c6_182, %c0_183] : memref<20x32x8xf32, #tpu.memory_space<vmem>>, vector<20x16x8xf32>
    %163 = vector.extract_strided_slice %162 {offsets = [0, 0, 0], sizes = [16, 16, 8], strides = [1, 1, 1]} : vector<20x16x8xf32> to vector<16x16x8xf32>
    %164 = vector.shape_cast %163 : vector<16x16x8xf32> to vector<256x8xf32>
    %cst_184 = arith.constant dense<0.000000e+00> : vector<256x8xf32>
    %165 = tpu.matmul %164, %128, %cst_184 {dimension_numbers = #tpu.dot_dimension_numbers<[1], [0], [0], [1], [0, 0, 1, 1], [], []>} : vector<256x8xf32>, vector<8x8xf32>, vector<256x8xf32> -> vector<256x8xf32>
    %166 = arith.addf %161, %165 : vector<256x8xf32>
    %167 = vector.extract_strided_slice %162 {offsets = [2, 0, 0], sizes = [16, 16, 8], strides = [1, 1, 1]} : vector<20x16x8xf32> to vector<16x16x8xf32>
    %168 = vector.shape_cast %167 : vector<16x16x8xf32> to vector<256x8xf32>
    %cst_185 = arith.constant dense<0.000000e+00> : vector<256x8xf32>
    %169 = tpu.matmul %168, %130, %cst_185 {dimension_numbers = #tpu.dot_dimension_numbers<[1], [0], [0], [1], [0, 0, 1, 1], [], []>} : vector<256x8xf32>, vector<8x8xf32>, vector<256x8xf32> -> vector<256x8xf32>
    %170 = arith.addf %166, %169 : vector<256x8xf32>
    %171 = vector.extract_strided_slice %162 {offsets = [4, 0, 0], sizes = [16, 16, 8], strides = [1, 1, 1]} : vector<20x16x8xf32> to vector<16x16x8xf32>
    %172 = vector.shape_cast %171 : vector<16x16x8xf32> to vector<256x8xf32>
    %cst_186 = arith.constant dense<0.000000e+00> : vector<256x8xf32>
    %173 = tpu.matmul %172, %132, %cst_186 {dimension_numbers = #tpu.dot_dimension_numbers<[1], [0], [0], [1], [0, 0, 1, 1], [], []>} : vector<256x8xf32>, vector<8x8xf32>, vector<256x8xf32> -> vector<256x8xf32>
    %174 = arith.addf %170, %173 : vector<256x8xf32>
    %c1_187 = arith.constant 1 : index
    %c7_188 = arith.constant 7 : index
    %c0_189 = arith.constant 0 : index
    %175 = vector.load %arg5[%c1_187, %c7_188, %c0_189] : memref<20x32x8xf32, #tpu.memory_space<vmem>>, vector<18x16x8xf32>
    %176 = vector.extract_strided_slice %175 {offsets = [0, 0, 0], sizes = [16, 16, 8], strides = [1, 1, 1]} : vector<18x16x8xf32> to vector<16x16x8xf32>
    %177 = vector.shape_cast %176 : vector<16x16x8xf32> to vector<256x8xf32>
    %cst_190 = arith.constant dense<0.000000e+00> : vector<256x8xf32>
    %178 = tpu.matmul %177, %134, %cst_190 {dimension_numbers = #tpu.dot_dimension_numbers<[1], [0], [0], [1], [0, 0, 1, 1], [], []>} : vector<256x8xf32>, vector<8x8xf32>, vector<256x8xf32> -> vector<256x8xf32>
    %179 = arith.addf %174, %178 : vector<256x8xf32>
    %180 = vector.extract_strided_slice %175 {offsets = [1, 0, 0], sizes = [16, 16, 8], strides = [1, 1, 1]} : vector<18x16x8xf32> to vector<16x16x8xf32>
    %181 = vector.shape_cast %180 : vector<16x16x8xf32> to vector<256x8xf32>
    %cst_191 = arith.constant dense<0.000000e+00> : vector<256x8xf32>
    %182 = tpu.matmul %181, %136, %cst_191 {dimension_numbers = #tpu.dot_dimension_numbers<[1], [0], [0], [1], [0, 0, 1, 1], [], []>} : vector<256x8xf32>, vector<8x8xf32>, vector<256x8xf32> -> vector<256x8xf32>
    %183 = arith.addf %179, %182 : vector<256x8xf32>
    %184 = vector.extract_strided_slice %175 {offsets = [2, 0, 0], sizes = [16, 16, 8], strides = [1, 1, 1]} : vector<18x16x8xf32> to vector<16x16x8xf32>
    %185 = vector.shape_cast %184 : vector<16x16x8xf32> to vector<256x8xf32>
    %cst_192 = arith.constant dense<0.000000e+00> : vector<256x8xf32>
    %186 = tpu.matmul %185, %138, %cst_192 {dimension_numbers = #tpu.dot_dimension_numbers<[1], [0], [0], [1], [0, 0, 1, 1], [], []>} : vector<256x8xf32>, vector<8x8xf32>, vector<256x8xf32> -> vector<256x8xf32>
    %187 = arith.addf %183, %186 : vector<256x8xf32>
    %c0_193 = arith.constant 0 : index
    %c8_194 = arith.constant 8 : index
    %c0_195 = arith.constant 0 : index
    %188 = vector.load %arg5[%c0_193, %c8_194, %c0_195] : memref<20x32x8xf32, #tpu.memory_space<vmem>>, vector<20x16x8xf32>
    %189 = vector.extract_strided_slice %188 {offsets = [0, 0, 0], sizes = [16, 16, 8], strides = [1, 1, 1]} : vector<20x16x8xf32> to vector<16x16x8xf32>
    %190 = vector.shape_cast %189 : vector<16x16x8xf32> to vector<256x8xf32>
    %cst_196 = arith.constant dense<0.000000e+00> : vector<256x8xf32>
    %191 = tpu.matmul %190, %140, %cst_196 {dimension_numbers = #tpu.dot_dimension_numbers<[1], [0], [0], [1], [0, 0, 1, 1], [], []>} : vector<256x8xf32>, vector<8x8xf32>, vector<256x8xf32> -> vector<256x8xf32>
    %192 = arith.addf %187, %191 : vector<256x8xf32>
    %193 = vector.extract_strided_slice %188 {offsets = [1, 0, 0], sizes = [16, 16, 8], strides = [1, 1, 1]} : vector<20x16x8xf32> to vector<16x16x8xf32>
    %194 = vector.shape_cast %193 : vector<16x16x8xf32> to vector<256x8xf32>
    %cst_197 = arith.constant dense<0.000000e+00> : vector<256x8xf32>
    %195 = tpu.matmul %194, %142, %cst_197 {dimension_numbers = #tpu.dot_dimension_numbers<[1], [0], [0], [1], [0, 0, 1, 1], [], []>} : vector<256x8xf32>, vector<8x8xf32>, vector<256x8xf32> -> vector<256x8xf32>
    %196 = arith.addf %192, %195 : vector<256x8xf32>
    %197 = vector.extract_strided_slice %188 {offsets = [2, 0, 0], sizes = [16, 16, 8], strides = [1, 1, 1]} : vector<20x16x8xf32> to vector<16x16x8xf32>
    %198 = vector.shape_cast %197 : vector<16x16x8xf32> to vector<256x8xf32>
    %cst_198 = arith.constant dense<0.000000e+00> : vector<256x8xf32>
    %199 = tpu.matmul %198, %144, %cst_198 {dimension_numbers = #tpu.dot_dimension_numbers<[1], [0], [0], [1], [0, 0, 1, 1], [], []>} : vector<256x8xf32>, vector<8x8xf32>, vector<256x8xf32> -> vector<256x8xf32>
    %200 = arith.addf %196, %199 : vector<256x8xf32>
    %201 = vector.extract_strided_slice %188 {offsets = [3, 0, 0], sizes = [16, 16, 8], strides = [1, 1, 1]} : vector<20x16x8xf32> to vector<16x16x8xf32>
    %202 = vector.shape_cast %201 : vector<16x16x8xf32> to vector<256x8xf32>
    %cst_199 = arith.constant dense<0.000000e+00> : vector<256x8xf32>
    %203 = tpu.matmul %202, %146, %cst_199 {dimension_numbers = #tpu.dot_dimension_numbers<[1], [0], [0], [1], [0, 0, 1, 1], [], []>} : vector<256x8xf32>, vector<8x8xf32>, vector<256x8xf32> -> vector<256x8xf32>
    %204 = arith.addf %200, %203 : vector<256x8xf32>
    %205 = vector.extract_strided_slice %188 {offsets = [4, 0, 0], sizes = [16, 16, 8], strides = [1, 1, 1]} : vector<20x16x8xf32> to vector<16x16x8xf32>
    %206 = vector.shape_cast %205 : vector<16x16x8xf32> to vector<256x8xf32>
    %cst_200 = arith.constant dense<0.000000e+00> : vector<256x8xf32>
    %207 = tpu.matmul %206, %148, %cst_200 {dimension_numbers = #tpu.dot_dimension_numbers<[1], [0], [0], [1], [0, 0, 1, 1], [], []>} : vector<256x8xf32>, vector<8x8xf32>, vector<256x8xf32> -> vector<256x8xf32>
    %208 = arith.addf %204, %207 : vector<256x8xf32>
    %c1_201 = arith.constant 1 : index
    %c9_202 = arith.constant 9 : index
    %c0_203 = arith.constant 0 : index
    %209 = vector.load %arg5[%c1_201, %c9_202, %c0_203] : memref<20x32x8xf32, #tpu.memory_space<vmem>>, vector<18x16x8xf32>
    %210 = vector.extract_strided_slice %209 {offsets = [0, 0, 0], sizes = [16, 16, 8], strides = [1, 1, 1]} : vector<18x16x8xf32> to vector<16x16x8xf32>
    %211 = vector.shape_cast %210 : vector<16x16x8xf32> to vector<256x8xf32>
    %cst_204 = arith.constant dense<0.000000e+00> : vector<256x8xf32>
    %212 = tpu.matmul %211, %150, %cst_204 {dimension_numbers = #tpu.dot_dimension_numbers<[1], [0], [0], [1], [0, 0, 1, 1], [], []>} : vector<256x8xf32>, vector<8x8xf32>, vector<256x8xf32> -> vector<256x8xf32>
    %213 = arith.addf %208, %212 : vector<256x8xf32>
    %214 = vector.extract_strided_slice %209 {offsets = [1, 0, 0], sizes = [16, 16, 8], strides = [1, 1, 1]} : vector<18x16x8xf32> to vector<16x16x8xf32>
    %215 = vector.shape_cast %214 : vector<16x16x8xf32> to vector<256x8xf32>
    %cst_205 = arith.constant dense<0.000000e+00> : vector<256x8xf32>
    %216 = tpu.matmul %215, %152, %cst_205 {dimension_numbers = #tpu.dot_dimension_numbers<[1], [0], [0], [1], [0, 0, 1, 1], [], []>} : vector<256x8xf32>, vector<8x8xf32>, vector<256x8xf32> -> vector<256x8xf32>
    %217 = arith.addf %213, %216 : vector<256x8xf32>
    %218 = vector.extract_strided_slice %209 {offsets = [2, 0, 0], sizes = [16, 16, 8], strides = [1, 1, 1]} : vector<18x16x8xf32> to vector<16x16x8xf32>
    %219 = vector.shape_cast %218 : vector<16x16x8xf32> to vector<256x8xf32>
    %cst_206 = arith.constant dense<0.000000e+00> : vector<256x8xf32>
    %220 = tpu.matmul %219, %154, %cst_206 {dimension_numbers = #tpu.dot_dimension_numbers<[1], [0], [0], [1], [0, 0, 1, 1], [], []>} : vector<256x8xf32>, vector<8x8xf32>, vector<256x8xf32> -> vector<256x8xf32>
    %221 = arith.addf %217, %220 : vector<256x8xf32>
    %c0_207 = arith.constant 0 : index
    %c10_208 = arith.constant 10 : index
    %c0_209 = arith.constant 0 : index
    %222 = vector.load %arg5[%c0_207, %c10_208, %c0_209] : memref<20x32x8xf32, #tpu.memory_space<vmem>>, vector<20x16x8xf32>
    %223 = vector.extract_strided_slice %222 {offsets = [0, 0, 0], sizes = [16, 16, 8], strides = [1, 1, 1]} : vector<20x16x8xf32> to vector<16x16x8xf32>
    %224 = vector.shape_cast %223 : vector<16x16x8xf32> to vector<256x8xf32>
    %cst_210 = arith.constant dense<0.000000e+00> : vector<256x8xf32>
    %225 = tpu.matmul %224, %156, %cst_210 {dimension_numbers = #tpu.dot_dimension_numbers<[1], [0], [0], [1], [0, 0, 1, 1], [], []>} : vector<256x8xf32>, vector<8x8xf32>, vector<256x8xf32> -> vector<256x8xf32>
    %226 = arith.addf %221, %225 : vector<256x8xf32>
    %227 = vector.extract_strided_slice %222 {offsets = [2, 0, 0], sizes = [16, 16, 8], strides = [1, 1, 1]} : vector<20x16x8xf32> to vector<16x16x8xf32>
    %228 = vector.shape_cast %227 : vector<16x16x8xf32> to vector<256x8xf32>
    %cst_211 = arith.constant dense<0.000000e+00> : vector<256x8xf32>
    %229 = tpu.matmul %228, %158, %cst_211 {dimension_numbers = #tpu.dot_dimension_numbers<[1], [0], [0], [1], [0, 0, 1, 1], [], []>} : vector<256x8xf32>, vector<8x8xf32>, vector<256x8xf32> -> vector<256x8xf32>
    %230 = arith.addf %226, %229 : vector<256x8xf32>
    %231 = vector.extract_strided_slice %222 {offsets = [4, 0, 0], sizes = [16, 16, 8], strides = [1, 1, 1]} : vector<20x16x8xf32> to vector<16x16x8xf32>
    %232 = vector.shape_cast %231 : vector<16x16x8xf32> to vector<256x8xf32>
    %cst_212 = arith.constant dense<0.000000e+00> : vector<256x8xf32>
    %233 = tpu.matmul %232, %160, %cst_212 {dimension_numbers = #tpu.dot_dimension_numbers<[1], [0], [0], [1], [0, 0, 1, 1], [], []>} : vector<256x8xf32>, vector<8x8xf32>, vector<256x8xf32> -> vector<256x8xf32>
    %234 = arith.addf %230, %233 : vector<256x8xf32>
    %235 = vector.broadcast %126 : vector<1x8xf32> to vector<256x8xf32>
    %236 = arith.addf %234, %235 : vector<256x8xf32>
    %c0_213 = arith.constant 0 : index
    %c0_214 = arith.constant 0 : index
    %c0_215 = arith.constant 0 : index
    %c0_216 = arith.constant 0 : index
    %237 = vector.load %arg1[%c0_213, %c0_214, %c0_215, %c0_216] : memref<1x16x16x8xf32, #tpu.memory_space<vmem>>, vector<1x16x16x8xf32>
    %238 = vector.shape_cast %237 : vector<1x16x16x8xf32> to vector<16x16x8xf32>
    %239 = vector.shape_cast %238 : vector<16x16x8xf32> to vector<256x8xf32>
    %240 = arith.addf %239, %236 : vector<256x8xf32>
    %241 = vector.shape_cast %240 : vector<256x8xf32> to vector<16x16x8xf32>
    %c0_217 = arith.constant 0 : index
    %c0_218 = arith.constant 0 : index
    %c0_219 = arith.constant 0 : index
    %c0_220 = arith.constant 0 : index
    %242 = vector.load %arg4[%c0_217, %c0_218, %c0_219, %c0_220] : memref<1x16x16x8xf32, #tpu.memory_space<vmem>>, vector<1x16x16x8xf32>
    %243 = vector.shape_cast %242 : vector<1x16x16x8xf32> to vector<16x16x8xf32>
    %244 = vector.shape_cast %241 : vector<16x16x8xf32> to vector<1x16x16x8xf32>
    tpu.vector_store %arg4[%c0_217, %c0_218, %c0_219, %c0_220], %244 {strides = array<i32>} : memref<1x16x16x8xf32, #tpu.memory_space<vmem>>, vector<1x16x16x8xf32>,
    return
  }
  func.func @transform_0(%arg0: i32) -> (i32, i32, i32, i32) {
    %c0_i32 = arith.constant 0 : i32
    %c0_i32_0 = arith.constant 0 : i32
    %c0_i32_1 = arith.constant 0 : i32
    %c0_i32_2 = arith.constant 0 : i32
    return %arg0, %c0_i32, %c0_i32_0, %c0_i32_1 : i32, i32, i32, i32
  }
  func.func @transform_1(%arg0: i32) -> (i32, i32, i32, i32) {
    %c0_i32 = arith.constant 0 : i32
    %c0_i32_0 = arith.constant 0 : i32
    %c0_i32_1 = arith.constant 0 : i32
    %c0_i32_2 = arith.constant 0 : i32
    %c0_i32_3 = arith.constant 0 : i32
    return %c0_i32, %c0_i32_0, %c0_i32_1, %c0_i32_2 : i32, i32, i32, i32
  }
  func.func @transform_2(%arg0: i32) -> (i32, i32, i32) {
    %c0_i32 = arith.constant 0 : i32
    %c0_i32_0 = arith.constant 0 : i32
    %c0_i32_1 = arith.constant 0 : i32
    %c0_i32_2 = arith.constant 0 : i32
    return %c0_i32, %c0_i32_0, %c0_i32_1 : i32, i32, i32
  }
  func.func @transform_3(%arg0: i32) -> (i32, i32, i32, i32) {
    %c0_i32 = arith.constant 0 : i32
    %c0_i32_0 = arith.constant 0 : i32
    %c0_i32_1 = arith.constant 0 : i32
    %c0_i32_2 = arith.constant 0 : i32
    return %arg0, %c0_i32, %c0_i32_0, %c0_i32_1 : i32, i32, i32, i32
  }
}

</mosaic_0001>

<bundles_post_ra>
// kernel: tpu_custom_call.1
= control target key start
LH: loop header
LB: loop body
LE: loop exit
PB: predicated region body
PF: predicated region fallthrough
CT: control target
= control target key end

     0   :  { %s15816_s12 = smov 0   ;;  %s18936_s0 = inlined_call_operand.vmem [shape: f32[2,16,16,8], index: 0, kind: input, shape index: {}]   ;;  %s18937_s1 = inlined_call_operand.vmem [shape: f32[2,17,8,8], index: 1, kind: input, shape index: {}]   ;;  %s18938_s2 = inlined_call_operand.vmem [shape: f32[2,1,8], index: 2, kind: input, shape index: {}]   ;;  %s18939_s3 = inlined_call_operand.vmem [shape: f32[2,16,16,8], index: 3, kind: output, shape index: {}]  }
   0x1 LB: > { %s10795_s13 = sadd.s32 4294967295, %s15793_s12   ;;  %p10799_p0 = scmp.ge.s32.totalorder %s15793_s12, 1  ;;  %s15793_s12 = sphi %s15816_s12, %s13_s12  }
   0x2   : > { %p137_p1 = scmp.lt.s32.totalorder %s15793_s12, 3 }
   0x4   : > { %p138_p2 = pnand %p10799_p0, %p137_p1 }
   0x5   : > { %v10804_v0 = vld [vmem:[%s18937_s1 + $0x8] sm:$0xff] (!%p138_p2)  ;;  %p15829_p3 = scmp.lt.s32.totalorder (!%p138_p2), %s10795_s13, 1  ;;  %vm171_vm0 = vcmask (!%p138_p2), 64512   ;;  %vm190_vm1 = vcmask (!%p138_p2), 58368   ;;  %v15836_v1 = vld [vmem:[%s18937_s1] sm:$0xff] (!%p138_p2)  ;;  %v15795_v2 = vmov (!%p138_p2), 0.0  }
   0x6   : > { %141 = sbr.rel (%p138_p2) target bundleno = 2591 (0xa1f), region = 32  ;;  %13054 = vmatprep.subr.mxu0 (!%p138_p2), %v10804_v0  ;;  %191 = vst.msk [vmem:[#allocation2 + $0x46] sm:$0x3] (!%p138_p2), %vm190_vm1, %v15795_v2  ;;  %192 = vst.msk [vmem:[#allocation2 + $0x66] sm:$0x3] (!%p138_p2), %vm190_vm1, %v15795_v2  ;;  %v15960_v30 = vld [vmem:[%s18937_s1 + $0x10] sm:$0xff] (!%p138_p2) }
   0x7   : > { %172 = vst.msk [vmem:[#allocation2] sm:$0xff] (!%p138_p2), %vm171_vm0, %v15795_v2  ;;  %173 = vst.msk [vmem:[#allocation2 + $0x8] sm:$0xff] (!%p138_p2), %vm171_vm0, %v15795_v2  ;;  %13055 = vmatpush3.msra.mxu0 (!%p138_p2), %v10804_v0 }
   0x8   : > { %174 = vst.msk [vmem:[#allocation2 + $0x10] sm:$0xff] (!%p138_p2), %vm171_vm0, %v15795_v2  ;;  %175 = vst.msk [vmem:[#allocation2 + $0x18] sm:$0xff] (!%p138_p2), %vm171_vm0, %v15795_v2  ;;  %13104 = vmatprep.subr.mxu0 (!%p138_p2), %v15836_v1 }
   0x9   : > { %176 = vst.msk [vmem:[#allocation2 + $0x20] sm:$0xff] (!%p138_p2), %vm171_vm0, %v15795_v2  ;;  %177 = vst.msk [vmem:[#allocation2 + $0x28] sm:$0xff] (!%p138_p2), %vm171_vm0, %v15795_v2 }
   0xa   : > { %178 = vst.msk [vmem:[#allocation2 + $0x30] sm:$0xff] (!%p138_p2), %vm171_vm0, %v15795_v2  ;;  %179 = vst.msk [vmem:[#allocation2 + $0x38] sm:$0xff] (!%p138_p2), %vm171_vm0, %v15795_v2 }
   0xb   : > { %181 = vst.msk [vmem:[#allocation2 + $0x240] sm:$0xff] (!%p138_p2), %vm171_vm0, %v15795_v2  ;;  %182 = vst.msk [vmem:[#allocation2 + $0x248] sm:$0xff] (!%p138_p2), %vm171_vm0, %v15795_v2 }
   0xc   : > { %183 = vst.msk [vmem:[#allocation2 + $0x250] sm:$0xff] (!%p138_p2), %vm171_vm0, %v15795_v2  ;;  %184 = vst.msk [vmem:[#allocation2 + $0x258] sm:$0xff] (!%p138_p2), %vm171_vm0, %v15795_v2 }
   0xd   : > { %185 = vst.msk [vmem:[#allocation2 + $0x260] sm:$0xff] %vm171_vm0, %v15795_v2  ;;  %186 = vst.msk [vmem:[#allocation2 + $0x268] sm:$0xff] %vm171_vm0, %v15795_v2  ;;  %s18942_s13 = smov (!%p15829_p3, %s10795_s13), 1 }
   0xe   : > { %187 = vst.msk [vmem:[#allocation2 + $0x270] sm:$0xff] %vm171_vm0, %v15795_v2  ;;  %188 = vst.msk [vmem:[#allocation2 + $0x278] sm:$0xff] %vm171_vm0, %v15795_v2  ;;  %s11930_s19 = sshll.u32 %s18942_s13, 8 }
   0xf   : > { %193 = vst.msk [vmem:[#allocation2 + $0x86] sm:$0x3] %vm190_vm1, %v15795_v2  ;;  %194 = vst.msk [vmem:[#allocation2 + $0xa6] sm:$0x3] %vm190_vm1, %v15795_v2  ;;  %s15899_s22 = scalar_lea.vmem %s18936_s0, %s11930_s19  ;;  %s18806_s24 = scalar_lea.vmem %s18939_s3, %s11930_s19 }
  0x10   : > { %195 = vst.msk [vmem:[#allocation2 + $0xc6] sm:$0x3] %vm190_vm1, %v15795_v2  ;;  %196 = vst.msk [vmem:[#allocation2 + $0xe6] sm:$0x3] %vm190_vm1, %v15795_v2  ;;  %v223_v3 = vld [vmem:[%s15899_s22] sm:$0xff]  ;;  %v224_v4 = vld [vmem:[%s15899_s22 + $0x8] sm:$0xff] }
  0x11   : > { %197 = vst.msk [vmem:[#allocation2 + $0x106] sm:$0x3] %vm190_vm1, %v15795_v2  ;;  %198 = vst.msk [vmem:[#allocation2 + $0x126] sm:$0x3] %vm190_vm1, %v15795_v2  ;;  %v225_v5 = vld [vmem:[%s15899_s22 + $0x10] sm:$0xff]  ;;  %v226_v6 = vld [vmem:[%s15899_s22 + $0x18] sm:$0xff] }
  0x12   : > { %199 = vst.msk [vmem:[#allocation2 + $0x146] sm:$0x3] %vm190_vm1, %v15795_v2  ;;  %200 = vst.msk [vmem:[#allocation2 + $0x166] sm:$0x3] %vm190_vm1, %v15795_v2  ;;  %v227_v7 = vld [vmem:[%s15899_s22 + $0x20] sm:$0xff]  ;;  %v228_v8 = vld [vmem:[%s15899_s22 + $0x28] sm:$0xff] }
  0x13   : > { %201 = vst.msk [vmem:[#allocation2 + $0x186] sm:$0x3] %vm190_vm1, %v15795_v2  ;;  %202 = vst.msk [vmem:[#allocation2 + $0x1a6] sm:$0x3] %vm190_vm1, %v15795_v2  ;;  %v229_v9 = vld [vmem:[%s15899_s22 + $0x30] sm:$0xff]  ;;  %v230_v10 = vld [vmem:[%s15899_s22 + $0x38] sm:$0xff] }
  0x14   : > { %203 = vst.msk [vmem:[#allocation2 + $0x1c6] sm:$0x3] %vm190_vm1, %v15795_v2  ;;  %204 = vst.msk [vmem:[#allocation2 + $0x1e6] sm:$0x3] %vm190_vm1, %v15795_v2  ;;  %v231_v11 = vld [vmem:[%s15899_s22 + $0x40] sm:$0xff]  ;;  %v232_v12 = vld [vmem:[%s15899_s22 + $0x48] sm:$0xff] }
  0x15   : > { %205 = vst.msk [vmem:[#allocation2 + $0x206] sm:$0x3] %vm190_vm1, %v15795_v2  ;;  %206 = vst.msk [vmem:[#allocation2 + $0x226] sm:$0x3] %vm190_vm1, %v15795_v2  ;;  %v233_v13 = vld [vmem:[%s15899_s22 + $0x50] sm:$0xff]  ;;  %v234_v14 = vld [vmem:[%s15899_s22 + $0x58] sm:$0xff] }
  0x16   : > { %207 = vst.msk [vmem:[#allocation2 + $0x58] sm:$0x3] %vm190_vm1, %v15795_v2  ;;  %208 = vst.msk [vmem:[#allocation2 + $0x78] sm:$0x3] %vm190_vm1, %v15795_v2  ;;  %v235_v15 = vld [vmem:[%s15899_s22 + $0x60] sm:$0xff]  ;;  %v236_v16 = vld [vmem:[%s15899_s22 + $0x68] sm:$0xff] }
  0x17   : > { %209 = vst.msk [vmem:[#allocation2 + $0x98] sm:$0x3] %vm190_vm1, %v15795_v2  ;;  %210 = vst.msk [vmem:[#allocation2 + $0xb8] sm:$0x3] %vm190_vm1, %v15795_v2  ;;  %v237_v17 = vld [vmem:[%s15899_s22 + $0x70] sm:$0xff]  ;;  %v238_v18 = vld [vmem:[%s15899_s22 + $0x78] sm:$0xff] }
  0x18   : > { %211 = vst.msk [vmem:[#allocation2 + $0xd8] sm:$0x3] %vm190_vm1, %v15795_v2  ;;  %212 = vst.msk [vmem:[#allocation2 + $0xf8] sm:$0x3] %vm190_vm1, %v15795_v2  ;;  %v239_v19 = vld [vmem:[%s15899_s22 + $0x80] sm:$0xff]  ;;  %v240_v20 = vld [vmem:[%s15899_s22 + $0x88] sm:$0xff] }
  0x19   : > { %213 = vst.msk [vmem:[#allocation2 + $0x118] sm:$0x3] %vm190_vm1, %v15795_v2  ;;  %214 = vst.msk [vmem:[#allocation2 + $0x138] sm:$0x3] %vm190_vm1, %v15795_v2  ;;  %v241_v21 = vld [vmem:[%s15899_s22 + $0x90] sm:$0xff]  ;;  %v242_v22 = vld [vmem:[%s15899_s22 + $0x98] sm:$0xff] }
  0x1a   : > { %215 = vst.msk [vmem:[#allocation2 + $0x158] sm:$0x3] %vm190_vm1, %v15795_v2  ;;  %216 = vst.msk [vmem:[#allocation2 + $0x178] sm:$0x3] %vm190_vm1, %v15795_v2  ;;  %v243_v23 = vld [vmem:[%s15899_s22 + $0xa0] sm:$0xff]  ;;  %v244_v24 = vld [vmem:[%s15899_s22 + $0xa8] sm:$0xff] }
  0x1b   : > { %217 = vst.msk [vmem:[#allocation2 + $0x198] sm:$0x3] %vm190_vm1, %v15795_v2  ;;  %218 = vst.msk [vmem:[#allocation2 + $0x1b8] sm:$0x3] %vm190_vm1, %v15795_v2  ;;  %v245_v25 = vld [vmem:[%s15899_s22 + $0xb0] sm:$0xff]  ;;  %v246_v26 = vld [vmem:[%s15899_s22 + $0xb8] sm:$0xff] }
  0x1c   : > { %219 = vst.msk [vmem:[#allocation2 + $0x1d8] sm:$0x3] %vm190_vm1, %v15795_v2  ;;  %220 = vst.msk [vmem:[#allocation2 + $0x1f8] sm:$0x3] %vm190_vm1, %v15795_v2  ;;  %v247_v35 = vld [vmem:[%s15899_s22 + $0xc0] sm:$0xff]  ;;  %v248_v36 = vld [vmem:[%s15899_s22 + $0xc8] sm:$0xff] }
  0x1d   : > { %221 = vst.msk [vmem:[#allocation2 + $0x218] sm:$0x3] %vm190_vm1, %v15795_v2  ;;  %222 = vst.msk [vmem:[#allocation2 + $0x238] sm:$0x3] %vm190_vm1, %v15795_v2  ;;  %v249_v37 = vld [vmem:[%s15899_s22 + $0xd0] sm:$0xff]  ;;  %v250_v38 = vld [vmem:[%s15899_s22 + $0xd8] sm:$0xff] }
  0x1e   : > { %255 = vst.msk [vmem:[#allocation2 + $0x48] sm:$0xff] %vm171_vm0, %v223_v3  ;;  %256 = vst.msk [vmem:[#allocation2 + $0x50] sm:$0xff] %vm171_vm0, %v224_v4  ;;  %v251_v39 = vld [vmem:[%s15899_s22 + $0xe0] sm:$0xff]  ;;  %v252_v40 = vld [vmem:[%s15899_s22 + $0xe8] sm:$0xff] }
  0x1f   : > { %257 = vst.msk [vmem:[#allocation2 + $0x68] sm:$0xff] %vm171_vm0, %v225_v5  ;;  %258 = vst.msk [vmem:[#allocation2 + $0x70] sm:$0xff] %vm171_vm0, %v226_v6  ;;  %v253_v41 = vld [vmem:[%s15899_s22 + $0xf0] sm:$0xff]  ;;  %v254_v42 = vld [vmem:[%s15899_s22 + $0xf8] sm:$0xff] }
  0x20   : > { %259 = vst.msk [vmem:[#allocation2 + $0x88] sm:$0xff] %vm171_vm0, %v227_v7  ;;  %260 = vst.msk [vmem:[#allocation2 + $0x90] sm:$0xff] %vm171_vm0, %v228_v8  ;;  %v321_v4 = vld [vmem:[#allocation2 + $0x6] sm:$0xff]  ;;  %v322_v5 = vld [vmem:[#allocation2 + $0xe] sm:$0xff] }
  0x21   : > { %261 = vst.msk [vmem:[#allocation2 + $0xa8] sm:$0xff] %vm171_vm0, %v229_v9  ;;  %262 = vst.msk [vmem:[#allocation2 + $0xb0] sm:$0xff] %vm171_vm0, %v230_v10  ;;  %v323_v6 = vld [vmem:[#allocation2 + $0x26] sm:$0xff]  ;;  %v10806_v7 = vld [vmem:[%s18937_s1 + $0x18] sm:$0xff] }
  0x22   : > { %263 = vst.msk [vmem:[#allocation2 + $0xc8] sm:$0xff] %vm171_vm0, %v231_v11  ;;  %264 = vst.msk [vmem:[#allocation2 + $0xd0] sm:$0xff] %vm171_vm0, %v232_v12  ;;  %v324_v8 = vld [vmem:[#allocation2 + $0x2e] sm:$0xff]  ;;  %v10807_v9 = vld [vmem:[%s18937_s1 + $0x20] sm:$0xff] }
  0x23   : > { %265 = vst.msk [vmem:[#allocation2 + $0xe8] sm:$0xff] %vm171_vm0, %v233_v13  ;;  %266 = vst.msk [vmem:[#allocation2 + $0xf0] sm:$0xff] %vm171_vm0, %v234_v14  ;;  %v357_v10 = vld [vmem:[#allocation2 + $0x246] sm:$0xff]  ;;  %v358_v11 = vld [vmem:[#allocation2 + $0x24e] sm:$0xff] }
  0x24   : > { %267 = vst.msk [vmem:[#allocation2 + $0x108] sm:$0xff] %vm171_vm0, %v235_v15  ;;  %268 = vst.msk [vmem:[#allocation2 + $0x110] sm:$0xff] %vm171_vm0, %v236_v16  ;;  %v359_v12 = vld [vmem:[#allocation2 + $0x266] sm:$0xff]  ;;  %v360_v13 = vld [vmem:[#allocation2 + $0x26e] sm:$0xff] }
  0x25   : > { %269 = vst.msk [vmem:[#allocation2 + $0x128] sm:$0xff] %vm171_vm0, %v237_v17  ;;  %270 = vst.msk [vmem:[#allocation2 + $0x130] sm:$0xff] %vm171_vm0, %v238_v18  ;;  %v15946_v27 = vld [vmem:[#allocation2 + $0x46] sm:$0xff]  ;;  %v15948_v28 = vld [vmem:[#allocation2 + $0x4e] sm:$0xff] }
  0x26   : > { %271 = vst.msk [vmem:[#allocation2 + $0x148] sm:$0xff] %vm171_vm0, %v239_v19  ;;  %272 = vst.msk [vmem:[#allocation2 + $0x150] sm:$0xff] %vm171_vm0, %v240_v20  ;;  %v15950_v29 = vld [vmem:[#allocation2 + $0x66] sm:$0xff]  ;;  %13056 = vmatprep.mubr.msk.f32.mxu0 %vm171_vm0, %v15946_v27  ;;  %v15967_v31 = vld [vmem:[#allocation2 + $0x6e] sm:$0xff] }
  0x27   : > { %273 = vst.msk [vmem:[#allocation2 + $0x168] sm:$0xff] %vm171_vm0, %v241_v21  ;;  %274 = vst.msk [vmem:[#allocation2 + $0x170] sm:$0xff] %vm171_vm0, %v242_v22  ;;  %13057 = vmatmul.mubr.msk.f32.vlgmr.msra.gmra.mrb[0].mxu0 %vm171_vm0, %v15948_v28  ;;  %v15969_v32 = vld [vmem:[#allocation2 + $0x86] sm:$0xff]  ;;  %v15976_v33 = vld [vmem:[#allocation2 + $0x8e] sm:$0xff] }
  0x28   : > { %275 = vst.msk [vmem:[#allocation2 + $0x188] sm:$0xff] %vm171_vm0, %v243_v23  ;;  %276 = vst.msk [vmem:[#allocation2 + $0x190] sm:$0xff] %vm171_vm0, %v244_v24  ;;  %13105 = vmatpush3.msra.mxu0 %v15836_v1  ;;  %13059 = vmatprep.mubr.msk.f32.mxu0 %vm171_vm0, %v15950_v29  ;;  %v15978_v34 = vld [vmem:[#allocation2 + $0xa6] sm:$0xff]  ;;  %v15998_v43 = vld [vmem:[#allocation2 + $0xae] sm:$0xff] }
  0x29   : > { %277 = vst.msk [vmem:[#allocation2 + $0x1a8] sm:$0xff] %vm171_vm0, %v245_v25  ;;  %278 = vst.msk [vmem:[#allocation2 + $0x1b0] sm:$0xff] %vm171_vm0, %v246_v26  ;;  %13154 = vmatprep.subr.mxu0 %v15960_v30  ;;  %v16002_v44 = vld [vmem:[#allocation2 + $0xc6] sm:$0xff]  ;;  %v16008_v45 = vld [vmem:[#allocation2 + $0xce] sm:$0xff] }
  0x2a   : > { %279 = vst.msk [vmem:[#allocation2 + $0x1c8] sm:$0xff] %vm171_vm0, %v247_v35  ;;  %280 = vst.msk [vmem:[#allocation2 + $0x1d0] sm:$0xff] %vm171_vm0, %v248_v36  ;;  %v16010_v46 = vld [vmem:[#allocation2 + $0xe6] sm:$0xff]  ;;  %v16016_v47 = vld [vmem:[#allocation2 + $0xee] sm:$0xff] }
  0x2b   : > { %13060 = vmatmul.mubr.msk.f32.gmra.mrb[2].mxu0 %vm171_vm0, %v15967_v31  ;;  %281 = vst.msk [vmem:[#allocation2 + $0x1e8] sm:$0xff] %vm171_vm0, %v249_v37  ;;  %282 = vst.msk [vmem:[#allocation2 + $0x1f0] sm:$0xff] %vm171_vm0, %v250_v38  ;;  %v16018_v48 = vld [vmem:[#allocation2 + $0x106] sm:$0xff]  ;;  %v16024_v49 = vld [vmem:[#allocation2 + $0x10e] sm:$0xff] }
  0x2c   : > { %13062 = vmatprep.mubr.msk.f32.mxu0 %vm171_vm0, %v15969_v32  ;;  %283 = vst.msk [vmem:[#allocation2 + $0x208] sm:$0xff] %vm171_vm0, %v251_v39  ;;  %284 = vst.msk [vmem:[#allocation2 + $0x210] sm:$0xff] %vm171_vm0, %v252_v40  ;;  %v16026_v50 = vld [vmem:[#allocation2 + $0x126] sm:$0xff]  ;;  %v16032_v51 = vld [vmem:[#allocation2 + $0x12e] sm:$0xff] }
  0x2d   : > { %285 = vst.msk [vmem:[#allocation2 + $0x228] sm:$0xff] %vm171_vm0, %v253_v41  ;;  %286 = vst.msk [vmem:[#allocation2 + $0x230] sm:$0xff] %vm171_vm0, %v254_v42  ;;  %v16034_v52 = vld [vmem:[#allocation2 + $0x146] sm:$0xff]  ;;  %v16040_v53 = vld [vmem:[#allocation2 + $0x14e] sm:$0xff] }
  0x2e   : > { %v16042_v54 = vld [vmem:[#allocation2 + $0x166] sm:$0xff]  ;;  %v16048_v55 = vld [vmem:[#allocation2 + $0x16e] sm:$0xff] }
  0x2f   : > { %13063 = vmatmul.mubr.msk.f32.gmra.mrb[4].mxu0 %vm171_vm0, %v15976_v33  ;;  %v16050_v56 = vld [vmem:[#allocation2 + $0x186] sm:$0xff]  ;;  %v16056_v57 = vld [vmem:[#allocation2 + $0x18e] sm:$0xff] }
  0x30   : > { %13065 = vmatprep.mubr.msk.f32.mxu0 %vm171_vm0, %v15978_v34  ;;  %v16058_v58 = vld [vmem:[#allocation2 + $0x1a6] sm:$0xff]  ;;  %v16064_v59 = vld [vmem:[#allocation2 + $0x1ae] sm:$0xff] }
  0x31   : > { %v16066_v60 = vld [vmem:[#allocation2 + $0x1c6] sm:$0xff]  ;;  %v16072_v61 = vld [vmem:[#allocation2 + $0x1ce] sm:$0xff] }
  0x32   : > { %v16074_v62 = vld [vmem:[#allocation2 + $0x1e6] sm:$0xff]  ;;  %v16080_v63 = vld [vmem:[#allocation2 + $0x1ee] sm:$0xff] }
  0x33   : > { %13066 = vmatmul.mubr.msk.f32.gmra.mrb[6].mxu0 %vm171_vm0, %v15998_v43  ;;  %v16082_v0 = vld [vmem:[#allocation2 + $0x206] sm:$0xff]  ;;  %v16088_v1 = vld [vmem:[#allocation2 + $0x20e] sm:$0xff] }
  0x34   : > { %13068 = vmatprep.mubr.msk.f32.mxu0 %vm171_vm0, %v16002_v44  ;;  %v16090_v2 = vld [vmem:[#allocation2 + $0x226] sm:$0xff]  ;;  %v16096_v3 = vld [vmem:[#allocation2 + $0x22e] sm:$0xff] }
  0x35   : > { %v1189_v14 = vld [vmem:[#allocation2 + $0x27] sm:$0xff]  ;;  %v1190_v15 = vld [vmem:[#allocation2 + $0x2f] sm:$0xff] }
  0x36   : > { %v16228_v16 = vld [vmem:[#allocation2 + $0x47] sm:$0xff]  ;;  %v1192_v18 = vld [vmem:[#allocation2 + $0x4f] sm:$0xff] }
  0x37   : > { %13069 = vmatmul.mubr.msk.f32.gmra.mrb[8].mxu0 %vm171_vm0, %v16008_v45  ;;  %v16233_v17 = vld [vmem:[%s18937_s1 + $0x28] sm:$0xff] }
  0x38   : > { %13071 = vmatprep.mubr.msk.f32.mxu0 %vm171_vm0, %v16010_v46  ;;  %v16238_v19 = vld [vmem:[#allocation2 + $0x67] sm:$0xff]  ;;  %v16244_v20 = vld [vmem:[#allocation2 + $0x6f] sm:$0xff] }
  0x39   : > { %v16246_v21 = vld [vmem:[#allocation2 + $0x87] sm:$0xff]  ;;  %v16252_v22 = vld [vmem:[#allocation2 + $0x8f] sm:$0xff] }
  0x3a   : > { %v16254_v23 = vld [vmem:[#allocation2 + $0xa7] sm:$0xff]  ;;  %v16260_v24 = vld [vmem:[#allocation2 + $0xaf] sm:$0xff] }
  0x3b   : > { %13072 = vmatmul.mubr.msk.f32.gmra.mrb[10].mxu0 %vm171_vm0, %v16016_v47  ;;  %v16262_v25 = vld [vmem:[#allocation2 + $0xc7] sm:$0xff]  ;;  %v16268_v26 = vld [vmem:[#allocation2 + $0xcf] sm:$0xff] }
  0x3c   : > { %13074 = vmatprep.mubr.msk.f32.mxu0 %vm171_vm0, %v16018_v48  ;;  %v16302_v35 = vld [vmem:[#allocation2 + $0x167] sm:$0xff]  ;;  %v16308_v36 = vld [vmem:[#allocation2 + $0x16f] sm:$0xff] }
  0x3d   : > { %v16310_v37 = vld [vmem:[#allocation2 + $0x187] sm:$0xff]  ;;  %v16316_v38 = vld [vmem:[#allocation2 + $0x18f] sm:$0xff] }
  0x3e   : > { %v16318_v39 = vld [vmem:[#allocation2 + $0x1a7] sm:$0xff]  ;;  %v16324_v40 = vld [vmem:[#allocation2 + $0x1af] sm:$0xff] }
  0x3f   : > { %13075 = vmatmul.mubr.msk.f32.gmra.mrb[12].mxu0 %vm171_vm0, %v16024_v49  ;;  %v16326_v41 = vld [vmem:[#allocation2 + $0x1c7] sm:$0xff]  ;;  %v16332_v42 = vld [vmem:[#allocation2 + $0x1cf] sm:$0xff] }
  0x40   : > { %13077 = vmatprep.mubr.msk.f32.mxu0 %vm171_vm0, %v16026_v50 }
  0x43   : > { %13078 = vmatmul.mubr.msk.f32.gmra.mrb[14].mxu0 %vm171_vm0, %v16032_v51 }
  0x44   : > { %13080 = vmatprep.mubr.msk.f32.mxu0 %vm171_vm0, %v16034_v52 }
  0x47   : > { %13081 = vmatmul.mubr.msk.f32.gmra.mrb[16].mxu0 %vm171_vm0, %v16040_v53 }
  0x48   : > { %13083 = vmatprep.mubr.msk.f32.mxu0 %vm171_vm0, %v16042_v54 }
  0x4b   : > { %13084 = vmatmul.mubr.msk.f32.gmra.mrb[18].mxu0 %vm171_vm0, %v16048_v55 }
  0x4c   : > { %13086 = vmatprep.mubr.msk.f32.mxu0 %vm171_vm0, %v16050_v56 }
  0x4f   : > { %13087 = vmatmul.mubr.msk.f32.gmra.mrb[20].mxu0 %vm171_vm0, %v16056_v57 }
  0x50   : > { %13089 = vmatprep.mubr.msk.f32.mxu0 %vm171_vm0, %v16058_v58 }
  0x53   : > { %13090 = vmatmul.mubr.msk.f32.gmra.mrb[22].mxu0 %vm171_vm0, %v16064_v59 }
  0x54   : > { %13092 = vmatprep.mubr.msk.f32.mxu0 %vm171_vm0, %v16066_v60 }
  0x57   : > { %13093 = vmatmul.mubr.msk.f32.gmra.mrb[24].mxu0 %vm171_vm0, %v16072_v61 }
  0x58   : > { %13095 = vmatprep.mubr.msk.f32.mxu0 %vm171_vm0, %v16074_v62 }
  0x5b   : > { %13096 = vmatmul.mubr.msk.f32.gmra.mrb[26].mxu0 %vm171_vm0, %v16080_v63 }
  0x5c   : > { %13098 = vmatprep.mubr.msk.f32.mxu0 %vm171_vm0, %v16082_v0 }
  0x5f   : > { %13099 = vmatmul.mubr.msk.f32.gmra.mrb[28].mxu0 %vm171_vm0, %v16088_v1 }
  0x60   : > { %13101 = vmatprep.mubr.msk.f32.mxu0 %vm171_vm0, %v16090_v2 }
  0x63   : > { %13102 = vmatmul.mubr.msk.f32.gmra.mrb[30].mxu0 %vm171_vm0, %v16096_v3 }
  0x64   : > { %13106 = vmatprep.mubr.msk.f32.mxu0 %vm171_vm0, %v321_v4  ;;  %v16531_v4 = vld [vmem:[#allocation2 + $0xe8] sm:$0xff] }
  0x67   : > { %13107 = vmatmul.mubr.msk.f32.vlgmr.msra.gmra.mrb[0].mxu0 %vm171_vm0, %v322_v5  ;;  %v16537_v5 = vld [vmem:[#allocation2 + $0xf0] sm:$0xff] }
  0x68   : > { %13155 = vmatpush3.msra.mxu0 %v15960_v30  ;;  %13109 = vmatprep.mubr.msk.f32.mxu0 %vm171_vm0, %v323_v6  ;;  %v16284_v30 = vld [vmem:[#allocation2 + $0x10f] sm:$0xff] }
  0x69   : > { %13204 = vmatprep.subr.mxu0 %v10806_v7  ;;  %v16539_v6 = vld [vmem:[#allocation2 + $0x108] sm:$0xff] }
  0x6b   : > { %13110 = vmatmul.mubr.msk.f32.gmra.mrb[2].mxu0 %vm171_vm0, %v324_v8  ;;  %v16547_v8 = vld [vmem:[#allocation2 + $0x128] sm:$0xff] }
  0x6c   : > { %13112 = vmatprep.mubr.msk.f32.mxu0 %vm171_vm0, %v15946_v27  ;;  %v16270_v27 = vld [vmem:[#allocation2 + $0xe7] sm:$0xff] }
  0x6f   : > { %13113 = vmatmul.mubr.msk.f32.gmra.mrb[4].mxu0 %vm171_vm0, %v15948_v28  ;;  %v16276_v28 = vld [vmem:[#allocation2 + $0xef] sm:$0xff] }
  0x70   : > { %13115 = vmatprep.mubr.msk.f32.mxu0 %vm171_vm0, %v15950_v29  ;;  %v16278_v29 = vld [vmem:[#allocation2 + $0x107] sm:$0xff] }
  0x73   : > { %13116 = vmatmul.mubr.msk.f32.gmra.mrb[6].mxu0 %vm171_vm0, %v15967_v31  ;;  %v16286_v31 = vld [vmem:[#allocation2 + $0x127] sm:$0xff] }
  0x74   : > { %13118 = vmatprep.mubr.msk.f32.mxu0 %vm171_vm0, %v15969_v32 }
  0x77   : > { %13119 = vmatmul.mubr.msk.f32.gmra.mrb[8].mxu0 %vm171_vm0, %v15976_v33 }
  0x78   : > { %13121 = vmatprep.mubr.msk.f32.mxu0 %vm171_vm0, %v15978_v34 }
  0x7b   : > { %13122 = vmatmul.mubr.msk.f32.gmra.mrb[10].mxu0 %vm171_vm0, %v15998_v43 }
  0x7c   : > { %13124 = vmatprep.mubr.msk.f32.mxu0 %vm171_vm0, %v16002_v44 }
  0x7f   : > { %13125 = vmatmul.mubr.msk.f32.gmra.mrb[12].mxu0 %vm171_vm0, %v16008_v45 }
  0x80   : > { %13127 = vmatprep.mubr.msk.f32.mxu0 %vm171_vm0, %v16010_v46 }
  0x83   : > { %13128 = vmatmul.mubr.msk.f32.gmra.mrb[14].mxu0 %vm171_vm0, %v16016_v47 }
  0x84   : > { %13130 = vmatprep.mubr.msk.f32.mxu0 %vm171_vm0, %v16018_v48 }
  0x87   : > { %13131 = vmatmul.mubr.msk.f32.gmra.mrb[16].mxu0 %vm171_vm0, %v16024_v49 }
  0x88   : > { %13133 = vmatprep.mubr.msk.f32.mxu0 %vm171_vm0, %v16026_v50 }
  0x8b   : > { %13134 = vmatmul.mubr.msk.f32.gmra.mrb[18].mxu0 %vm171_vm0, %v16032_v51 }
  0x8c   : > { %13136 = vmatprep.mubr.msk.f32.mxu0 %vm171_vm0, %v16034_v52 }
  0x8f   : > { %13137 = vmatmul.mubr.msk.f32.gmra.mrb[20].mxu0 %vm171_vm0, %v16040_v53 }
  0x90   : > { %13139 = vmatprep.mubr.msk.f32.mxu0 %vm171_vm0, %v16042_v54 }
  0x93   : > { %13140 = vmatmul.mubr.msk.f32.gmra.mrb[22].mxu0 %vm171_vm0, %v16048_v55 }
  0x94   : > { %13142 = vmatprep.mubr.msk.f32.mxu0 %vm171_vm0, %v16050_v56 }
  0x97   : > { %13143 = vmatmul.mubr.msk.f32.gmra.mrb[24].mxu0 %vm171_vm0, %v16056_v57 }
  0x98   : > { %13145 = vmatprep.mubr.msk.f32.mxu0 %vm171_vm0, %v16058_v58 }
  0x9b   : > { %13146 = vmatmul.mubr.msk.f32.gmra.mrb[26].mxu0 %vm171_vm0, %v16064_v59 }
  0x9c   : > { %13148 = vmatprep.mubr.msk.f32.mxu0 %vm171_vm0, %v16066_v60 }
  0x9f   : > { %13149 = vmatmul.mubr.msk.f32.gmra.mrb[28].mxu0 %vm171_vm0, %v16072_v61 }
  0xa0   : > { %13151 = vmatprep.mubr.msk.f32.mxu0 %vm171_vm0, %v16074_v62 }
  0xa3   : > { %13152 = vmatmul.mubr.msk.f32.gmra.mrb[30].mxu0 %vm171_vm0, %v16080_v63 }
  0xa4   : > { %13156 = vmatprep.mubr.msk.f32.mxu0 %vm171_vm0, %v15969_v32  ;;  %v16292_v32 = vld [vmem:[#allocation2 + $0x12f] sm:$0xff] }
  0xa7   : > { %13157 = vmatmul.mubr.msk.f32.vlgmr.msra.gmra.mrb[0].mxu0 %vm171_vm0, %v15976_v33  ;;  %v16294_v33 = vld [vmem:[#allocation2 + $0x147] sm:$0xff] }
  0xa8   : > { %13205 = vmatpush3.msra.mxu0 %v10806_v7  ;;  %13159 = vmatprep.mubr.msk.f32.mxu0 %vm171_vm0, %v15978_v34  ;;  %v16300_v34 = vld [vmem:[#allocation2 + $0x14f] sm:$0xff] }
  0xa9   : > { %13254 = vmatprep.subr.mxu0 %v10807_v9  ;;  %v16545_v7 = vld [vmem:[#allocation2 + $0x110] sm:$0xff] }
  0xab   : > { %13160 = vmatmul.mubr.msk.f32.gmra.mrb[2].mxu0 %vm171_vm0, %v15998_v43  ;;  %v16334_v43 = vld [vmem:[#allocation2 + $0x1e7] sm:$0xff] }
  0xac   : > { %13162 = vmatprep.mubr.msk.f32.mxu0 %vm171_vm0, %v16002_v44  ;;  %v16340_v44 = vld [vmem:[#allocation2 + $0x1ef] sm:$0xff] }
  0xaf   : > { %13163 = vmatmul.mubr.msk.f32.gmra.mrb[4].mxu0 %vm171_vm0, %v16008_v45  ;;  %v16342_v45 = vld [vmem:[#allocation2 + $0x207] sm:$0xff] }
  0xb0   : > { %13165 = vmatprep.mubr.msk.f32.mxu0 %vm171_vm0, %v16010_v46  ;;  %v16348_v46 = vld [vmem:[#allocation2 + $0x20f] sm:$0xff] }
  0xb3   : > { %13166 = vmatmul.mubr.msk.f32.gmra.mrb[6].mxu0 %vm171_vm0, %v16016_v47  ;;  %v10809_v47 = vld [vmem:[%s18937_s1 + $0x30] sm:$0xff] }
  0xb4   : > { %13168 = vmatprep.mubr.msk.f32.mxu0 %vm171_vm0, %v16018_v48  ;;  %v1221_v48 = vld [vmem:[#allocation2 + $0x227] sm:$0xff] }
  0xb7   : > { %13169 = vmatmul.mubr.msk.f32.gmra.mrb[8].mxu0 %vm171_vm0, %v16024_v49  ;;  %v1222_v49 = vld [vmem:[#allocation2 + $0x22f] sm:$0xff] }
  0xb8   : > { %13171 = vmatprep.mubr.msk.f32.mxu0 %vm171_vm0, %v16026_v50  ;;  %v10810_v50 = vld [vmem:[%s18937_s1 + $0x38] sm:$0xff] }
  0xbb   : > { %13172 = vmatmul.mubr.msk.f32.gmra.mrb[10].mxu0 %vm171_vm0, %v16032_v51  ;;  %v1223_v51 = vld [vmem:[#allocation2 + $0x247] sm:$0xff] }
  0xbc   : > { %13174 = vmatprep.mubr.msk.f32.mxu0 %vm171_vm0, %v16034_v52  ;;  %v1224_v52 = vld [vmem:[#allocation2 + $0x24f] sm:$0xff] }
  0xbf   : > { %13175 = vmatmul.mubr.msk.f32.gmra.mrb[12].mxu0 %vm171_vm0, %v16040_v53  ;;  %v2104_v53 = vld [vmem:[#allocation2 + $0x8] sm:$0xff] }
  0xc0   : > { %13177 = vmatprep.mubr.msk.f32.mxu0 %vm171_vm0, %v16042_v54  ;;  %v2105_v54 = vld [vmem:[#allocation2 + $0x10] sm:$0xff] }
  0xc3   : > { %13178 = vmatmul.mubr.msk.f32.gmra.mrb[14].mxu0 %vm171_vm0, %v16048_v55  ;;  %v16481_v55 = vld [vmem:[#allocation2 + $0x28] sm:$0xff] }
  0xc4   : > { %13180 = vmatprep.mubr.msk.f32.mxu0 %vm171_vm0, %v16050_v56  ;;  %v16486_v56 = vld [vmem:[%s18937_s1 + $0x40] sm:$0xff] }
  0xc7   : > { %13181 = vmatmul.mubr.msk.f32.gmra.mrb[16].mxu0 %vm171_vm0, %v16056_v57  ;;  %v2107_v57 = vld [vmem:[#allocation2 + $0x30] sm:$0xff] }
  0xc8   : > { %13183 = vmatprep.mubr.msk.f32.mxu0 %vm171_vm0, %v16058_v58  ;;  %v16491_v58 = vld [vmem:[#allocation2 + $0x48] sm:$0xff] }
  0xcb   : > { %13184 = vmatmul.mubr.msk.f32.gmra.mrb[18].mxu0 %vm171_vm0, %v16064_v59  ;;  %v16497_v59 = vld [vmem:[#allocation2 + $0x50] sm:$0xff] }
  0xcc   : > { %13186 = vmatprep.mubr.msk.f32.mxu0 %vm171_vm0, %v16066_v60  ;;  %v16499_v60 = vld [vmem:[#allocation2 + $0x68] sm:$0xff] }
  0xcf   : > { %13187 = vmatmul.mubr.msk.f32.gmra.mrb[20].mxu0 %vm171_vm0, %v16072_v61  ;;  %v16505_v61 = vld [vmem:[#allocation2 + $0x70] sm:$0xff] }
  0xd0   : > { %13189 = vmatprep.mubr.msk.f32.mxu0 %vm171_vm0, %v16074_v62  ;;  %v16507_v62 = vld [vmem:[#allocation2 + $0x88] sm:$0xff] }
  0xd3   : > { %13190 = vmatmul.mubr.msk.f32.gmra.mrb[22].mxu0 %vm171_vm0, %v16080_v63  ;;  %v16513_v63 = vld [vmem:[#allocation2 + $0x90] sm:$0xff] }
  0xd4   : > { %13192 = vmatprep.mubr.msk.f32.mxu0 %vm171_vm0, %v16082_v0  ;;  %v16515_v0 = vld [vmem:[#allocation2 + $0xa8] sm:$0xff] }
  0xd7   : > { %13193 = vmatmul.mubr.msk.f32.gmra.mrb[24].mxu0 %vm171_vm0, %v16088_v1  ;;  %v16521_v1 = vld [vmem:[#allocation2 + $0xb0] sm:$0xff] }
  0xd8   : > { %13195 = vmatprep.mubr.msk.f32.mxu0 %vm171_vm0, %v16090_v2  ;;  %v16523_v2 = vld [vmem:[#allocation2 + $0xc8] sm:$0xff] }
  0xdb   : > { %13196 = vmatmul.mubr.msk.f32.gmra.mrb[26].mxu0 %vm171_vm0, %v16096_v3  ;;  %v16529_v3 = vld [vmem:[#allocation2 + $0xd0] sm:$0xff] }
  0xdc   : > { %13198 = vmatprep.mubr.msk.f32.mxu0 %vm171_vm0, %v357_v10  ;;  %v16555_v10 = vld [vmem:[#allocation2 + $0x148] sm:$0xff] }
  0xdf   : > { %13199 = vmatmul.mubr.msk.f32.gmra.mrb[28].mxu0 %vm171_vm0, %v358_v11  ;;  %v16561_v11 = vld [vmem:[#allocation2 + $0x150] sm:$0xff] }
  0xe0   : > { %13201 = vmatprep.mubr.msk.f32.mxu0 %vm171_vm0, %v359_v12  ;;  %v16563_v12 = vld [vmem:[#allocation2 + $0x168] sm:$0xff] }
  0xe3   : > { %13202 = vmatmul.mubr.msk.f32.gmra.mrb[30].mxu0 %vm171_vm0, %v360_v13  ;;  %v16569_v13 = vld [vmem:[#allocation2 + $0x170] sm:$0xff] }
  0xe4   : > { %13206 = vmatprep.mubr.msk.f32.mxu0 %vm171_vm0, %v1189_v14  ;;  %v16571_v14 = vld [vmem:[#allocation2 + $0x188] sm:$0xff] }
  0xe7   : > { %13207 = vmatmul.mubr.msk.f32.vlgmr.msra.gmra.mrb[0].mxu0 %vm171_vm0, %v1190_v15  ;;  %v16577_v15 = vld [vmem:[#allocation2 + $0x190] sm:$0xff] }
  0xe8   : > { %13255 = vmatpush3.msra.mxu0 %v10807_v9  ;;  %13209 = vmatprep.mubr.msk.f32.mxu0 %vm171_vm0, %v16228_v16  ;;  %v16553_v9 = vld [vmem:[#allocation2 + $0x130] sm:$0xff] }
  0xe9   : > { %13304 = vmatprep.subr.mxu0 %v16233_v17 }
  0xeb   : > { %13210 = vmatmul.mubr.msk.f32.gmra.mrb[2].mxu0 %vm171_vm0, %v1192_v18 }
  0xec   : > { %13212 = vmatprep.mubr.msk.f32.mxu0 %vm171_vm0, %v16238_v19 }
  0xef   : > { %13213 = vmatmul.mubr.msk.f32.gmra.mrb[4].mxu0 %vm171_vm0, %v16244_v20 }
  0xf0   : > { %13215 = vmatprep.mubr.msk.f32.mxu0 %vm171_vm0, %v16246_v21 }
  0xf3   : > { %13216 = vmatmul.mubr.msk.f32.gmra.mrb[6].mxu0 %vm171_vm0, %v16252_v22 }
  0xf4   : > { %13218 = vmatprep.mubr.msk.f32.mxu0 %vm171_vm0, %v16254_v23 }
  0xf7   : > { %13219 = vmatmul.mubr.msk.f32.gmra.mrb[8].mxu0 %vm171_vm0, %v16260_v24 }
  0xf8   : > { %13221 = vmatprep.mubr.msk.f32.mxu0 %vm171_vm0, %v16262_v25 }
  0xfb   : > { %13222 = vmatmul.mubr.msk.f32.gmra.mrb[10].mxu0 %vm171_vm0, %v16268_v26 }
  0xfc   : > { %13224 = vmatprep.mubr.msk.f32.mxu0 %vm171_vm0, %v16270_v27 }
  0xff   : > { %13225 = vmatmul.mubr.msk.f32.gmra.mrb[12].mxu0 %vm171_vm0, %v16276_v28 }
 0x100   : > { %13227 = vmatprep.mubr.msk.f32.mxu0 %vm171_vm0, %v16278_v29 }
 0x103   : > { %13228 = vmatmul.mubr.msk.f32.gmra.mrb[14].mxu0 %vm171_vm0, %v16284_v30 }
 0x104   : > { %13230 = vmatprep.mubr.msk.f32.mxu0 %vm171_vm0, %v16286_v31 }
 0x107   : > { %13231 = vmatmul.mubr.msk.f32.gmra.mrb[16].mxu0 %vm171_vm0, %v16292_v32 }
 0x108   : > { %13233 = vmatprep.mubr.msk.f32.mxu0 %vm171_vm0, %v16294_v33 }
 0x10b   : > { %13234 = vmatmul.mubr.msk.f32.gmra.mrb[18].mxu0 %vm171_vm0, %v16300_v34 }
 0x10c   : > { %13236 = vmatprep.mubr.msk.f32.mxu0 %vm171_vm0, %v16302_v35 }
 0x10f   : > { %13237 = vmatmul.mubr.msk.f32.gmra.mrb[20].mxu0 %vm171_vm0, %v16308_v36 }
 0x110   : > { %13239 = vmatprep.mubr.msk.f32.mxu0 %vm171_vm0, %v16310_v37 }
 0x113   : > { %13240 = vmatmul.mubr.msk.f32.gmra.mrb[22].mxu0 %vm171_vm0, %v16316_v38 }
 0x114   : > { %13242 = vmatprep.mubr.msk.f32.mxu0 %vm171_vm0, %v16318_v39 }
 0x117   : > { %13243 = vmatmul.mubr.msk.f32.gmra.mrb[24].mxu0 %vm171_vm0, %v16324_v40 }
 0x118   : > { %13245 = vmatprep.mubr.msk.f32.mxu0 %vm171_vm0, %v16326_v41 }
 0x11b   : > { %13246 = vmatmul.mubr.msk.f32.gmra.mrb[26].mxu0 %vm171_vm0, %v16332_v42 }
 0x11c   : > { %13248 = vmatprep.mubr.msk.f32.mxu0 %vm171_vm0, %v16334_v43 }
 0x11f   : > { %13249 = vmatmul.mubr.msk.f32.gmra.mrb[28].mxu0 %vm171_vm0, %v16340_v44 }
 0x120   : > { %13251 = vmatprep.mubr.msk.f32.mxu0 %vm171_vm0, %v16342_v45 }
 0x123   : > { %13252 = vmatmul.mubr.msk.f32.gmra.mrb[30].mxu0 %vm171_vm0, %v16348_v46 }
 0x124   : > { %13256 = vmatprep.mubr.msk.f32.mxu0 %vm171_vm0, %v16228_v16  ;;  %v16579_v16 = vld [vmem:[#allocation2 + $0x1a8] sm:$0xff] }
 0x127   : > { %13257 = vmatmul.mubr.msk.f32.vlgmr.msra.gmra.mrb[0].mxu0 %vm171_vm0, %v1192_v18  ;;  %v16587_v18 = vld [vmem:[#allocation2 + $0x1c8] sm:$0xff] }
 0x128   : > { %13305 = vmatpush3.msra.mxu0 %v16233_v17  ;;  %13259 = vmatprep.mubr.msk.f32.mxu0 %vm171_vm0, %v16238_v19  ;;  %v16585_v17 = vld [vmem:[#allocation2 + $0x1b0] sm:$0xff] }
 0x129   : > { %13354 = vmatprep.subr.mxu0 %v10809_v47 }
 0x12b   : > { %13260 = vmatmul.mubr.msk.f32.gmra.mrb[2].mxu0 %vm171_vm0, %v16244_v20 }
 0x12c   : > { %13262 = vmatprep.mubr.msk.f32.mxu0 %vm171_vm0, %v16246_v21 }
 0x12f   : > { %13263 = vmatmul.mubr.msk.f32.gmra.mrb[4].mxu0 %vm171_vm0, %v16252_v22 }
 0x130   : > { %13265 = vmatprep.mubr.msk.f32.mxu0 %vm171_vm0, %v16254_v23 }
 0x133   : > { %13266 = vmatmul.mubr.msk.f32.gmra.mrb[6].mxu0 %vm171_vm0, %v16260_v24 }
 0x134   : > { %13268 = vmatprep.mubr.msk.f32.mxu0 %vm171_vm0, %v16262_v25 }
 0x137   : > { %13269 = vmatmul.mubr.msk.f32.gmra.mrb[8].mxu0 %vm171_vm0, %v16268_v26 }
 0x138   : > { %13271 = vmatprep.mubr.msk.f32.mxu0 %vm171_vm0, %v16270_v27 }
 0x13b   : > { %13272 = vmatmul.mubr.msk.f32.gmra.mrb[10].mxu0 %vm171_vm0, %v16276_v28 }
 0x13c   : > { %13274 = vmatprep.mubr.msk.f32.mxu0 %vm171_vm0, %v16278_v29 }
 0x13f   : > { %13275 = vmatmul.mubr.msk.f32.gmra.mrb[12].mxu0 %vm171_vm0, %v16284_v30 }
 0x140   : > { %13277 = vmatprep.mubr.msk.f32.mxu0 %vm171_vm0, %v16286_v31 }
 0x143   : > { %13278 = vmatmul.mubr.msk.f32.gmra.mrb[14].mxu0 %vm171_vm0, %v16292_v32 }
 0x144   : > { %13280 = vmatprep.mubr.msk.f32.mxu0 %vm171_vm0, %v16294_v33 }
 0x147   : > { %13281 = vmatmul.mubr.msk.f32.gmra.mrb[16].mxu0 %vm171_vm0, %v16300_v34 }
 0x148   : > { %13283 = vmatprep.mubr.msk.f32.mxu0 %vm171_vm0, %v16302_v35 }
 0x14b   : > { %13284 = vmatmul.mubr.msk.f32.gmra.mrb[18].mxu0 %vm171_vm0, %v16308_v36 }
 0x14c   : > { %13286 = vmatprep.mubr.msk.f32.mxu0 %vm171_vm0, %v16310_v37 }
 0x14f   : > { %13287 = vmatmul.mubr.msk.f32.gmra.mrb[20].mxu0 %vm171_vm0, %v16316_v38 }
 0x150   : > { %13289 = vmatprep.mubr.msk.f32.mxu0 %vm171_vm0, %v16318_v39 }
 0x153   : > { %13290 = vmatmul.mubr.msk.f32.gmra.mrb[22].mxu0 %vm171_vm0, %v16324_v40 }
 0x154   : > { %13292 = vmatprep.mubr.msk.f32.mxu0 %vm171_vm0, %v16326_v41 }
 0x157   : > { %13293 = vmatmul.mubr.msk.f32.gmra.mrb[24].mxu0 %vm171_vm0, %v16332_v42 }
 0x158   : > { %13295 = vmatprep.mubr.msk.f32.mxu0 %vm171_vm0, %v16334_v43 }
 0x15b   : > { %13296 = vmatmul.mubr.msk.f32.gmra.mrb[26].mxu0 %vm171_vm0, %v16340_v44 }
 0x15c   : > { %13298 = vmatprep.mubr.msk.f32.mxu0 %vm171_vm0, %v16342_v45 }
 0x15f   : > { %13299 = vmatmul.mubr.msk.f32.gmra.mrb[28].mxu0 %vm171_vm0, %v16348_v46 }
 0x160   : > { %13301 = vmatprep.mubr.msk.f32.mxu0 %vm171_vm0, %v1221_v48 }
 0x163   : > { %13302 = vmatmul.mubr.msk.f32.gmra.mrb[30].mxu0 %vm171_vm0, %v1222_v49 }
 0x164   : > { %13306 = vmatprep.mubr.msk.f32.mxu0 %vm171_vm0, %v16238_v19  ;;  %v16593_v19 = vld [vmem:[#allocation2 + $0x1d0] sm:$0xff] }
 0x167   : > { %13307 = vmatmul.mubr.msk.f32.vlgmr.msra.gmra.mrb[0].mxu0 %vm171_vm0, %v16244_v20  ;;  %v16595_v20 = vld [vmem:[#allocation2 + $0x1e8] sm:$0xff] }
 0x168   : > { %13355 = vmatpush3.msra.mxu0 %v10809_v47  ;;  %13309 = vmatprep.mubr.msk.f32.mxu0 %vm171_vm0, %v16246_v21  ;;  %v16601_v21 = vld [vmem:[#allocation2 + $0x1f0] sm:$0xff] }
 0x169   : > { %13404 = vmatprep.subr.mxu0 %v10810_v50  ;;  %v16918_v47 = vld [vmem:[#allocation2 + $0xe9] sm:$0xff] }
 0x16b   : > { %13310 = vmatmul.mubr.msk.f32.gmra.mrb[2].mxu0 %vm171_vm0, %v16252_v22  ;;  %v10812_v22 = vld [vmem:[%s18937_s1 + $0x48] sm:$0xff] }
 0x16c   : > { %13312 = vmatprep.mubr.msk.f32.mxu0 %vm171_vm0, %v16254_v23  ;;  %v16666_v23 = vld [vmem:[#allocation2 + $0x208] sm:$0xff] }
 0x16f   : > { %13313 = vmatmul.mubr.msk.f32.gmra.mrb[4].mxu0 %vm171_vm0, %v16260_v24  ;;  %v16672_v24 = vld [vmem:[#allocation2 + $0x210] sm:$0xff] }
 0x170   : > { %13315 = vmatprep.mubr.msk.f32.mxu0 %vm171_vm0, %v16262_v25  ;;  %v10813_v25 = vld [vmem:[%s18937_s1 + $0x50] sm:$0xff] }
 0x173   : > { %13316 = vmatmul.mubr.msk.f32.gmra.mrb[6].mxu0 %vm171_vm0, %v16268_v26  ;;  %v16737_v26 = vld [vmem:[#allocation2 + $0x228] sm:$0xff] }
 0x174   : > { %13318 = vmatprep.mubr.msk.f32.mxu0 %vm171_vm0, %v16270_v27  ;;  %v16743_v27 = vld [vmem:[#allocation2 + $0x230] sm:$0xff] }
 0x177   : > { %13319 = vmatmul.mubr.msk.f32.gmra.mrb[8].mxu0 %vm171_vm0, %v16276_v28  ;;  %v10814_v28 = vld [vmem:[%s18937_s1 + $0x58] sm:$0xff] }
 0x178   : > { %13321 = vmatprep.mubr.msk.f32.mxu0 %vm171_vm0, %v16278_v29  ;;  %v2140_v29 = vld [vmem:[#allocation2 + $0x248] sm:$0xff] }
 0x17b   : > { %13322 = vmatmul.mubr.msk.f32.gmra.mrb[10].mxu0 %vm171_vm0, %v16284_v30  ;;  %v2141_v30 = vld [vmem:[#allocation2 + $0x250] sm:$0xff] }
 0x17c   : > { %13324 = vmatprep.mubr.msk.f32.mxu0 %vm171_vm0, %v16286_v31  ;;  %v10815_v31 = vld [vmem:[%s18937_s1 + $0x60] sm:$0xff] }
 0x17f   : > { %13325 = vmatmul.mubr.msk.f32.gmra.mrb[12].mxu0 %vm171_vm0, %v16292_v32  ;;  %v2142_v32 = vld [vmem:[#allocation2 + $0x268] sm:$0xff] }
 0x180   : > { %13327 = vmatprep.mubr.msk.f32.mxu0 %vm171_vm0, %v16294_v33  ;;  %v2143_v33 = vld [vmem:[#allocation2 + $0x270] sm:$0xff] }
 0x183   : > { %13328 = vmatmul.mubr.msk.f32.gmra.mrb[14].mxu0 %vm171_vm0, %v16300_v34  ;;  %v3549_v34 = vld [vmem:[#allocation2 + $0x29] sm:$0xff] }
 0x184   : > { %13330 = vmatprep.mubr.msk.f32.mxu0 %vm171_vm0, %v16302_v35  ;;  %v3550_v35 = vld [vmem:[#allocation2 + $0x31] sm:$0xff] }
 0x187   : > { %13331 = vmatmul.mubr.msk.f32.gmra.mrb[16].mxu0 %vm171_vm0, %v16308_v36  ;;  %v16876_v36 = vld [vmem:[#allocation2 + $0x49] sm:$0xff] }
 0x188   : > { %13333 = vmatprep.mubr.msk.f32.mxu0 %vm171_vm0, %v16310_v37  ;;  %v16881_v37 = vld [vmem:[%s18937_s1 + $0x68] sm:$0xff] }
 0x18b   : > { %13334 = vmatmul.mubr.msk.f32.gmra.mrb[18].mxu0 %vm171_vm0, %v16316_v38  ;;  %v3552_v38 = vld [vmem:[#allocation2 + $0x51] sm:$0xff] }
 0x18c   : > { %13336 = vmatprep.mubr.msk.f32.mxu0 %vm171_vm0, %v16318_v39  ;;  %v16886_v39 = vld [vmem:[#allocation2 + $0x69] sm:$0xff] }
 0x18f   : > { %13337 = vmatmul.mubr.msk.f32.gmra.mrb[20].mxu0 %vm171_vm0, %v16324_v40  ;;  %v16892_v40 = vld [vmem:[#allocation2 + $0x71] sm:$0xff] }
 0x190   : > { %13339 = vmatprep.mubr.msk.f32.mxu0 %vm171_vm0, %v16326_v41  ;;  %v16894_v41 = vld [vmem:[#allocation2 + $0x89] sm:$0xff] }
 0x193   : > { %13340 = vmatmul.mubr.msk.f32.gmra.mrb[22].mxu0 %vm171_vm0, %v16332_v42  ;;  %v16900_v42 = vld [vmem:[#allocation2 + $0x91] sm:$0xff] }
 0x194   : > { %13342 = vmatprep.mubr.msk.f32.mxu0 %vm171_vm0, %v16334_v43  ;;  %v16902_v43 = vld [vmem:[#allocation2 + $0xa9] sm:$0xff] }
 0x197   : > { %13343 = vmatmul.mubr.msk.f32.gmra.mrb[24].mxu0 %vm171_vm0, %v16340_v44  ;;  %v16908_v44 = vld [vmem:[#allocation2 + $0xb1] sm:$0xff] }
 0x198   : > { %13345 = vmatprep.mubr.msk.f32.mxu0 %vm171_vm0, %v16342_v45  ;;  %v16910_v45 = vld [vmem:[#allocation2 + $0xc9] sm:$0xff] }
 0x19b   : > { %13346 = vmatmul.mubr.msk.f32.gmra.mrb[26].mxu0 %vm171_vm0, %v16348_v46  ;;  %v16916_v46 = vld [vmem:[#allocation2 + $0xd1] sm:$0xff] }
 0x19c   : > { %13348 = vmatprep.mubr.msk.f32.mxu0 %vm171_vm0, %v1221_v48  ;;  %v16924_v48 = vld [vmem:[#allocation2 + $0xf1] sm:$0xff] }
 0x19f   : > { %13349 = vmatmul.mubr.msk.f32.gmra.mrb[28].mxu0 %vm171_vm0, %v1222_v49  ;;  %v16926_v49 = vld [vmem:[#allocation2 + $0x109] sm:$0xff] }
 0x1a0   : > { %13351 = vmatprep.mubr.msk.f32.mxu0 %vm171_vm0, %v1223_v51  ;;  %v16934_v51 = vld [vmem:[#allocation2 + $0x129] sm:$0xff] }
 0x1a3   : > { %13352 = vmatmul.mubr.msk.f32.gmra.mrb[30].mxu0 %vm171_vm0, %v1224_v52  ;;  %v16940_v52 = vld [vmem:[#allocation2 + $0x131] sm:$0xff] }
 0x1a4   : > { %13356 = vmatprep.mubr.msk.f32.mxu0 %vm171_vm0, %v2104_v53  ;;  %v16942_v53 = vld [vmem:[#allocation2 + $0x149] sm:$0xff] }
 0x1a7   : > { %13357 = vmatmul.mubr.msk.f32.vlgmr.msra.gmra.mrb[0].mxu0 %vm171_vm0, %v2105_v54  ;;  %v16948_v54 = vld [vmem:[#allocation2 + $0x151] sm:$0xff] }
 0x1a8   : > { %13405 = vmatpush3.msra.mxu0 %v10810_v50  ;;  %13359 = vmatprep.mubr.msk.f32.mxu0 %vm171_vm0, %v16481_v55  ;;  %v16932_v50 = vld [vmem:[#allocation2 + $0x111] sm:$0xff] }
 0x1a9   : > { %13454 = vmatprep.subr.mxu0 %v16486_v56 }
 0x1ab   : > { %13360 = vmatmul.mubr.msk.f32.gmra.mrb[2].mxu0 %vm171_vm0, %v2107_v57 }
 0x1ac   : > { %13362 = vmatprep.mubr.msk.f32.mxu0 %vm171_vm0, %v16491_v58 }
 0x1af   : > { %13363 = vmatmul.mubr.msk.f32.gmra.mrb[4].mxu0 %vm171_vm0, %v16497_v59 }
 0x1b0   : > { %13365 = vmatprep.mubr.msk.f32.mxu0 %vm171_vm0, %v16499_v60 }
 0x1b3   : > { %13366 = vmatmul.mubr.msk.f32.gmra.mrb[6].mxu0 %vm171_vm0, %v16505_v61 }
 0x1b4   : > { %13368 = vmatprep.mubr.msk.f32.mxu0 %vm171_vm0, %v16507_v62 }
 0x1b7   : > { %13369 = vmatmul.mubr.msk.f32.gmra.mrb[8].mxu0 %vm171_vm0, %v16513_v63 }
 0x1b8   : > { %13371 = vmatprep.mubr.msk.f32.mxu0 %vm171_vm0, %v16515_v0 }
 0x1bb   : > { %13372 = vmatmul.mubr.msk.f32.gmra.mrb[10].mxu0 %vm171_vm0, %v16521_v1 }
 0x1bc   : > { %13374 = vmatprep.mubr.msk.f32.mxu0 %vm171_vm0, %v16523_v2 }
 0x1bf   : > { %13375 = vmatmul.mubr.msk.f32.gmra.mrb[12].mxu0 %vm171_vm0, %v16529_v3 }
 0x1c0   : > { %13377 = vmatprep.mubr.msk.f32.mxu0 %vm171_vm0, %v16531_v4 }
 0x1c3   : > { %13378 = vmatmul.mubr.msk.f32.gmra.mrb[14].mxu0 %vm171_vm0, %v16537_v5 }
 0x1c4   : > { %13380 = vmatprep.mubr.msk.f32.mxu0 %vm171_vm0, %v16539_v6 }
 0x1c7   : > { %13381 = vmatmul.mubr.msk.f32.gmra.mrb[16].mxu0 %vm171_vm0, %v16545_v7 }
 0x1c8   : > { %13383 = vmatprep.mubr.msk.f32.mxu0 %vm171_vm0, %v16547_v8 }
 0x1cb   : > { %13384 = vmatmul.mubr.msk.f32.gmra.mrb[18].mxu0 %vm171_vm0, %v16553_v9 }
 0x1cc   : > { %13386 = vmatprep.mubr.msk.f32.mxu0 %vm171_vm0, %v16555_v10 }
 0x1cf   : > { %13387 = vmatmul.mubr.msk.f32.gmra.mrb[20].mxu0 %vm171_vm0, %v16561_v11 }
 0x1d0   : > { %13389 = vmatprep.mubr.msk.f32.mxu0 %vm171_vm0, %v16563_v12 }
 0x1d3   : > { %13390 = vmatmul.mubr.msk.f32.gmra.mrb[22].mxu0 %vm171_vm0, %v16569_v13 }
 0x1d4   : > { %13392 = vmatprep.mubr.msk.f32.mxu0 %vm171_vm0, %v16571_v14 }
 0x1d7   : > { %13393 = vmatmul.mubr.msk.f32.gmra.mrb[24].mxu0 %vm171_vm0, %v16577_v15 }
 0x1d8   : > { %13395 = vmatprep.mubr.msk.f32.mxu0 %vm171_vm0, %v16579_v16 }
 0x1db   : > { %13396 = vmatmul.mubr.msk.f32.gmra.mrb[26].mxu0 %vm171_vm0, %v16585_v17 }
 0x1dc   : > { %13398 = vmatprep.mubr.msk.f32.mxu0 %vm171_vm0, %v16587_v18 }
 0x1df   : > { %13399 = vmatmul.mubr.msk.f32.gmra.mrb[28].mxu0 %vm171_vm0, %v16593_v19 }
 0x1e0   : > { %13401 = vmatprep.mubr.msk.f32.mxu0 %vm171_vm0, %v16595_v20 }
 0x1e3   : > { %13402 = vmatmul.mubr.msk.f32.gmra.mrb[30].mxu0 %vm171_vm0, %v16601_v21 }
 0x1e4   : > { %13406 = vmatprep.mubr.msk.f32.mxu0 %vm171_vm0, %v16481_v55  ;;  %v16950_v55 = vld [vmem:[#allocation2 + $0x169] sm:$0xff] }
 0x1e7   : > { %13407 = vmatmul.mubr.msk.f32.vlgmr.msra.gmra.mrb[0].mxu0 %vm171_vm0, %v2107_v57  ;;  %v16958_v57 = vld [vmem:[#allocation2 + $0x189] sm:$0xff] }
 0x1e8   : > { %13455 = vmatpush3.msra.mxu0 %v16486_v56  ;;  %13409 = vmatprep.mubr.msk.f32.mxu0 %vm171_vm0, %v16491_v58  ;;  %v16956_v56 = vld [vmem:[#allocation2 + $0x171] sm:$0xff] }
 0x1e9   : > { %13504 = vmatprep.subr.mxu0 %v10812_v22 }
 0x1eb   : > { %13410 = vmatmul.mubr.msk.f32.gmra.mrb[2].mxu0 %vm171_vm0, %v16497_v59 }
 0x1ec   : > { %13412 = vmatprep.mubr.msk.f32.mxu0 %vm171_vm0, %v16499_v60 }
 0x1ef   : > { %13413 = vmatmul.mubr.msk.f32.gmra.mrb[4].mxu0 %vm171_vm0, %v16505_v61 }
 0x1f0   : > { %13415 = vmatprep.mubr.msk.f32.mxu0 %vm171_vm0, %v16507_v62 }
 0x1f3   : > { %13416 = vmatmul.mubr.msk.f32.gmra.mrb[6].mxu0 %vm171_vm0, %v16513_v63 }
 0x1f4   : > { %13418 = vmatprep.mubr.msk.f32.mxu0 %vm171_vm0, %v16515_v0 }
 0x1f7   : > { %13419 = vmatmul.mubr.msk.f32.gmra.mrb[8].mxu0 %vm171_vm0, %v16521_v1 }
 0x1f8   : > { %13421 = vmatprep.mubr.msk.f32.mxu0 %vm171_vm0, %v16523_v2 }
 0x1fb   : > { %13422 = vmatmul.mubr.msk.f32.gmra.mrb[10].mxu0 %vm171_vm0, %v16529_v3 }
 0x1fc   : > { %13424 = vmatprep.mubr.msk.f32.mxu0 %vm171_vm0, %v16531_v4 }
 0x1ff   : > { %13425 = vmatmul.mubr.msk.f32.gmra.mrb[12].mxu0 %vm171_vm0, %v16537_v5 }
 0x200   : > { %13427 = vmatprep.mubr.msk.f32.mxu0 %vm171_vm0, %v16539_v6 }
 0x203   : > { %13428 = vmatmul.mubr.msk.f32.gmra.mrb[14].mxu0 %vm171_vm0, %v16545_v7 }
 0x204   : > { %13430 = vmatprep.mubr.msk.f32.mxu0 %vm171_vm0, %v16547_v8 }
 0x207   : > { %13431 = vmatmul.mubr.msk.f32.gmra.mrb[16].mxu0 %vm171_vm0, %v16553_v9 }
 0x208   : > { %13433 = vmatprep.mubr.msk.f32.mxu0 %vm171_vm0, %v16555_v10 }
 0x20b   : > { %13434 = vmatmul.mubr.msk.f32.gmra.mrb[18].mxu0 %vm171_vm0, %v16561_v11 }
 0x20c   : > { %13436 = vmatprep.mubr.msk.f32.mxu0 %vm171_vm0, %v16563_v12 }
 0x20f   : > { %13437 = vmatmul.mubr.msk.f32.gmra.mrb[20].mxu0 %vm171_vm0, %v16569_v13 }
 0x210   : > { %13439 = vmatprep.mubr.msk.f32.mxu0 %vm171_vm0, %v16571_v14 }
 0x213   : > { %13440 = vmatmul.mubr.msk.f32.gmra.mrb[22].mxu0 %vm171_vm0, %v16577_v15 }
 0x214   : > { %13442 = vmatprep.mubr.msk.f32.mxu0 %vm171_vm0, %v16579_v16 }
 0x217   : > { %13443 = vmatmul.mubr.msk.f32.gmra.mrb[24].mxu0 %vm171_vm0, %v16585_v17 }
 0x218   : > { %13445 = vmatprep.mubr.msk.f32.mxu0 %vm171_vm0, %v16587_v18 }
 0x21b   : > { %13446 = vmatmul.mubr.msk.f32.gmra.mrb[26].mxu0 %vm171_vm0, %v16593_v19 }
 0x21c   : > { %13448 = vmatprep.mubr.msk.f32.mxu0 %vm171_vm0, %v16595_v20 }
 0x21f   : > { %13449 = vmatmul.mubr.msk.f32.gmra.mrb[28].mxu0 %vm171_vm0, %v16601_v21 }
 0x220   : > { %13451 = vmatprep.mubr.msk.f32.mxu0 %vm171_vm0, %v16666_v23 }
 0x223   : > { %13452 = vmatmul.mubr.msk.f32.gmra.mrb[30].mxu0 %vm171_vm0, %v16672_v24 }
 0x224   : > { %13456 = vmatprep.mubr.msk.f32.mxu0 %vm171_vm0, %v16491_v58  ;;  %v16964_v58 = vld [vmem:[#allocation2 + $0x191] sm:$0xff] }
 0x227   : > { %13457 = vmatmul.mubr.msk.f32.vlgmr.msra.gmra.mrb[0].mxu0 %vm171_vm0, %v16497_v59  ;;  %v16966_v59 = vld [vmem:[#allocation2 + $0x1a9] sm:$0xff] }
 0x228   : > { %13505 = vmatpush3.msra.mxu0 %v10812_v22  ;;  %13459 = vmatprep.mubr.msk.f32.mxu0 %vm171_vm0, %v16499_v60  ;;  %v17156_v22 = vld [vmem:[#allocation2 + $0xca] sm:$0xff] }
 0x229   : > { %13554 = vmatprep.subr.mxu0 %v10813_v25 }
 0x22b   : > { %13460 = vmatmul.mubr.msk.f32.gmra.mrb[2].mxu0 %vm171_vm0, %v16505_v61 }
 0x22c   : > { %13462 = vmatprep.mubr.msk.f32.mxu0 %vm171_vm0, %v16507_v62 }
 0x22f   : > { %13463 = vmatmul.mubr.msk.f32.gmra.mrb[4].mxu0 %vm171_vm0, %v16513_v63 }
 0x230   : > { %13465 = vmatprep.mubr.msk.f32.mxu0 %vm171_vm0, %v16515_v0 }
 0x233   : > { %13466 = vmatmul.mubr.msk.f32.gmra.mrb[6].mxu0 %vm171_vm0, %v16521_v1 }
 0x234   : > { %13468 = vmatprep.mubr.msk.f32.mxu0 %vm171_vm0, %v16523_v2 }
 0x237   : > { %13469 = vmatmul.mubr.msk.f32.gmra.mrb[8].mxu0 %vm171_vm0, %v16529_v3 }
 0x238   : > { %13471 = vmatprep.mubr.msk.f32.mxu0 %vm171_vm0, %v16531_v4 }
 0x23b   : > { %13472 = vmatmul.mubr.msk.f32.gmra.mrb[10].mxu0 %vm171_vm0, %v16537_v5 }
 0x23c   : > { %13474 = vmatprep.mubr.msk.f32.mxu0 %vm171_vm0, %v16539_v6 }
 0x23f   : > { %13475 = vmatmul.mubr.msk.f32.gmra.mrb[12].mxu0 %vm171_vm0, %v16545_v7 }
 0x240   : > { %13477 = vmatprep.mubr.msk.f32.mxu0 %vm171_vm0, %v16547_v8 }
 0x243   : > { %13478 = vmatmul.mubr.msk.f32.gmra.mrb[14].mxu0 %vm171_vm0, %v16553_v9 }
 0x244   : > { %13480 = vmatprep.mubr.msk.f32.mxu0 %vm171_vm0, %v16555_v10 }
 0x247   : > { %13481 = vmatmul.mubr.msk.f32.gmra.mrb[16].mxu0 %vm171_vm0, %v16561_v11 }
 0x248   : > { %13483 = vmatprep.mubr.msk.f32.mxu0 %vm171_vm0, %v16563_v12 }
 0x24b   : > { %13484 = vmatmul.mubr.msk.f32.gmra.mrb[18].mxu0 %vm171_vm0, %v16569_v13 }
 0x24c   : > { %13486 = vmatprep.mubr.msk.f32.mxu0 %vm171_vm0, %v16571_v14 }
 0x24f   : > { %13487 = vmatmul.mubr.msk.f32.gmra.mrb[20].mxu0 %vm171_vm0, %v16577_v15 }
 0x250   : > { %13489 = vmatprep.mubr.msk.f32.mxu0 %vm171_vm0, %v16579_v16 }
 0x253   : > { %13490 = vmatmul.mubr.msk.f32.gmra.mrb[22].mxu0 %vm171_vm0, %v16585_v17 }
 0x254   : > { %13492 = vmatprep.mubr.msk.f32.mxu0 %vm171_vm0, %v16587_v18 }
 0x257   : > { %13493 = vmatmul.mubr.msk.f32.gmra.mrb[24].mxu0 %vm171_vm0, %v16593_v19 }
 0x258   : > { %13495 = vmatprep.mubr.msk.f32.mxu0 %vm171_vm0, %v16595_v20 }
 0x25b   : > { %13496 = vmatmul.mubr.msk.f32.gmra.mrb[26].mxu0 %vm171_vm0, %v16601_v21 }
 0x25c   : > { %13498 = vmatprep.mubr.msk.f32.mxu0 %vm171_vm0, %v16666_v23 }
 0x25f   : > { %13499 = vmatmul.mubr.msk.f32.gmra.mrb[28].mxu0 %vm171_vm0, %v16672_v24 }
 0x260   : > { %13501 = vmatprep.mubr.msk.f32.mxu0 %vm171_vm0, %v16737_v26 }
 0x263   : > { %13502 = vmatmul.mubr.msk.f32.gmra.mrb[30].mxu0 %vm171_vm0, %v16743_v27 }
 0x264   : > { %13506 = vmatprep.mubr.msk.f32.mxu0 %vm171_vm0, %v16499_v60  ;;  %v16972_v60 = vld [vmem:[#allocation2 + $0x1b1] sm:$0xff] }
 0x267   : > { %13507 = vmatmul.mubr.msk.f32.vlgmr.msra.gmra.mrb[0].mxu0 %vm171_vm0, %v16505_v61  ;;  %v16974_v61 = vld [vmem:[#allocation2 + $0x1c9] sm:$0xff] }
 0x268   : > { %13555 = vmatpush3.msra.mxu0 %v10813_v25  ;;  %13509 = vmatprep.mubr.msk.f32.mxu0 %vm171_vm0, %v16507_v62  ;;  %v17170_v25 = vld [vmem:[#allocation2 + $0xf2] sm:$0xff] }
 0x269   : > { %13604 = vmatprep.subr.mxu0 %v10814_v28 }
 0x26b   : > { %13510 = vmatmul.mubr.msk.f32.gmra.mrb[2].mxu0 %vm171_vm0, %v16513_v63 }
 0x26c   : > { %13512 = vmatprep.mubr.msk.f32.mxu0 %vm171_vm0, %v16515_v0 }
 0x26f   : > { %13513 = vmatmul.mubr.msk.f32.gmra.mrb[4].mxu0 %vm171_vm0, %v16521_v1 }
 0x270   : > { %13515 = vmatprep.mubr.msk.f32.mxu0 %vm171_vm0, %v16523_v2 }
 0x273   : > { %13516 = vmatmul.mubr.msk.f32.gmra.mrb[6].mxu0 %vm171_vm0, %v16529_v3 }
 0x274   : > { %13518 = vmatprep.mubr.msk.f32.mxu0 %vm171_vm0, %v16531_v4 }
 0x277   : > { %13519 = vmatmul.mubr.msk.f32.gmra.mrb[8].mxu0 %vm171_vm0, %v16537_v5 }
 0x278   : > { %13521 = vmatprep.mubr.msk.f32.mxu0 %vm171_vm0, %v16539_v6 }
 0x27b   : > { %13522 = vmatmul.mubr.msk.f32.gmra.mrb[10].mxu0 %vm171_vm0, %v16545_v7 }
 0x27c   : > { %13524 = vmatprep.mubr.msk.f32.mxu0 %vm171_vm0, %v16547_v8 }
 0x27f   : > { %13525 = vmatmul.mubr.msk.f32.gmra.mrb[12].mxu0 %vm171_vm0, %v16553_v9 }
 0x280   : > { %13527 = vmatprep.mubr.msk.f32.mxu0 %vm171_vm0, %v16555_v10 }
 0x283   : > { %13528 = vmatmul.mubr.msk.f32.gmra.mrb[14].mxu0 %vm171_vm0, %v16561_v11 }
 0x284   : > { %13530 = vmatprep.mubr.msk.f32.mxu0 %vm171_vm0, %v16563_v12 }
 0x287   : > { %13531 = vmatmul.mubr.msk.f32.gmra.mrb[16].mxu0 %vm171_vm0, %v16569_v13 }
 0x288   : > { %13533 = vmatprep.mubr.msk.f32.mxu0 %vm171_vm0, %v16571_v14 }
 0x28b   : > { %13534 = vmatmul.mubr.msk.f32.gmra.mrb[18].mxu0 %vm171_vm0, %v16577_v15 }
 0x28c   : > { %13536 = vmatprep.mubr.msk.f32.mxu0 %vm171_vm0, %v16579_v16 }
 0x28f   : > { %13537 = vmatmul.mubr.msk.f32.gmra.mrb[20].mxu0 %vm171_vm0, %v16585_v17 }
 0x290   : > { %13539 = vmatprep.mubr.msk.f32.mxu0 %vm171_vm0, %v16587_v18 }
 0x293   : > { %13540 = vmatmul.mubr.msk.f32.gmra.mrb[22].mxu0 %vm171_vm0, %v16593_v19 }
 0x294   : > { %13542 = vmatprep.mubr.msk.f32.mxu0 %vm171_vm0, %v16595_v20 }
 0x297   : > { %13543 = vmatmul.mubr.msk.f32.gmra.mrb[24].mxu0 %vm171_vm0, %v16601_v21 }
 0x298   : > { %13545 = vmatprep.mubr.msk.f32.mxu0 %vm171_vm0, %v16666_v23 }
 0x29b   : > { %13546 = vmatmul.mubr.msk.f32.gmra.mrb[26].mxu0 %vm171_vm0, %v16672_v24 }
 0x29c   : > { %13548 = vmatprep.mubr.msk.f32.mxu0 %vm171_vm0, %v16737_v26 }
 0x29f   : > { %13549 = vmatmul.mubr.msk.f32.gmra.mrb[28].mxu0 %vm171_vm0, %v16743_v27 }
 0x2a0   : > { %13551 = vmatprep.mubr.msk.f32.mxu0 %vm171_vm0, %v2140_v29 }
 0x2a3   : > { %13552 = vmatmul.mubr.msk.f32.gmra.mrb[30].mxu0 %vm171_vm0, %v2141_v30 }
 0x2a4   : > { %13556 = vmatprep.mubr.msk.f32.mxu0 %vm171_vm0, %v16507_v62  ;;  %v16980_v62 = vld [vmem:[#allocation2 + $0x1d1] sm:$0xff] }
 0x2a7   : > { %13557 = vmatmul.mubr.msk.f32.vlgmr.msra.gmra.mrb[0].mxu0 %vm171_vm0, %v16513_v63  ;;  %v16982_v63 = vld [vmem:[#allocation2 + $0x1e9] sm:$0xff] }
 0x2a8   : > { %13605 = vmatpush3.msra.mxu0 %v10814_v28  ;;  %13559 = vmatprep.mubr.msk.f32.mxu0 %vm171_vm0, %v16515_v0  ;;  %v16988_v0 = vld [vmem:[#allocation2 + $0x1f1] sm:$0xff] }
 0x2a9   : > { %13654 = vmatprep.subr.mxu0 %v10815_v31  ;;  %v17180_v28 = vld [vmem:[#allocation2 + $0x12a] sm:$0xff] }
 0x2ab   : > { %13560 = vmatmul.mubr.msk.f32.gmra.mrb[2].mxu0 %vm171_vm0, %v16521_v1  ;;  %v16990_v1 = vld [vmem:[#allocation2 + $0x209] sm:$0xff] }
 0x2ac   : > { %13562 = vmatprep.mubr.msk.f32.mxu0 %vm171_vm0, %v16523_v2  ;;  %v16996_v2 = vld [vmem:[#allocation2 + $0x211] sm:$0xff] }
 0x2af   : > { %13563 = vmatmul.mubr.msk.f32.gmra.mrb[4].mxu0 %vm171_vm0, %v16529_v3  ;;  %v10817_v3 = vld [vmem:[%s18937_s1 + $0x70] sm:$0xff] }
 0x2b0   : > { %13565 = vmatprep.mubr.msk.f32.mxu0 %vm171_vm0, %v16531_v4  ;;  %v3581_v4 = vld [vmem:[#allocation2 + $0x229] sm:$0xff] }
 0x2b3   : > { %13566 = vmatmul.mubr.msk.f32.gmra.mrb[6].mxu0 %vm171_vm0, %v16537_v5  ;;  %v3582_v5 = vld [vmem:[#allocation2 + $0x231] sm:$0xff] }
 0x2b4   : > { %13568 = vmatprep.mubr.msk.f32.mxu0 %vm171_vm0, %v16539_v6  ;;  %v10818_v6 = vld [vmem:[%s18937_s1 + $0x78] sm:$0xff] }
 0x2b7   : > { %13569 = vmatmul.mubr.msk.f32.gmra.mrb[8].mxu0 %vm171_vm0, %v16545_v7  ;;  %v3583_v7 = vld [vmem:[#allocation2 + $0x249] sm:$0xff] }
 0x2b8   : > { %13571 = vmatprep.mubr.msk.f32.mxu0 %vm171_vm0, %v16547_v8  ;;  %v3584_v8 = vld [vmem:[#allocation2 + $0x251] sm:$0xff] }
 0x2bb   : > { %13572 = vmatmul.mubr.msk.f32.gmra.mrb[10].mxu0 %vm171_vm0, %v16553_v9  ;;  %v4464_v9 = vld [vmem:[#allocation2 + $0xa] sm:$0xff] }
 0x2bc   : > { %13574 = vmatprep.mubr.msk.f32.mxu0 %vm171_vm0, %v16555_v10  ;;  %v4465_v10 = vld [vmem:[#allocation2 + $0x12] sm:$0xff] }
 0x2bf   : > { %13575 = vmatmul.mubr.msk.f32.gmra.mrb[12].mxu0 %vm171_vm0, %v16561_v11  ;;  %v4466_v11 = vld [vmem:[#allocation2 + $0x2a] sm:$0xff] }
 0x2c0   : > { %13577 = vmatprep.mubr.msk.f32.mxu0 %vm171_vm0, %v16563_v12  ;;  %v17132_v12 = vld [vmem:[%s18937_s1 + $0x80] sm:$0xff] }
 0x2c3   : > { %13578 = vmatmul.mubr.msk.f32.gmra.mrb[14].mxu0 %vm171_vm0, %v16569_v13  ;;  %v4467_v13 = vld [vmem:[#allocation2 + $0x32] sm:$0xff] }
 0x2c4   : > { %13580 = vmatprep.mubr.msk.f32.mxu0 %vm171_vm0, %v16571_v14  ;;  %v4468_v14 = vld [vmem:[#allocation2 + $0x4a] sm:$0xff] }
 0x2c7   : > { %13581 = vmatmul.mubr.msk.f32.gmra.mrb[16].mxu0 %vm171_vm0, %v16577_v15  ;;  %v4469_v15 = vld [vmem:[#allocation2 + $0x52] sm:$0xff] }
 0x2c8   : > { %13583 = vmatprep.mubr.msk.f32.mxu0 %vm171_vm0, %v16579_v16  ;;  %v4470_v16 = vld [vmem:[#allocation2 + $0x6a] sm:$0xff] }
 0x2cb   : > { %13584 = vmatmul.mubr.msk.f32.gmra.mrb[18].mxu0 %vm171_vm0, %v16585_v17  ;;  %v4471_v17 = vld [vmem:[#allocation2 + $0x72] sm:$0xff] }
 0x2cc   : > { %13586 = vmatprep.mubr.msk.f32.mxu0 %vm171_vm0, %v16587_v18  ;;  %v17141_v18 = vld [vmem:[#allocation2 + $0x8a] sm:$0xff] }
 0x2cf   : > { %13587 = vmatmul.mubr.msk.f32.gmra.mrb[20].mxu0 %vm171_vm0, %v16593_v19  ;;  %v17146_v19 = vld [vmem:[#allocation2 + $0x92] sm:$0xff] }
 0x2d0   : > { %13589 = vmatprep.mubr.msk.f32.mxu0 %vm171_vm0, %v16595_v20  ;;  %v17148_v20 = vld [vmem:[#allocation2 + $0xaa] sm:$0xff] }
 0x2d3   : > { %13590 = vmatmul.mubr.msk.f32.gmra.mrb[22].mxu0 %vm171_vm0, %v16601_v21  ;;  %v17154_v21 = vld [vmem:[#allocation2 + $0xb2] sm:$0xff] }
 0x2d4   : > { %13592 = vmatprep.mubr.msk.f32.mxu0 %vm171_vm0, %v16666_v23  ;;  %v17162_v23 = vld [vmem:[#allocation2 + $0xd2] sm:$0xff] }
 0x2d7   : > { %13593 = vmatmul.mubr.msk.f32.gmra.mrb[24].mxu0 %vm171_vm0, %v16672_v24  ;;  %v17164_v24 = vld [vmem:[#allocation2 + $0xea] sm:$0xff] }
 0x2d8   : > { %13595 = vmatprep.mubr.msk.f32.mxu0 %vm171_vm0, %v16737_v26  ;;  %v17172_v26 = vld [vmem:[#allocation2 + $0x10a] sm:$0xff] }
 0x2db   : > { %13596 = vmatmul.mubr.msk.f32.gmra.mrb[26].mxu0 %vm171_vm0, %v16743_v27  ;;  %v17178_v27 = vld [vmem:[#allocation2 + $0x112] sm:$0xff] }
 0x2dc   : > { %13598 = vmatprep.mubr.msk.f32.mxu0 %vm171_vm0, %v2140_v29  ;;  %v17186_v29 = vld [vmem:[#allocation2 + $0x132] sm:$0xff] }
 0x2df   : > { %13599 = vmatmul.mubr.msk.f32.gmra.mrb[28].mxu0 %vm171_vm0, %v2141_v30  ;;  %v17188_v30 = vld [vmem:[#allocation2 + $0x14a] sm:$0xff] }
 0x2e0   : > { %13601 = vmatprep.mubr.msk.f32.mxu0 %vm171_vm0, %v2142_v32  ;;  %v17196_v32 = vld [vmem:[#allocation2 + $0x16a] sm:$0xff] }
 0x2e3   : > { %13602 = vmatmul.mubr.msk.f32.gmra.mrb[30].mxu0 %vm171_vm0, %v2143_v33  ;;  %v17202_v33 = vld [vmem:[#allocation2 + $0x172] sm:$0xff] }
 0x2e4   : > { %13606 = vmatprep.mubr.msk.f32.mxu0 %vm171_vm0, %v3549_v34  ;;  %v17204_v34 = vld [vmem:[#allocation2 + $0x18a] sm:$0xff] }
 0x2e7   : > { %13607 = vmatmul.mubr.msk.f32.vlgmr.msra.gmra.mrb[0].mxu0 %vm171_vm0, %v3550_v35  ;;  %v17210_v35 = vld [vmem:[#allocation2 + $0x192] sm:$0xff] }
 0x2e8   : > { %13655 = vmatpush3.msra.mxu0 %v10815_v31  ;;  %13609 = vmatprep.mubr.msk.f32.mxu0 %vm171_vm0, %v16876_v36  ;;  %v17194_v31 = vld [vmem:[#allocation2 + $0x152] sm:$0xff] }
 0x2e9   : > { %13704 = vmatprep.subr.mxu0 %v16881_v37 }
 0x2eb   : > { %13610 = vmatmul.mubr.msk.f32.gmra.mrb[2].mxu0 %vm171_vm0, %v3552_v38 }
 0x2ec   : > { %13612 = vmatprep.mubr.msk.f32.mxu0 %vm171_vm0, %v16886_v39 }
 0x2ef   : > { %13613 = vmatmul.mubr.msk.f32.gmra.mrb[4].mxu0 %vm171_vm0, %v16892_v40 }
 0x2f0   : > { %13615 = vmatprep.mubr.msk.f32.mxu0 %vm171_vm0, %v16894_v41 }
 0x2f3   : > { %13616 = vmatmul.mubr.msk.f32.gmra.mrb[6].mxu0 %vm171_vm0, %v16900_v42 }
 0x2f4   : > { %13618 = vmatprep.mubr.msk.f32.mxu0 %vm171_vm0, %v16902_v43 }
 0x2f7   : > { %13619 = vmatmul.mubr.msk.f32.gmra.mrb[8].mxu0 %vm171_vm0, %v16908_v44 }
 0x2f8   : > { %13621 = vmatprep.mubr.msk.f32.mxu0 %vm171_vm0, %v16910_v45 }
 0x2fb   : > { %13622 = vmatmul.mubr.msk.f32.gmra.mrb[10].mxu0 %vm171_vm0, %v16916_v46 }
 0x2fc   : > { %13624 = vmatprep.mubr.msk.f32.mxu0 %vm171_vm0, %v16918_v47 }
 0x2ff   : > { %13625 = vmatmul.mubr.msk.f32.gmra.mrb[12].mxu0 %vm171_vm0, %v16924_v48 }
 0x300   : > { %13627 = vmatprep.mubr.msk.f32.mxu0 %vm171_vm0, %v16926_v49 }
 0x303   : > { %13628 = vmatmul.mubr.msk.f32.gmra.mrb[14].mxu0 %vm171_vm0, %v16932_v50 }
 0x304   : > { %13630 = vmatprep.mubr.msk.f32.mxu0 %vm171_vm0, %v16934_v51 }
 0x307   : > { %13631 = vmatmul.mubr.msk.f32.gmra.mrb[16].mxu0 %vm171_vm0, %v16940_v52 }
 0x308   : > { %13633 = vmatprep.mubr.msk.f32.mxu0 %vm171_vm0, %v16942_v53 }
 0x30b   : > { %13634 = vmatmul.mubr.msk.f32.gmra.mrb[18].mxu0 %vm171_vm0, %v16948_v54 }
 0x30c   : > { %13636 = vmatprep.mubr.msk.f32.mxu0 %vm171_vm0, %v16950_v55 }
 0x30f   : > { %13637 = vmatmul.mubr.msk.f32.gmra.mrb[20].mxu0 %vm171_vm0, %v16956_v56 }
 0x310   : > { %13639 = vmatprep.mubr.msk.f32.mxu0 %vm171_vm0, %v16958_v57 }
 0x313   : > { %13640 = vmatmul.mubr.msk.f32.gmra.mrb[22].mxu0 %vm171_vm0, %v16964_v58 }
 0x314   : > { %13642 = vmatprep.mubr.msk.f32.mxu0 %vm171_vm0, %v16966_v59 }
 0x317   : > { %13643 = vmatmul.mubr.msk.f32.gmra.mrb[24].mxu0 %vm171_vm0, %v16972_v60 }
 0x318   : > { %13645 = vmatprep.mubr.msk.f32.mxu0 %vm171_vm0, %v16974_v61 }
 0x31b   : > { %13646 = vmatmul.mubr.msk.f32.gmra.mrb[26].mxu0 %vm171_vm0, %v16980_v62 }
 0x31c   : > { %13648 = vmatprep.mubr.msk.f32.mxu0 %vm171_vm0, %v16982_v63 }
 0x31f   : > { %13649 = vmatmul.mubr.msk.f32.gmra.mrb[28].mxu0 %vm171_vm0, %v16988_v0 }
 0x320   : > { %13651 = vmatprep.mubr.msk.f32.mxu0 %vm171_vm0, %v16990_v1 }
 0x323   : > { %13652 = vmatmul.mubr.msk.f32.gmra.mrb[30].mxu0 %vm171_vm0, %v16996_v2 }
 0x324   : > { %13656 = vmatprep.mubr.msk.f32.mxu0 %vm171_vm0, %v16876_v36  ;;  %v17212_v36 = vld [vmem:[#allocation2 + $0x1aa] sm:$0xff] }
 0x327   : > { %13657 = vmatmul.mubr.msk.f32.vlgmr.msra.gmra.mrb[0].mxu0 %vm171_vm0, %v3552_v38  ;;  %v17220_v38 = vld [vmem:[#allocation2 + $0x1ca] sm:$0xff] }
 0x328   : > { %13705 = vmatpush3.msra.mxu0 %v16881_v37  ;;  %13659 = vmatprep.mubr.msk.f32.mxu0 %vm171_vm0, %v16886_v39  ;;  %v17218_v37 = vld [vmem:[#allocation2 + $0x1b2] sm:$0xff] }
 0x329   : > { %13754 = vmatprep.subr.mxu0 %v10817_v3 }
 0x32b   : > { %13660 = vmatmul.mubr.msk.f32.gmra.mrb[2].mxu0 %vm171_vm0, %v16892_v40 }
 0x32c   : > { %13662 = vmatprep.mubr.msk.f32.mxu0 %vm171_vm0, %v16894_v41 }
 0x32f   : > { %13663 = vmatmul.mubr.msk.f32.gmra.mrb[4].mxu0 %vm171_vm0, %v16900_v42 }
 0x330   : > { %13665 = vmatprep.mubr.msk.f32.mxu0 %vm171_vm0, %v16902_v43 }
 0x333   : > { %13666 = vmatmul.mubr.msk.f32.gmra.mrb[6].mxu0 %vm171_vm0, %v16908_v44 }
 0x334   : > { %13668 = vmatprep.mubr.msk.f32.mxu0 %vm171_vm0, %v16910_v45 }
 0x337   : > { %13669 = vmatmul.mubr.msk.f32.gmra.mrb[8].mxu0 %vm171_vm0, %v16916_v46 }
 0x338   : > { %13671 = vmatprep.mubr.msk.f32.mxu0 %vm171_vm0, %v16918_v47 }
 0x33b   : > { %13672 = vmatmul.mubr.msk.f32.gmra.mrb[10].mxu0 %vm171_vm0, %v16924_v48 }
 0x33c   : > { %13674 = vmatprep.mubr.msk.f32.mxu0 %vm171_vm0, %v16926_v49 }
 0x33f   : > { %13675 = vmatmul.mubr.msk.f32.gmra.mrb[12].mxu0 %vm171_vm0, %v16932_v50 }
 0x340   : > { %13677 = vmatprep.mubr.msk.f32.mxu0 %vm171_vm0, %v16934_v51 }
 0x343   : > { %13678 = vmatmul.mubr.msk.f32.gmra.mrb[14].mxu0 %vm171_vm0, %v16940_v52 }
 0x344   : > { %13680 = vmatprep.mubr.msk.f32.mxu0 %vm171_vm0, %v16942_v53 }
 0x347   : > { %13681 = vmatmul.mubr.msk.f32.gmra.mrb[16].mxu0 %vm171_vm0, %v16948_v54 }
 0x348   : > { %13683 = vmatprep.mubr.msk.f32.mxu0 %vm171_vm0, %v16950_v55 }
 0x34b   : > { %13684 = vmatmul.mubr.msk.f32.gmra.mrb[18].mxu0 %vm171_vm0, %v16956_v56 }
 0x34c   : > { %13686 = vmatprep.mubr.msk.f32.mxu0 %vm171_vm0, %v16958_v57 }
 0x34f   : > { %13687 = vmatmul.mubr.msk.f32.gmra.mrb[20].mxu0 %vm171_vm0, %v16964_v58 }
 0x350   : > { %13689 = vmatprep.mubr.msk.f32.mxu0 %vm171_vm0, %v16966_v59 }
 0x353   : > { %13690 = vmatmul.mubr.msk.f32.gmra.mrb[22].mxu0 %vm171_vm0, %v16972_v60 }
 0x354   : > { %13692 = vmatprep.mubr.msk.f32.mxu0 %vm171_vm0, %v16974_v61 }
 0x357   : > { %13693 = vmatmul.mubr.msk.f32.gmra.mrb[24].mxu0 %vm171_vm0, %v16980_v62 }
 0x358   : > { %13695 = vmatprep.mubr.msk.f32.mxu0 %vm171_vm0, %v16982_v63 }
 0x35b   : > { %13696 = vmatmul.mubr.msk.f32.gmra.mrb[26].mxu0 %vm171_vm0, %v16988_v0 }
 0x35c   : > { %13698 = vmatprep.mubr.msk.f32.mxu0 %vm171_vm0, %v16990_v1 }
 0x35f   : > { %13699 = vmatmul.mubr.msk.f32.gmra.mrb[28].mxu0 %vm171_vm0, %v16996_v2 }
 0x360   : > { %13701 = vmatprep.mubr.msk.f32.mxu0 %vm171_vm0, %v3581_v4 }
 0x363   : > { %13702 = vmatmul.mubr.msk.f32.gmra.mrb[30].mxu0 %vm171_vm0, %v3582_v5 }
 0x364   : > { %13706 = vmatprep.mubr.msk.f32.mxu0 %vm171_vm0, %v16886_v39  ;;  %v17226_v39 = vld [vmem:[#allocation2 + $0x1d2] sm:$0xff] }
 0x367   : > { %13707 = vmatmul.mubr.msk.f32.vlgmr.msra.gmra.mrb[0].mxu0 %vm171_vm0, %v16892_v40  ;;  %v17228_v40 = vld [vmem:[#allocation2 + $0x1ea] sm:$0xff] }
 0x368   : > { %13755 = vmatpush3.msra.mxu0 %v10817_v3  ;;  %13709 = vmatprep.mubr.msk.f32.mxu0 %vm171_vm0, %v16894_v41  ;;  %v4495_v41 = vld [vmem:[#allocation2 + $0x1f2] sm:$0xff] }
 0x369   : > { %13804 = vmatprep.subr.mxu0 %v10818_v6 }
 0x36b   : > { %13710 = vmatmul.mubr.msk.f32.gmra.mrb[2].mxu0 %vm171_vm0, %v16900_v42  ;;  %v4496_v42 = vld [vmem:[#allocation2 + $0x20a] sm:$0xff] }
 0x36c   : > { %13712 = vmatprep.mubr.msk.f32.mxu0 %vm171_vm0, %v16902_v43  ;;  %v4497_v43 = vld [vmem:[#allocation2 + $0x212] sm:$0xff] }
 0x36f   : > { %13713 = vmatmul.mubr.msk.f32.gmra.mrb[4].mxu0 %vm171_vm0, %v16908_v44  ;;  %v4498_v44 = vld [vmem:[#allocation2 + $0x22a] sm:$0xff] }
 0x370   : > { %13715 = vmatprep.mubr.msk.f32.mxu0 %vm171_vm0, %v16910_v45  ;;  %v4499_v45 = vld [vmem:[#allocation2 + $0x232] sm:$0xff] }
 0x373   : > { %13716 = vmatmul.mubr.msk.f32.gmra.mrb[6].mxu0 %vm171_vm0, %v16916_v46  ;;  %v4500_v46 = vld [vmem:[#allocation2 + $0x24a] sm:$0xff] }
 0x374   : > { %13718 = vmatprep.mubr.msk.f32.mxu0 %vm171_vm0, %v16918_v47  ;;  %v4501_v47 = vld [vmem:[#allocation2 + $0x252] sm:$0xff] }
 0x377   : > { %13719 = vmatmul.mubr.msk.f32.gmra.mrb[8].mxu0 %vm171_vm0, %v16924_v48  ;;  %v4502_v48 = vld [vmem:[#allocation2 + $0x26a] sm:$0xff] }
 0x378   : > { %13721 = vmatprep.mubr.msk.f32.mxu0 %vm171_vm0, %v16926_v49  ;;  %v4503_v49 = vld [vmem:[#allocation2 + $0x272] sm:$0xff] }
 0x37b   : > { %13722 = vmatmul.mubr.msk.f32.gmra.mrb[10].mxu0 %vm171_vm0, %v16932_v50  ;;  %v11367_v50 = vld [vmem:[%s18937_s1 + $0x90] sm:$0xff] }
 0x37c   : > { %13724 = vmatprep.mubr.msk.f32.mxu0 %vm171_vm0, %v16934_v51  ;;  %13904 = vmatprep.subr.mxu1 %v11367_v50  ;;  %v11366_v51 = vld [vmem:[%s18937_s1 + $0x88] sm:$0xff] }
 0x37d   : > { %13905 = vmatpush3.msra.mxu1 %v11367_v50 }
 0x37e   : > { %13954 = vmatprep.subr.mxu1 %v11366_v51 }
 0x37f   : > { %13725 = vmatmul.mubr.msk.f32.gmra.mrb[12].mxu0 %vm171_vm0, %v16940_v52  ;;  %v17355_v52 = vld [vmem:[%s18938_s2] ss:$0 sm:$0xff] }
 0x380   : > { %13727 = vmatprep.mubr.msk.f32.mxu0 %vm171_vm0, %v16942_v53 }
 0x383   : > { %13728 = vmatmul.mubr.msk.f32.gmra.mrb[14].mxu0 %vm171_vm0, %v16948_v54 }
 0x384   : > { %13730 = vmatprep.mubr.msk.f32.mxu0 %vm171_vm0, %v16950_v55 }
 0x387   : > { %13731 = vmatmul.mubr.msk.f32.gmra.mrb[16].mxu0 %vm171_vm0, %v16956_v56 }
 0x388   : > { %13733 = vmatprep.mubr.msk.f32.mxu0 %vm171_vm0, %v16958_v57 }
 0x38b   : > { %13734 = vmatmul.mubr.msk.f32.gmra.mrb[18].mxu0 %vm171_vm0, %v16964_v58 }
 0x38c   : > { %13736 = vmatprep.mubr.msk.f32.mxu0 %vm171_vm0, %v16966_v59 }
 0x38f   : > { %13737 = vmatmul.mubr.msk.f32.gmra.mrb[20].mxu0 %vm171_vm0, %v16972_v60 }
 0x390   : > { %13739 = vmatprep.mubr.msk.f32.mxu0 %vm171_vm0, %v16974_v61 }
 0x393   : > { %13740 = vmatmul.mubr.msk.f32.gmra.mrb[22].mxu0 %vm171_vm0, %v16980_v62 }
 0x394   : > { %13742 = vmatprep.mubr.msk.f32.mxu0 %vm171_vm0, %v16982_v63 }
 0x397   : > { %13743 = vmatmul.mubr.msk.f32.gmra.mrb[24].mxu0 %vm171_vm0, %v16988_v0 }
 0x398   : > { %13745 = vmatprep.mubr.msk.f32.mxu0 %vm171_vm0, %v16990_v1 }
 0x39b   : > { %13746 = vmatmul.mubr.msk.f32.gmra.mrb[26].mxu0 %vm171_vm0, %v16996_v2 }
 0x39c   : > { %13748 = vmatprep.mubr.msk.f32.mxu0 %vm171_vm0, %v3581_v4 }
 0x39f   : > { %13749 = vmatmul.mubr.msk.f32.gmra.mrb[28].mxu0 %vm171_vm0, %v3582_v5 }
 0x3a0   : > { %13751 = vmatprep.mubr.msk.f32.mxu0 %vm171_vm0, %v3583_v7 }
 0x3a3   : > { %13752 = vmatmul.mubr.msk.f32.gmra.mrb[30].mxu0 %vm171_vm0, %v3584_v8 }
 0x3a4   : > { %13756 = vmatprep.mubr.msk.f32.mxu0 %vm171_vm0, %v4464_v9 }
 0x3a7   : > { %13757 = vmatmul.mubr.msk.f32.vlgmr.msra.gmra.mrb[0].mxu0 %vm171_vm0, %v4465_v10 }
 0x3a8   : > { %13805 = vmatpush3.msra.mxu0 %v10818_v6  ;;  %13759 = vmatprep.mubr.msk.f32.mxu0 %vm171_vm0, %v4466_v11 }
 0x3a9   : > { %13854 = vmatprep.subr.mxu0 %v17132_v12 }
 0x3ab   : > { %13760 = vmatmul.mubr.msk.f32.gmra.mrb[2].mxu0 %vm171_vm0, %v4467_v13  ;;  %v17380_v13 = vld [vmem:[%s18937_s1 + $0x98] sm:$0xff] }
 0x3ac   : > { %13762 = vmatprep.mubr.msk.f32.mxu0 %vm171_vm0, %v4468_v14 }
 0x3af   : > { %13763 = vmatmul.mubr.msk.f32.gmra.mrb[4].mxu0 %vm171_vm0, %v4469_v15 }
 0x3b0   : > { %13765 = vmatprep.mubr.msk.f32.mxu0 %vm171_vm0, %v4470_v16 }
 0x3b3   : > { %13766 = vmatmul.mubr.msk.f32.gmra.mrb[6].mxu0 %vm171_vm0, %v4471_v17 }
 0x3b4   : > { %13768 = vmatprep.mubr.msk.f32.mxu0 %vm171_vm0, %v17141_v18 }
 0x3b7   : > { %13769 = vmatmul.mubr.msk.f32.gmra.mrb[8].mxu0 %vm171_vm0, %v17146_v19 }
 0x3b8   : > { %13771 = vmatprep.mubr.msk.f32.mxu0 %vm171_vm0, %v17148_v20 }
 0x3bb   : > { %13772 = vmatmul.mubr.msk.f32.gmra.mrb[10].mxu0 %vm171_vm0, %v17154_v21 }
 0x3bc   : > { %13774 = vmatprep.mubr.msk.f32.mxu0 %vm171_vm0, %v17156_v22 }
 0x3bf   : > { %13775 = vmatmul.mubr.msk.f32.gmra.mrb[12].mxu0 %vm171_vm0, %v17162_v23 }
 0x3c0   : > { %13777 = vmatprep.mubr.msk.f32.mxu0 %vm171_vm0, %v17164_v24 }
 0x3c3   : > { %13778 = vmatmul.mubr.msk.f32.gmra.mrb[14].mxu0 %vm171_vm0, %v17170_v25 }
 0x3c4   : > { %13780 = vmatprep.mubr.msk.f32.mxu0 %vm171_vm0, %v17172_v26 }
 0x3c7   : > { %13781 = vmatmul.mubr.msk.f32.gmra.mrb[16].mxu0 %vm171_vm0, %v17178_v27 }
 0x3c8   : > { %13783 = vmatprep.mubr.msk.f32.mxu0 %vm171_vm0, %v17180_v28 }
 0x3cb   : > { %13784 = vmatmul.mubr.msk.f32.gmra.mrb[18].mxu0 %vm171_vm0, %v17186_v29 }
 0x3cc   : > { %13786 = vmatprep.mubr.msk.f32.mxu0 %vm171_vm0, %v17188_v30 }
 0x3cf   : > { %13787 = vmatmul.mubr.msk.f32.gmra.mrb[20].mxu0 %vm171_vm0, %v17194_v31 }
 0x3d0   : > { %13789 = vmatprep.mubr.msk.f32.mxu0 %vm171_vm0, %v17196_v32 }
 0x3d3   : > { %13790 = vmatmul.mubr.msk.f32.gmra.mrb[22].mxu0 %vm171_vm0, %v17202_v33 }
 0x3d4   : > { %13792 = vmatprep.mubr.msk.f32.mxu0 %vm171_vm0, %v17204_v34 }
 0x3d7   : > { %13793 = vmatmul.mubr.msk.f32.gmra.mrb[24].mxu0 %vm171_vm0, %v17210_v35 }
 0x3d8   : > { %13795 = vmatprep.mubr.msk.f32.mxu0 %vm171_vm0, %v17212_v36 }
 0x3db   : > { %13796 = vmatmul.mubr.msk.f32.gmra.mrb[26].mxu0 %vm171_vm0, %v17218_v37 }
 0x3dc   : > { %13798 = vmatprep.mubr.msk.f32.mxu0 %vm171_vm0, %v17220_v38 }
 0x3df   : > { %13799 = vmatmul.mubr.msk.f32.gmra.mrb[28].mxu0 %vm171_vm0, %v17226_v39 }
 0x3e0   : > { %13801 = vmatprep.mubr.msk.f32.mxu0 %vm171_vm0, %v17228_v40 }
 0x3e3   : > { %13802 = vmatmul.mubr.msk.f32.gmra.mrb[30].mxu0 %vm171_vm0, %v4495_v41 }
 0x3e4   : > { %13806 = vmatprep.mubr.msk.f32.mxu0 %vm171_vm0, %v4468_v14 }
 0x3e7   : > { %13807 = vmatmul.mubr.msk.f32.vlgmr.msra.gmra.mrb[0].mxu0 %vm171_vm0, %v4469_v15 }
 0x3e8   : > { %13855 = vmatpush3.msra.mxu0 %v17132_v12  ;;  %13809 = vmatprep.mubr.msk.f32.mxu0 %vm171_vm0, %v4470_v16 }
 0x3eb   : > { %13810 = vmatmul.mubr.msk.f32.gmra.mrb[2].mxu0 %vm171_vm0, %v4471_v17 }
 0x3ec   : > { %13812 = vmatprep.mubr.msk.f32.mxu0 %vm171_vm0, %v17141_v18 }
 0x3ef   : > { %13813 = vmatmul.mubr.msk.f32.gmra.mrb[4].mxu0 %vm171_vm0, %v17146_v19 }
 0x3f0   : > { %13815 = vmatprep.mubr.msk.f32.mxu0 %vm171_vm0, %v17148_v20 }
 0x3f3   : > { %13816 = vmatmul.mubr.msk.f32.gmra.mrb[6].mxu0 %vm171_vm0, %v17154_v21 }
 0x3f4   : > { %13818 = vmatprep.mubr.msk.f32.mxu0 %vm171_vm0, %v17156_v22 }
 0x3f7   : > { %13819 = vmatmul.mubr.msk.f32.gmra.mrb[8].mxu0 %vm171_vm0, %v17162_v23 }
 0x3f8   : > { %13821 = vmatprep.mubr.msk.f32.mxu0 %vm171_vm0, %v17164_v24 }
 0x3fb   : > { %13822 = vmatmul.mubr.msk.f32.gmra.mrb[10].mxu0 %vm171_vm0, %v17170_v25 }
 0x3fc   : > { %13824 = vmatprep.mubr.msk.f32.mxu0 %vm171_vm0, %v17172_v26 }
 0x3ff   : > { %13825 = vmatmul.mubr.msk.f32.gmra.mrb[12].mxu0 %vm171_vm0, %v17178_v27 }
 0x400   : > { %13827 = vmatprep.mubr.msk.f32.mxu0 %vm171_vm0, %v17180_v28 }
 0x403   : > { %13828 = vmatmul.mubr.msk.f32.gmra.mrb[14].mxu0 %vm171_vm0, %v17186_v29 }
 0x404   : > { %13830 = vmatprep.mubr.msk.f32.mxu0 %vm171_vm0, %v17188_v30 }
 0x407   : > { %13831 = vmatmul.mubr.msk.f32.gmra.mrb[16].mxu0 %vm171_vm0, %v17194_v31 }
 0x408   : > { %13833 = vmatprep.mubr.msk.f32.mxu0 %vm171_vm0, %v17196_v32 }
 0x40b   : > { %13834 = vmatmul.mubr.msk.f32.gmra.mrb[18].mxu0 %vm171_vm0, %v17202_v33 }
 0x40c   : > { %13836 = vmatprep.mubr.msk.f32.mxu0 %vm171_vm0, %v17204_v34 }
 0x40f   : > { %13837 = vmatmul.mubr.msk.f32.gmra.mrb[20].mxu0 %vm171_vm0, %v17210_v35 }
 0x410   : > { %13839 = vmatprep.mubr.msk.f32.mxu0 %vm171_vm0, %v17212_v36 }
 0x413   : > { %13840 = vmatmul.mubr.msk.f32.gmra.mrb[22].mxu0 %vm171_vm0, %v17218_v37 }
 0x414   : > { %13842 = vmatprep.mubr.msk.f32.mxu0 %vm171_vm0, %v17220_v38 }
 0x417   : > { %13843 = vmatmul.mubr.msk.f32.gmra.mrb[24].mxu0 %vm171_vm0, %v17226_v39 }
 0x418   : > { %13845 = vmatprep.mubr.msk.f32.mxu0 %vm171_vm0, %v17228_v40 }
 0x41b   : > { %13846 = vmatmul.mubr.msk.f32.gmra.mrb[26].mxu0 %vm171_vm0, %v4495_v41 }
 0x41c   : > { %13848 = vmatprep.mubr.msk.f32.mxu0 %vm171_vm0, %v4496_v42 }
 0x41f   : > { %13849 = vmatmul.mubr.msk.f32.gmra.mrb[28].mxu0 %vm171_vm0, %v4497_v43 }
 0x420   : > { %13851 = vmatprep.mubr.msk.f32.mxu0 %vm171_vm0, %v4498_v44 }
 0x423   : > { %13852 = vmatmul.mubr.msk.f32.gmra.mrb[30].mxu0 %vm171_vm0, %v4499_v45 }
 0x424   : > { %13856 = vmatprep.mubr.msk.f32.mxu0 %vm171_vm0, %v17141_v18 }
 0x427   : > { %13857 = vmatmul.mubr.msk.f32.vlgmr.msra.gmra.mrb[0].mxu0 %vm171_vm0, %v17146_v19 }
 0x428   : > { %13859 = vmatprep.mubr.msk.f32.mxu0 %vm171_vm0, %v17148_v20 }
 0x42b   : > { %13860 = vmatmul.mubr.msk.f32.gmra.mrb[2].mxu0 %vm171_vm0, %v17154_v21 }
 0x42c   : > { %13862 = vmatprep.mubr.msk.f32.mxu0 %vm171_vm0, %v17156_v22 }
 0x42f   : > { %13863 = vmatmul.mubr.msk.f32.gmra.mrb[4].mxu0 %vm171_vm0, %v17162_v23 }
 0x430   : > { %13865 = vmatprep.mubr.msk.f32.mxu0 %vm171_vm0, %v17164_v24 }
 0x433   : > { %13866 = vmatmul.mubr.msk.f32.gmra.mrb[6].mxu0 %vm171_vm0, %v17170_v25 }
 0x434   : > { %13868 = vmatprep.mubr.msk.f32.mxu0 %vm171_vm0, %v17172_v26 }
 0x437   : > { %13869 = vmatmul.mubr.msk.f32.gmra.mrb[8].mxu0 %vm171_vm0, %v17178_v27 }
 0x438   : > { %13871 = vmatprep.mubr.msk.f32.mxu0 %vm171_vm0, %v17180_v28 }
 0x43b   : > { %13872 = vmatmul.mubr.msk.f32.gmra.mrb[10].mxu0 %vm171_vm0, %v17186_v29 }
 0x43c   : > { %13874 = vmatprep.mubr.msk.f32.mxu0 %vm171_vm0, %v17188_v30 }
 0x43f   : > { %13875 = vmatmul.mubr.msk.f32.gmra.mrb[12].mxu0 %vm171_vm0, %v17194_v31 }
 0x440   : > { %13877 = vmatprep.mubr.msk.f32.mxu0 %vm171_vm0, %v17196_v32 }
 0x443   : > { %13878 = vmatmul.mubr.msk.f32.gmra.mrb[14].mxu0 %vm171_vm0, %v17202_v33 }
 0x444   : > { %13880 = vmatprep.mubr.msk.f32.mxu0 %vm171_vm0, %v17204_v34 }
 0x447   : > { %13881 = vmatmul.mubr.msk.f32.gmra.mrb[16].mxu0 %vm171_vm0, %v17210_v35 }
 0x448   : > { %13883 = vmatprep.mubr.msk.f32.mxu0 %vm171_vm0, %v17212_v36 }
 0x44b   : > { %13884 = vmatmul.mubr.msk.f32.gmra.mrb[18].mxu0 %vm171_vm0, %v17218_v37 }
 0x44c   : > { %13886 = vmatprep.mubr.msk.f32.mxu0 %vm171_vm0, %v17220_v38 }
 0x44f   : > { %13887 = vmatmul.mubr.msk.f32.gmra.mrb[20].mxu0 %vm171_vm0, %v17226_v39 }
 0x450   : > { %13889 = vmatprep.mubr.msk.f32.mxu0 %vm171_vm0, %v17228_v40 }
 0x453   : > { %13890 = vmatmul.mubr.msk.f32.gmra.mrb[22].mxu0 %vm171_vm0, %v4495_v41 }
 0x454   : > { %13892 = vmatprep.mubr.msk.f32.mxu0 %vm171_vm0, %v4496_v42 }
 0x457   : > { %13893 = vmatmul.mubr.msk.f32.gmra.mrb[24].mxu0 %vm171_vm0, %v4497_v43 }
 0x458   : > { %13895 = vmatprep.mubr.msk.f32.mxu0 %vm171_vm0, %v4498_v44 }
 0x45b   : > { %13896 = vmatmul.mubr.msk.f32.gmra.mrb[26].mxu0 %vm171_vm0, %v4499_v45 }
 0x45c   : > { %13898 = vmatprep.mubr.msk.f32.mxu0 %vm171_vm0, %v4500_v46 }
 0x45f   : > { %13899 = vmatmul.mubr.msk.f32.gmra.mrb[28].mxu0 %vm171_vm0, %v4501_v47 }
 0x460   : > { %13901 = vmatprep.mubr.msk.f32.mxu0 %vm171_vm0, %v4502_v48 }
 0x463   : > { %13902 = vmatmul.mubr.msk.f32.gmra.mrb[30].mxu0 %vm171_vm0, %v4503_v49 }
 0x4fa   : > { %v13858_v53 = vpop.f32.mrb[0].mxu0 }
 0x4fb   : > { %v5402_v54 = vadd.f32 %v13858_v53, %v17355_v52  ;;  %v5204_v55 = vpop.f32.mrb[1].mxu0 }
 0x4fc   : > { %v5401_v56 = vadd.f32 %v17355_v52, %v5204_v55 }
 0x4fd   : > { %v5434_v57 = vmax.f32 %v5402_v54, 0.0 }
 0x4fe   : > { %v5433_v58 = vmax.f32 %v5401_v56, 0.0  ;;  %v13861_v59 = vpop.f32.mrb[2].mxu0 }
 0x4ff   : > { %5466 = vst.msk [vmem:[#allocation2 + $0x50] sm:$0xff] %vm171_vm0, %v5434_v57  ;;  %v5404_v60 = vadd.f32 %v13861_v59, %v17355_v52  ;;  %v5214_v61 = vpop.f32.mrb[3].mxu0 }
 0x500   : > { %5465 = vst.msk [vmem:[#allocation2 + $0x48] sm:$0xff] %vm171_vm0, %v5433_v58  ;;  %v5403_v62 = vadd.f32 %v17355_v52, %v5214_v61 }
 0x501   : > { %v5436_v63 = vmax.f32 %v5404_v60, 0.0 }
 0x502   : > { %v5435_v0 = vmax.f32 %v5403_v62, 0.0  ;;  %v13864_v1 = vpop.f32.mrb[4].mxu0 }
 0x503   : > { %5468 = vst.msk [vmem:[#allocation2 + $0x70] sm:$0xff] %vm171_vm0, %v5436_v63  ;;  %v5406_v2 = vadd.f32 %v13864_v1, %v17355_v52  ;;  %v5224_v3 = vpop.f32.mrb[5].mxu0 }
 0x504   : > { %5467 = vst.msk [vmem:[#allocation2 + $0x68] sm:$0xff] %vm171_vm0, %v5435_v0  ;;  %v5405_v4 = vadd.f32 %v17355_v52, %v5224_v3 }
 0x505   : > { %v5438_v5 = vmax.f32 %v5406_v2, 0.0 }
 0x506   : > { %v5437_v6 = vmax.f32 %v5405_v4, 0.0  ;;  %v13867_v7 = vpop.f32.mrb[6].mxu0 }
 0x507   : > { %5470 = vst.msk [vmem:[#allocation2 + $0x90] sm:$0xff] %vm171_vm0, %v5438_v5  ;;  %v5408_v8 = vadd.f32 %v13867_v7, %v17355_v52  ;;  %v5234_v9 = vpop.f32.mrb[7].mxu0  ;;  %v17369_v10 = vld [vmem:[#allocation2 + $0x46] sm:$0xff]  ;;  %v17371_v11 = vld [vmem:[#allocation2 + $0x4e] sm:$0xff] }
 0x508   : > { %5469 = vst.msk [vmem:[#allocation2 + $0x88] sm:$0xff] %vm171_vm0, %v5437_v6  ;;  %v5407_v12 = vadd.f32 %v17355_v52, %v5234_v9  ;;  %13906 = vmatprep.mubr.msk.f32.mxu1 %vm171_vm0, %v17369_v10 }
 0x509   : > { %v5440_v14 = vmax.f32 %v5408_v8, 0.0  ;;  %13907 = vmatmul.mubr.msk.f32.vlgmr.msra.gmra.mrb[0].mxu1 %vm171_vm0, %v17371_v11 }
 0x50a   : > { %v5439_v15 = vmax.f32 %v5407_v12, 0.0  ;;  %13955 = vmatpush3.msra.mxu1 %v11366_v51  ;;  %v13870_v16 = vpop.f32.mrb[8].mxu0 }
 0x50b   : > { %5472 = vst.msk [vmem:[#allocation2 + $0xb0] sm:$0xff] %vm171_vm0, %v5440_v14  ;;  %v5410_v17 = vadd.f32 %v13870_v16, %v17355_v52  ;;  %v5244_v18 = vpop.f32.mrb[9].mxu0  ;;  %v17386_v19 = vld [vmem:[#allocation2 + $0x66] sm:$0xff]  ;;  %v17388_v20 = vld [vmem:[#allocation2 + $0x6e] sm:$0xff]  ;;  %14004 = vmatprep.subr.mxu1 %v17380_v13 }
 0x50c   : > { %5471 = vst.msk [vmem:[#allocation2 + $0xa8] sm:$0xff] %vm171_vm0, %v5439_v15  ;;  %v5409_v21 = vadd.f32 %v17355_v52, %v5244_v18  ;;  %13909 = vmatprep.mubr.msk.f32.mxu1 %vm171_vm0, %v17386_v19 }
 0x50d   : > { %v5442_v22 = vmax.f32 %v5410_v17, 0.0  ;;  %13910 = vmatmul.mubr.msk.f32.gmra.mrb[2].mxu1 %vm171_vm0, %v17388_v20 }
 0x50e   : > { %v5441_v23 = vmax.f32 %v5409_v21, 0.0  ;;  %v13873_v24 = vpop.f32.mrb[10].mxu0 }
 0x50f   : > { %5474 = vst.msk [vmem:[#allocation2 + $0xd0] sm:$0xff] %vm171_vm0, %v5442_v22  ;;  %v5412_v25 = vadd.f32 %v13873_v24, %v17355_v52  ;;  %v5254_v26 = vpop.f32.mrb[11].mxu0  ;;  %v17399_v27 = vld [vmem:[#allocation2 + $0x86] sm:$0xff]  ;;  %v17401_v28 = vld [vmem:[#allocation2 + $0x8e] sm:$0xff] }
 0x510   : > { %5473 = vst.msk [vmem:[#allocation2 + $0xc8] sm:$0xff] %vm171_vm0, %v5441_v23  ;;  %v5411_v29 = vadd.f32 %v17355_v52, %v5254_v26  ;;  %13912 = vmatprep.mubr.msk.f32.mxu1 %vm171_vm0, %v17399_v27 }
 0x511   : > { %v5444_v30 = vmax.f32 %v5412_v25, 0.0  ;;  %13913 = vmatmul.mubr.msk.f32.gmra.mrb[4].mxu1 %vm171_vm0, %v17401_v28 }
 0x512   : > { %v5443_v31 = vmax.f32 %v5411_v29, 0.0  ;;  %v13876_v32 = vpop.f32.mrb[12].mxu0 }
 0x513   : > { %5476 = vst.msk [vmem:[#allocation2 + $0xf0] sm:$0xff] %vm171_vm0, %v5444_v30  ;;  %v5414_v33 = vadd.f32 %v13876_v32, %v17355_v52  ;;  %v5264_v34 = vpop.f32.mrb[13].mxu0  ;;  %v17411_v35 = vld [vmem:[#allocation2 + $0xa6] sm:$0xff]  ;;  %v17413_v36 = vld [vmem:[#allocation2 + $0xae] sm:$0xff] }
 0x514   : > { %5475 = vst.msk [vmem:[#allocation2 + $0xe8] sm:$0xff] %vm171_vm0, %v5443_v31  ;;  %v5413_v37 = vadd.f32 %v17355_v52, %v5264_v34  ;;  %13915 = vmatprep.mubr.msk.f32.mxu1 %vm171_vm0, %v17411_v35 }
 0x515   : > { %v5446_v38 = vmax.f32 %v5414_v33, 0.0  ;;  %13916 = vmatmul.mubr.msk.f32.gmra.mrb[6].mxu1 %vm171_vm0, %v17413_v36 }
 0x516   : > { %v5445_v39 = vmax.f32 %v5413_v37, 0.0  ;;  %v13879_v40 = vpop.f32.mrb[14].mxu0 }
 0x517   : > { %5478 = vst.msk [vmem:[#allocation2 + $0x110] sm:$0xff] %vm171_vm0, %v5446_v38  ;;  %v5416_v41 = vadd.f32 %v13879_v40, %v17355_v52  ;;  %v5274_v42 = vpop.f32.mrb[15].mxu0  ;;  %v17423_v43 = vld [vmem:[#allocation2 + $0xc6] sm:$0xff]  ;;  %v17425_v44 = vld [vmem:[#allocation2 + $0xce] sm:$0xff] }
 0x518   : > { %5477 = vst.msk [vmem:[#allocation2 + $0x108] sm:$0xff] %vm171_vm0, %v5445_v39  ;;  %v5415_v45 = vadd.f32 %v17355_v52, %v5274_v42  ;;  %13918 = vmatprep.mubr.msk.f32.mxu1 %vm171_vm0, %v17423_v43 }
 0x519   : > { %v5448_v46 = vmax.f32 %v5416_v41, 0.0  ;;  %13919 = vmatmul.mubr.msk.f32.gmra.mrb[8].mxu1 %vm171_vm0, %v17425_v44 }
 0x51a   : > { %v5447_v47 = vmax.f32 %v5415_v45, 0.0  ;;  %v13882_v48 = vpop.f32.mrb[16].mxu0 }
 0x51b   : > { %5480 = vst.msk [vmem:[#allocation2 + $0x130] sm:$0xff] %vm171_vm0, %v5448_v46  ;;  %v5418_v49 = vadd.f32 %v13882_v48, %v17355_v52  ;;  %v5284_v50 = vpop.f32.mrb[17].mxu0  ;;  %v17435_v51 = vld [vmem:[#allocation2 + $0xe6] sm:$0xff]  ;;  %v17437_v53 = vld [vmem:[#allocation2 + $0xee] sm:$0xff] }
 0x51c   : > { %5479 = vst.msk [vmem:[#allocation2 + $0x128] sm:$0xff] %vm171_vm0, %v5447_v47  ;;  %v5417_v54 = vadd.f32 %v17355_v52, %v5284_v50  ;;  %13921 = vmatprep.mubr.msk.f32.mxu1 %vm171_vm0, %v17435_v51 }
 0x51d   : > { %v5450_v55 = vmax.f32 %v5418_v49, 0.0  ;;  %13922 = vmatmul.mubr.msk.f32.gmra.mrb[10].mxu1 %vm171_vm0, %v17437_v53 }
 0x51e   : > { %v5449_v56 = vmax.f32 %v5417_v54, 0.0  ;;  %v13885_v57 = vpop.f32.mrb[18].mxu0 }
 0x51f   : > { %5482 = vst.msk [vmem:[#allocation2 + $0x150] sm:$0xff] %vm171_vm0, %v5450_v55  ;;  %v5420_v58 = vadd.f32 %v13885_v57, %v17355_v52  ;;  %v5294_v59 = vpop.f32.mrb[19].mxu0  ;;  %v17447_v60 = vld [vmem:[#allocation2 + $0x106] sm:$0xff]  ;;  %v17449_v61 = vld [vmem:[#allocation2 + $0x10e] sm:$0xff] }
 0x520   : > { %5481 = vst.msk [vmem:[#allocation2 + $0x148] sm:$0xff] %vm171_vm0, %v5449_v56  ;;  %v5419_v62 = vadd.f32 %v17355_v52, %v5294_v59  ;;  %13924 = vmatprep.mubr.msk.f32.mxu1 %vm171_vm0, %v17447_v60 }
 0x521   : > { %v5452_v63 = vmax.f32 %v5420_v58, 0.0  ;;  %13925 = vmatmul.mubr.msk.f32.gmra.mrb[12].mxu1 %vm171_vm0, %v17449_v61 }
 0x522   : > { %v5451_v0 = vmax.f32 %v5419_v62, 0.0  ;;  %v13888_v1 = vpop.f32.mrb[20].mxu0 }
 0x523   : > { %5484 = vst.msk [vmem:[#allocation2 + $0x170] sm:$0xff] %vm171_vm0, %v5452_v63  ;;  %v5422_v2 = vadd.f32 %v13888_v1, %v17355_v52  ;;  %v5304_v3 = vpop.f32.mrb[21].mxu0  ;;  %v17459_v4 = vld [vmem:[#allocation2 + $0x126] sm:$0xff]  ;;  %v17461_v5 = vld [vmem:[#allocation2 + $0x12e] sm:$0xff] }
 0x524   : > { %5483 = vst.msk [vmem:[#allocation2 + $0x168] sm:$0xff] %vm171_vm0, %v5451_v0  ;;  %v5421_v6 = vadd.f32 %v17355_v52, %v5304_v3  ;;  %13927 = vmatprep.mubr.msk.f32.mxu1 %vm171_vm0, %v17459_v4 }
 0x525   : > { %v5454_v7 = vmax.f32 %v5422_v2, 0.0  ;;  %13928 = vmatmul.mubr.msk.f32.gmra.mrb[14].mxu1 %vm171_vm0, %v17461_v5 }
 0x526   : > { %v5453_v8 = vmax.f32 %v5421_v6, 0.0  ;;  %v13891_v9 = vpop.f32.mrb[22].mxu0 }
 0x527   : > { %5486 = vst.msk [vmem:[#allocation2 + $0x190] sm:$0xff] %vm171_vm0, %v5454_v7  ;;  %v5424_v12 = vadd.f32 %v13891_v9, %v17355_v52  ;;  %v5314_v14 = vpop.f32.mrb[23].mxu0  ;;  %v17471_v15 = vld [vmem:[#allocation2 + $0x146] sm:$0xff]  ;;  %v17473_v16 = vld [vmem:[#allocation2 + $0x14e] sm:$0xff] }
 0x528   : > { %5485 = vst.msk [vmem:[#allocation2 + $0x188] sm:$0xff] %vm171_vm0, %v5453_v8  ;;  %v5423_v17 = vadd.f32 %v17355_v52, %v5314_v14  ;;  %13930 = vmatprep.mubr.msk.f32.mxu1 %vm171_vm0, %v17471_v15  ;;  %v5533_v8 = vld [vmem:[#allocation2 + $0x6] sm:$0xff]  ;;  %v5534_v9 = vld [vmem:[#allocation2 + $0xe] sm:$0xff] }
 0x529   : > { %v5456_v18 = vmax.f32 %v5424_v12, 0.0  ;;  %13931 = vmatmul.mubr.msk.f32.gmra.mrb[16].mxu1 %vm171_vm0, %v17473_v16  ;;  %v5535_v12 = vld [vmem:[#allocation2 + $0x26] sm:$0xff] }
 0x52a   : > { %v5455_v21 = vmax.f32 %v5423_v17, 0.0  ;;  %v13894_v22 = vpop.f32.mrb[24].mxu0  ;;  %v11369_v14 = vld [vmem:[%s18937_s1 + $0xa0] sm:$0xff]  ;;  %v5536_v17 = vld [vmem:[#allocation2 + $0x2e] sm:$0xff] }
 0x52b   : > { %5488 = vst.msk [vmem:[#allocation2 + $0x1b0] sm:$0xff] %vm171_vm0, %v5456_v18  ;;  %v5426_v23 = vadd.f32 %v13894_v22, %v17355_v52  ;;  %v5324_v24 = vpop.f32.mrb[25].mxu0  ;;  %v17483_v25 = vld [vmem:[#allocation2 + $0x166] sm:$0xff]  ;;  %v17485_v26 = vld [vmem:[#allocation2 + $0x16e] sm:$0xff] }
 0x52c   : > { %5487 = vst.msk [vmem:[#allocation2 + $0x1a8] sm:$0xff] %vm171_vm0, %v5455_v21  ;;  %v5425_v29 = vadd.f32 %v17355_v52, %v5324_v24  ;;  %13933 = vmatprep.mubr.msk.f32.mxu1 %vm171_vm0, %v17483_v25  ;;  %v17728_v18 = vld [vmem:[#allocation2 + $0xef] sm:$0xff]  ;;  %v17732_v21 = vld [vmem:[#allocation2 + $0x107] sm:$0xff] }
 0x52d   : > { %v5458_v30 = vmax.f32 %v5426_v23, 0.0  ;;  %13934 = vmatmul.mubr.msk.f32.gmra.mrb[18].mxu1 %vm171_vm0, %v17485_v26  ;;  %v17736_v22 = vld [vmem:[#allocation2 + $0x10f] sm:$0xff]  ;;  %v17740_v23 = vld [vmem:[#allocation2 + $0x127] sm:$0xff] }
 0x52e   : > { %v5457_v31 = vmax.f32 %v5425_v29, 0.0  ;;  %v13897_v32 = vpop.f32.mrb[26].mxu0  ;;  %v17744_v24 = vld [vmem:[#allocation2 + $0x12f] sm:$0xff]  ;;  %v17756_v29 = vld [vmem:[#allocation2 + $0x167] sm:$0xff] }
 0x52f   : > { %5490 = vst.msk [vmem:[#allocation2 + $0x1d0] sm:$0xff] %vm171_vm0, %v5458_v30  ;;  %v5428_v33 = vadd.f32 %v13897_v32, %v17355_v52  ;;  %v5334_v34 = vpop.f32.mrb[27].mxu0  ;;  %v17495_v37 = vld [vmem:[#allocation2 + $0x186] sm:$0xff]  ;;  %v17497_v38 = vld [vmem:[#allocation2 + $0x18e] sm:$0xff] }
 0x530   : > { %5489 = vst.msk [vmem:[#allocation2 + $0x1c8] sm:$0xff] %vm171_vm0, %v5457_v31  ;;  %v5427_v39 = vadd.f32 %v17355_v52, %v5334_v34  ;;  %13936 = vmatprep.mubr.msk.f32.mxu1 %vm171_vm0, %v17495_v37  ;;  %v17760_v30 = vld [vmem:[#allocation2 + $0x16f] sm:$0xff]  ;;  %v17764_v31 = vld [vmem:[#allocation2 + $0x187] sm:$0xff] }
 0x531   : > { %v5460_v40 = vmax.f32 %v5428_v33, 0.0  ;;  %13937 = vmatmul.mubr.msk.f32.gmra.mrb[20].mxu1 %vm171_vm0, %v17497_v38  ;;  %v17768_v32 = vld [vmem:[#allocation2 + $0x18f] sm:$0xff] }
 0x532   : > { %v5459_v41 = vmax.f32 %v5427_v39, 0.0  ;;  %v13900_v42 = vpop.f32.mrb[28].mxu0 }
 0x533   : > { %5492 = vst.msk [vmem:[#allocation2 + $0x1f0] sm:$0xff] %vm171_vm0, %v5460_v40  ;;  %v5430_v45 = vadd.f32 %v13900_v42, %v17355_v52  ;;  %v5344_v46 = vpop.f32.mrb[29].mxu0  ;;  %v17507_v47 = vld [vmem:[#allocation2 + $0x1a6] sm:$0xff]  ;;  %v17509_v48 = vld [vmem:[#allocation2 + $0x1ae] sm:$0xff] }
 0x534   : > { %5491 = vst.msk [vmem:[#allocation2 + $0x1e8] sm:$0xff] %vm171_vm0, %v5459_v41  ;;  %v5429_v49 = vadd.f32 %v17355_v52, %v5344_v46  ;;  %13939 = vmatprep.mubr.msk.f32.mxu1 %vm171_vm0, %v17507_v47  ;;  %v17772_v33 = vld [vmem:[#allocation2 + $0x1a7] sm:$0xff]  ;;  %v17776_v34 = vld [vmem:[#allocation2 + $0x1af] sm:$0xff] }
 0x535   : > { %v5462_v50 = vmax.f32 %v5430_v45, 0.0  ;;  %13940 = vmatmul.mubr.msk.f32.gmra.mrb[22].mxu1 %vm171_vm0, %v17509_v48  ;;  %v11372_v45 = vld [vmem:[%s18937_s1 + $0xb8] sm:$0xff] }
 0x536   : > { %v5461_v54 = vmax.f32 %v5429_v49, 0.0  ;;  %v13903_v55 = vpop.f32.mrb[30].mxu0  ;;  %v6434_v49 = vld [vmem:[#allocation2 + $0x247] sm:$0xff] }
 0x537   : > { %5494 = vst.msk [vmem:[#allocation2 + $0x210] sm:$0xff] %vm171_vm0, %v5462_v50  ;;  %v5432_v56 = vadd.f32 %v13903_v55, %v17355_v52  ;;  %v5354_v57 = vpop.f32.mrb[31].mxu0  ;;  %v17519_v58 = vld [vmem:[#allocation2 + $0x1c6] sm:$0xff]  ;;  %v17521_v59 = vld [vmem:[#allocation2 + $0x1ce] sm:$0xff] }
 0x538   : > { %5493 = vst.msk [vmem:[#allocation2 + $0x208] sm:$0xff] %vm171_vm0, %v5461_v54  ;;  %v5431_v62 = vadd.f32 %v17355_v52, %v5354_v57  ;;  %13942 = vmatprep.mubr.msk.f32.mxu1 %vm171_vm0, %v17519_v58  ;;  %v6435_v50 = vld [vmem:[#allocation2 + $0x24f] sm:$0xff] }
 0x539   : > { %v5464_v63 = vmax.f32 %v5432_v56, 0.0  ;;  %13943 = vmatmul.mubr.msk.f32.gmra.mrb[24].mxu1 %vm171_vm0, %v17521_v59  ;;  %v7315_v54 = vld [vmem:[#allocation2 + $0x8] sm:$0xff]  ;;  %v7316_v55 = vld [vmem:[#allocation2 + $0x10] sm:$0xff] }
 0x53a   : > { %v5463_v0 = vmax.f32 %v5431_v62, 0.0  ;;  %v17932_v56 = vld [vmem:[#allocation2 + $0x28] sm:$0xff]  ;;  %v17948_v62 = vld [vmem:[#allocation2 + $0x50] sm:$0xff] }
 0x53b   : > { %5496 = vst.msk [vmem:[#allocation2 + $0x230] sm:$0xff] %vm171_vm0, %v5464_v63  ;;  %v17530_v1 = vld [vmem:[#allocation2 + $0x1e6] sm:$0xff]  ;;  %v17532_v2 = vld [vmem:[#allocation2 + $0x1ee] sm:$0xff] }
 0x53c   : > { %5495 = vst.msk [vmem:[#allocation2 + $0x228] sm:$0xff] %vm171_vm0, %v5463_v0  ;;  %13945 = vmatprep.mubr.msk.f32.mxu1 %vm171_vm0, %v17530_v1  ;;  %v17788_v39 = vld [vmem:[#allocation2 + $0x1e7] sm:$0xff]  ;;  %v17792_v40 = vld [vmem:[#allocation2 + $0x1ef] sm:$0xff] }
 0x53d   : > { %13946 = vmatmul.mubr.msk.f32.gmra.mrb[26].mxu1 %vm171_vm0, %v17532_v2  ;;  %v17937_v57 = vld [vmem:[%s18937_s1 + $0xc8] sm:$0xff]  ;;  %v17956_v0 = vld [vmem:[#allocation2 + $0x70] sm:$0xff] }
 0x53e   : > { %v17952_v63 = vld [vmem:[#allocation2 + $0x68] sm:$0xff] }
 0x53f   : > { %v17539_v52 = vld [vmem:[#allocation2 + $0x206] sm:$0xff]  ;;  %v17541_v3 = vld [vmem:[#allocation2 + $0x20e] sm:$0xff] }
 0x540   : > { %13948 = vmatprep.mubr.msk.f32.mxu1 %vm171_vm0, %v17539_v52  ;;  %v17796_v41 = vld [vmem:[#allocation2 + $0x207] sm:$0xff]  ;;  %v17800_v42 = vld [vmem:[#allocation2 + $0x20f] sm:$0xff] }
 0x541   : > { %13949 = vmatmul.mubr.msk.f32.gmra.mrb[28].mxu1 %vm171_vm0, %v17541_v3 }
 0x543   : > { %v17547_v6 = vld [vmem:[#allocation2 + $0x226] sm:$0xff]  ;;  %v17549_v7 = vld [vmem:[#allocation2 + $0x22e] sm:$0xff] }
 0x544   : > { %13951 = vmatprep.mubr.msk.f32.mxu1 %vm171_vm0, %v17547_v6  ;;  %v6432_v46 = vld [vmem:[#allocation2 + $0x227] sm:$0xff] }
 0x545   : > { %13952 = vmatmul.mubr.msk.f32.gmra.mrb[30].mxu1 %vm171_vm0, %v17549_v7 }
 0x546   : > { %13956 = vmatprep.mubr.msk.f32.mxu1 %vm171_vm0, %v5533_v8  ;;  %v17984_v8 = vld [vmem:[#allocation2 + $0xe8] sm:$0xff] }
 0x549   : > { %13957 = vmatmul.mubr.msk.f32.vlgmr.msra.gmra.mrb[0].mxu1 %vm171_vm0, %v5534_v9  ;;  %v17988_v9 = vld [vmem:[#allocation2 + $0xf0] sm:$0xff] }
 0x54a   : > { %14005 = vmatpush3.msra.mxu1 %v17380_v13  ;;  %13959 = vmatprep.mubr.msk.f32.mxu1 %vm171_vm0, %v5535_v12  ;;  %v5570_v13 = vld [vmem:[#allocation2 + $0x24e] sm:$0xff] }
 0x54b   : > { %14054 = vmatprep.subr.mxu1 %v11369_v14  ;;  %v17992_v12 = vld [vmem:[#allocation2 + $0x108] sm:$0xff] }
 0x54d   : > { %13960 = vmatmul.mubr.msk.f32.gmra.mrb[2].mxu1 %vm171_vm0, %v5536_v17  ;;  %v18000_v17 = vld [vmem:[#allocation2 + $0x128] sm:$0xff] }
 0x54e   : > { %13962 = vmatprep.mubr.msk.f32.mxu1 %vm171_vm0, %v17369_v10  ;;  %v11370_v10 = vld [vmem:[%s18937_s1 + $0xa8] sm:$0xff] }
 0x551   : > { %13963 = vmatmul.mubr.msk.f32.gmra.mrb[4].mxu1 %vm171_vm0, %v17371_v11  ;;  %v5569_v11 = vld [vmem:[#allocation2 + $0x246] sm:$0xff] }
 0x552   : > { %13965 = vmatprep.mubr.msk.f32.mxu1 %vm171_vm0, %v17386_v19  ;;  %v5571_v19 = vld [vmem:[#allocation2 + $0x266] sm:$0xff] }
 0x555   : > { %13966 = vmatmul.mubr.msk.f32.gmra.mrb[6].mxu1 %vm171_vm0, %v17388_v20  ;;  %v5572_v20 = vld [vmem:[#allocation2 + $0x26e] sm:$0xff] }
 0x556   : > { %13968 = vmatprep.mubr.msk.f32.mxu1 %vm171_vm0, %v17399_v27 }
 0x559   : > { %13969 = vmatmul.mubr.msk.f32.gmra.mrb[8].mxu1 %vm171_vm0, %v17401_v28 }
 0x55a   : > { %13971 = vmatprep.mubr.msk.f32.mxu1 %vm171_vm0, %v17411_v35 }
 0x55d   : > { %13972 = vmatmul.mubr.msk.f32.gmra.mrb[10].mxu1 %vm171_vm0, %v17413_v36 }
 0x55e   : > { %13974 = vmatprep.mubr.msk.f32.mxu1 %vm171_vm0, %v17423_v43 }
 0x561   : > { %13975 = vmatmul.mubr.msk.f32.gmra.mrb[12].mxu1 %vm171_vm0, %v17425_v44 }
 0x562   : > { %13977 = vmatprep.mubr.msk.f32.mxu1 %vm171_vm0, %v17435_v51 }
 0x565   : > { %13978 = vmatmul.mubr.msk.f32.gmra.mrb[14].mxu1 %vm171_vm0, %v17437_v53 }
 0x566   : > { %13980 = vmatprep.mubr.msk.f32.mxu1 %vm171_vm0, %v17447_v60 }
 0x569   : > { %13981 = vmatmul.mubr.msk.f32.gmra.mrb[16].mxu1 %vm171_vm0, %v17449_v61 }
 0x56a   : > { %13983 = vmatprep.mubr.msk.f32.mxu1 %vm171_vm0, %v17459_v4 }
 0x56d   : > { %13984 = vmatmul.mubr.msk.f32.gmra.mrb[18].mxu1 %vm171_vm0, %v17461_v5 }
 0x56e   : > { %13986 = vmatprep.mubr.msk.f32.mxu1 %vm171_vm0, %v17471_v15 }
 0x571   : > { %13987 = vmatmul.mubr.msk.f32.gmra.mrb[20].mxu1 %vm171_vm0, %v17473_v16 }
 0x572   : > { %13989 = vmatprep.mubr.msk.f32.mxu1 %vm171_vm0, %v17483_v25 }
 0x575   : > { %13990 = vmatmul.mubr.msk.f32.gmra.mrb[22].mxu1 %vm171_vm0, %v17485_v26 }
 0x576   : > { %13992 = vmatprep.mubr.msk.f32.mxu1 %vm171_vm0, %v17495_v37 }
 0x579   : > { %13993 = vmatmul.mubr.msk.f32.gmra.mrb[24].mxu1 %vm171_vm0, %v17497_v38 }
 0x57a   : > { %13995 = vmatprep.mubr.msk.f32.mxu1 %vm171_vm0, %v17507_v47 }
 0x57d   : > { %13996 = vmatmul.mubr.msk.f32.gmra.mrb[26].mxu1 %vm171_vm0, %v17509_v48 }
 0x57e   : > { %13998 = vmatprep.mubr.msk.f32.mxu1 %vm171_vm0, %v17519_v58 }
 0x581   : > { %13999 = vmatmul.mubr.msk.f32.gmra.mrb[28].mxu1 %vm171_vm0, %v17521_v59 }
 0x582   : > { %14001 = vmatprep.mubr.msk.f32.mxu1 %vm171_vm0, %v17530_v1 }
 0x585   : > { %14002 = vmatmul.mubr.msk.f32.gmra.mrb[30].mxu1 %vm171_vm0, %v17532_v2 }
 0x586   : > { %14006 = vmatprep.mubr.msk.f32.mxu1 %vm171_vm0, %v17399_v27  ;;  %v6400_v27 = vld [vmem:[#allocation2 + $0x27] sm:$0xff] }
 0x589   : > { %14007 = vmatmul.mubr.msk.f32.vlgmr.msra.gmra.mrb[0].mxu1 %vm171_vm0, %v17401_v28  ;;  %v6401_v28 = vld [vmem:[#allocation2 + $0x2f] sm:$0xff] }
 0x58a   : > { %14055 = vmatpush3.msra.mxu1 %v11369_v14  ;;  %14009 = vmatprep.mubr.msk.f32.mxu1 %vm171_vm0, %v17411_v35  ;;  %v17686_v35 = vld [vmem:[%s18937_s1 + $0xb0] sm:$0xff] }
 0x58b   : > { %14104 = vmatprep.subr.mxu1 %v11370_v10  ;;  %v17996_v14 = vld [vmem:[#allocation2 + $0x110] sm:$0xff] }
 0x58d   : > { %14010 = vmatmul.mubr.msk.f32.gmra.mrb[2].mxu1 %vm171_vm0, %v17413_v36  ;;  %v6402_v36 = vld [vmem:[#allocation2 + $0x47] sm:$0xff] }
 0x58e   : > { %14012 = vmatprep.mubr.msk.f32.mxu1 %vm171_vm0, %v17423_v43  ;;  %v6403_v43 = vld [vmem:[#allocation2 + $0x4f] sm:$0xff] }
 0x591   : > { %14013 = vmatmul.mubr.msk.f32.gmra.mrb[4].mxu1 %vm171_vm0, %v17425_v44  ;;  %v17692_v44 = vld [vmem:[#allocation2 + $0x67] sm:$0xff] }
 0x592   : > { %14015 = vmatprep.mubr.msk.f32.mxu1 %vm171_vm0, %v17435_v51  ;;  %v17696_v51 = vld [vmem:[#allocation2 + $0x6f] sm:$0xff] }
 0x595   : > { %14016 = vmatmul.mubr.msk.f32.gmra.mrb[6].mxu1 %vm171_vm0, %v17437_v53  ;;  %v17700_v53 = vld [vmem:[#allocation2 + $0x87] sm:$0xff] }
 0x596   : > { %14018 = vmatprep.mubr.msk.f32.mxu1 %vm171_vm0, %v17447_v60  ;;  %v17704_v60 = vld [vmem:[#allocation2 + $0x8f] sm:$0xff] }
 0x599   : > { %14019 = vmatmul.mubr.msk.f32.gmra.mrb[8].mxu1 %vm171_vm0, %v17449_v61  ;;  %v17708_v61 = vld [vmem:[#allocation2 + $0xa7] sm:$0xff] }
 0x59a   : > { %14021 = vmatprep.mubr.msk.f32.mxu1 %vm171_vm0, %v17459_v4  ;;  %v17712_v4 = vld [vmem:[#allocation2 + $0xaf] sm:$0xff] }
 0x59d   : > { %14022 = vmatmul.mubr.msk.f32.gmra.mrb[10].mxu1 %vm171_vm0, %v17461_v5  ;;  %v17716_v5 = vld [vmem:[#allocation2 + $0xc7] sm:$0xff] }
 0x59e   : > { %14024 = vmatprep.mubr.msk.f32.mxu1 %vm171_vm0, %v17471_v15  ;;  %v17720_v15 = vld [vmem:[#allocation2 + $0xcf] sm:$0xff] }
 0x5a1   : > { %14025 = vmatmul.mubr.msk.f32.gmra.mrb[12].mxu1 %vm171_vm0, %v17473_v16  ;;  %v17724_v16 = vld [vmem:[#allocation2 + $0xe7] sm:$0xff] }
 0x5a2   : > { %14027 = vmatprep.mubr.msk.f32.mxu1 %vm171_vm0, %v17483_v25  ;;  %v17748_v25 = vld [vmem:[#allocation2 + $0x147] sm:$0xff] }
 0x5a5   : > { %14028 = vmatmul.mubr.msk.f32.gmra.mrb[14].mxu1 %vm171_vm0, %v17485_v26  ;;  %v17752_v26 = vld [vmem:[#allocation2 + $0x14f] sm:$0xff] }
 0x5a6   : > { %14030 = vmatprep.mubr.msk.f32.mxu1 %vm171_vm0, %v17495_v37  ;;  %v17780_v37 = vld [vmem:[#allocation2 + $0x1c7] sm:$0xff] }
 0x5a9   : > { %14031 = vmatmul.mubr.msk.f32.gmra.mrb[16].mxu1 %vm171_vm0, %v17497_v38  ;;  %v17784_v38 = vld [vmem:[#allocation2 + $0x1cf] sm:$0xff] }
 0x5aa   : > { %14033 = vmatprep.mubr.msk.f32.mxu1 %vm171_vm0, %v17507_v47  ;;  %v6433_v47 = vld [vmem:[#allocation2 + $0x22f] sm:$0xff] }
 0x5ad   : > { %14034 = vmatmul.mubr.msk.f32.gmra.mrb[18].mxu1 %vm171_vm0, %v17509_v48  ;;  %v11373_v48 = vld [vmem:[%s18937_s1 + $0xc0] sm:$0xff] }
 0x5ae   : > { %14036 = vmatprep.mubr.msk.f32.mxu1 %vm171_vm0, %v17519_v58  ;;  %v7318_v58 = vld [vmem:[#allocation2 + $0x30] sm:$0xff] }
 0x5b1   : > { %14037 = vmatmul.mubr.msk.f32.gmra.mrb[20].mxu1 %vm171_vm0, %v17521_v59  ;;  %v17944_v59 = vld [vmem:[#allocation2 + $0x48] sm:$0xff] }
 0x5b2   : > { %14039 = vmatprep.mubr.msk.f32.mxu1 %vm171_vm0, %v17530_v1  ;;  %v17960_v1 = vld [vmem:[#allocation2 + $0x88] sm:$0xff] }
 0x5b5   : > { %14040 = vmatmul.mubr.msk.f32.gmra.mrb[22].mxu1 %vm171_vm0, %v17532_v2  ;;  %v17964_v2 = vld [vmem:[#allocation2 + $0x90] sm:$0xff] }
 0x5b6   : > { %14042 = vmatprep.mubr.msk.f32.mxu1 %vm171_vm0, %v17539_v52  ;;  %v17968_v52 = vld [vmem:[#allocation2 + $0xa8] sm:$0xff] }
 0x5b9   : > { %14043 = vmatmul.mubr.msk.f32.gmra.mrb[24].mxu1 %vm171_vm0, %v17541_v3  ;;  %v17972_v3 = vld [vmem:[#allocation2 + $0xb0] sm:$0xff] }
 0x5ba   : > { %14045 = vmatprep.mubr.msk.f32.mxu1 %vm171_vm0, %v17547_v6  ;;  %v17976_v6 = vld [vmem:[#allocation2 + $0xc8] sm:$0xff] }
 0x5bd   : > { %14046 = vmatmul.mubr.msk.f32.gmra.mrb[26].mxu1 %vm171_vm0, %v17549_v7  ;;  %v17980_v7 = vld [vmem:[#allocation2 + $0xd0] sm:$0xff] }
 0x5be   : > { %14048 = vmatprep.mubr.msk.f32.mxu1 %vm171_vm0, %v5569_v11  ;;  %v18008_v11 = vld [vmem:[#allocation2 + $0x148] sm:$0xff] }
 0x5c1   : > { %14049 = vmatmul.mubr.msk.f32.gmra.mrb[28].mxu1 %vm171_vm0, %v5570_v13  ;;  %v18012_v13 = vld [vmem:[#allocation2 + $0x150] sm:$0xff] }
 0x5c2   : > { %14051 = vmatprep.mubr.msk.f32.mxu1 %vm171_vm0, %v5571_v19  ;;  %v18016_v19 = vld [vmem:[#allocation2 + $0x168] sm:$0xff] }
 0x5c5   : > { %14052 = vmatmul.mubr.msk.f32.gmra.mrb[30].mxu1 %vm171_vm0, %v5572_v20  ;;  %v18020_v20 = vld [vmem:[#allocation2 + $0x170] sm:$0xff] }
 0x5c6   : > { %14056 = vmatprep.mubr.msk.f32.mxu1 %vm171_vm0, %v6400_v27  ;;  %v18024_v27 = vld [vmem:[#allocation2 + $0x188] sm:$0xff] }
 0x5c9   : > { %14057 = vmatmul.mubr.msk.f32.vlgmr.msra.gmra.mrb[0].mxu1 %vm171_vm0, %v6401_v28  ;;  %v18028_v28 = vld [vmem:[#allocation2 + $0x190] sm:$0xff] }
 0x5ca   : > { %14105 = vmatpush3.msra.mxu1 %v11370_v10  ;;  %14059 = vmatprep.mubr.msk.f32.mxu1 %vm171_vm0, %v6402_v36  ;;  %v18004_v10 = vld [vmem:[#allocation2 + $0x130] sm:$0xff] }
 0x5cb   : > { %14154 = vmatprep.subr.mxu1 %v17686_v35 }
 0x5cd   : > { %14060 = vmatmul.mubr.msk.f32.gmra.mrb[2].mxu1 %vm171_vm0, %v6403_v43 }
 0x5ce   : > { %14062 = vmatprep.mubr.msk.f32.mxu1 %vm171_vm0, %v17692_v44 }
 0x5d1   : > { %14063 = vmatmul.mubr.msk.f32.gmra.mrb[4].mxu1 %vm171_vm0, %v17696_v51 }
 0x5d2   : > { %14065 = vmatprep.mubr.msk.f32.mxu1 %vm171_vm0, %v17700_v53 }
 0x5d5   : > { %14066 = vmatmul.mubr.msk.f32.gmra.mrb[6].mxu1 %vm171_vm0, %v17704_v60 }
 0x5d6   : > { %14068 = vmatprep.mubr.msk.f32.mxu1 %vm171_vm0, %v17708_v61 }
 0x5d9   : > { %14069 = vmatmul.mubr.msk.f32.gmra.mrb[8].mxu1 %vm171_vm0, %v17712_v4 }
 0x5da   : > { %14071 = vmatprep.mubr.msk.f32.mxu1 %vm171_vm0, %v17716_v5 }
 0x5dd   : > { %14072 = vmatmul.mubr.msk.f32.gmra.mrb[10].mxu1 %vm171_vm0, %v17720_v15 }
 0x5de   : > { %14074 = vmatprep.mubr.msk.f32.mxu1 %vm171_vm0, %v17724_v16 }
 0x5e1   : > { %14075 = vmatmul.mubr.msk.f32.gmra.mrb[12].mxu1 %vm171_vm0, %v17728_v18 }
 0x5e2   : > { %14077 = vmatprep.mubr.msk.f32.mxu1 %vm171_vm0, %v17732_v21 }
 0x5e5   : > { %14078 = vmatmul.mubr.msk.f32.gmra.mrb[14].mxu1 %vm171_vm0, %v17736_v22 }
 0x5e6   : > { %14080 = vmatprep.mubr.msk.f32.mxu1 %vm171_vm0, %v17740_v23 }
 0x5e9   : > { %14081 = vmatmul.mubr.msk.f32.gmra.mrb[16].mxu1 %vm171_vm0, %v17744_v24 }
 0x5ea   : > { %14083 = vmatprep.mubr.msk.f32.mxu1 %vm171_vm0, %v17748_v25 }
 0x5ed   : > { %14084 = vmatmul.mubr.msk.f32.gmra.mrb[18].mxu1 %vm171_vm0, %v17752_v26 }
 0x5ee   : > { %14086 = vmatprep.mubr.msk.f32.mxu1 %vm171_vm0, %v17756_v29 }
 0x5f1   : > { %14087 = vmatmul.mubr.msk.f32.gmra.mrb[20].mxu1 %vm171_vm0, %v17760_v30 }
 0x5f2   : > { %14089 = vmatprep.mubr.msk.f32.mxu1 %vm171_vm0, %v17764_v31 }
 0x5f5   : > { %14090 = vmatmul.mubr.msk.f32.gmra.mrb[22].mxu1 %vm171_vm0, %v17768_v32 }
 0x5f6   : > { %14092 = vmatprep.mubr.msk.f32.mxu1 %vm171_vm0, %v17772_v33 }
 0x5f9   : > { %14093 = vmatmul.mubr.msk.f32.gmra.mrb[24].mxu1 %vm171_vm0, %v17776_v34 }
 0x5fa   : > { %14095 = vmatprep.mubr.msk.f32.mxu1 %vm171_vm0, %v17780_v37 }
 0x5fd   : > { %14096 = vmatmul.mubr.msk.f32.gmra.mrb[26].mxu1 %vm171_vm0, %v17784_v38 }
 0x5fe   : > { %14098 = vmatprep.mubr.msk.f32.mxu1 %vm171_vm0, %v17788_v39 }
 0x601   : > { %14099 = vmatmul.mubr.msk.f32.gmra.mrb[28].mxu1 %vm171_vm0, %v17792_v40 }
 0x602   : > { %14101 = vmatprep.mubr.msk.f32.mxu1 %vm171_vm0, %v17796_v41 }
 0x605   : > { %14102 = vmatmul.mubr.msk.f32.gmra.mrb[30].mxu1 %vm171_vm0, %v17800_v42 }
 0x606   : > { %14106 = vmatprep.mubr.msk.f32.mxu1 %vm171_vm0, %v6402_v36  ;;  %v18036_v36 = vld [vmem:[#allocation2 + $0x1b0] sm:$0xff] }
 0x609   : > { %14107 = vmatmul.mubr.msk.f32.vlgmr.msra.gmra.mrb[0].mxu1 %vm171_vm0, %v6403_v43  ;;  %v18040_v43 = vld [vmem:[#allocation2 + $0x1c8] sm:$0xff] }
 0x60a   : > { %14155 = vmatpush3.msra.mxu1 %v17686_v35  ;;  %14109 = vmatprep.mubr.msk.f32.mxu1 %vm171_vm0, %v17692_v44  ;;  %v18032_v35 = vld [vmem:[#allocation2 + $0x1a8] sm:$0xff] }
 0x60b   : > { %14204 = vmatprep.subr.mxu1 %v11372_v45 }
 0x60d   : > { %14110 = vmatmul.mubr.msk.f32.gmra.mrb[2].mxu1 %vm171_vm0, %v17696_v51 }
 0x60e   : > { %14112 = vmatprep.mubr.msk.f32.mxu1 %vm171_vm0, %v17700_v53 }
 0x611   : > { %14113 = vmatmul.mubr.msk.f32.gmra.mrb[4].mxu1 %vm171_vm0, %v17704_v60 }
 0x612   : > { %14115 = vmatprep.mubr.msk.f32.mxu1 %vm171_vm0, %v17708_v61 }
 0x615   : > { %14116 = vmatmul.mubr.msk.f32.gmra.mrb[6].mxu1 %vm171_vm0, %v17712_v4 }
 0x616   : > { %14118 = vmatprep.mubr.msk.f32.mxu1 %vm171_vm0, %v17716_v5 }
 0x619   : > { %14119 = vmatmul.mubr.msk.f32.gmra.mrb[8].mxu1 %vm171_vm0, %v17720_v15 }
 0x61a   : > { %14121 = vmatprep.mubr.msk.f32.mxu1 %vm171_vm0, %v17724_v16 }
 0x61d   : > { %14122 = vmatmul.mubr.msk.f32.gmra.mrb[10].mxu1 %vm171_vm0, %v17728_v18 }
 0x61e   : > { %14124 = vmatprep.mubr.msk.f32.mxu1 %vm171_vm0, %v17732_v21 }
 0x621   : > { %14125 = vmatmul.mubr.msk.f32.gmra.mrb[12].mxu1 %vm171_vm0, %v17736_v22 }
 0x622   : > { %14127 = vmatprep.mubr.msk.f32.mxu1 %vm171_vm0, %v17740_v23 }
 0x625   : > { %14128 = vmatmul.mubr.msk.f32.gmra.mrb[14].mxu1 %vm171_vm0, %v17744_v24 }
 0x626   : > { %14130 = vmatprep.mubr.msk.f32.mxu1 %vm171_vm0, %v17748_v25 }
 0x629   : > { %14131 = vmatmul.mubr.msk.f32.gmra.mrb[16].mxu1 %vm171_vm0, %v17752_v26 }
 0x62a   : > { %14133 = vmatprep.mubr.msk.f32.mxu1 %vm171_vm0, %v17756_v29 }
 0x62d   : > { %14134 = vmatmul.mubr.msk.f32.gmra.mrb[18].mxu1 %vm171_vm0, %v17760_v30 }
 0x62e   : > { %14136 = vmatprep.mubr.msk.f32.mxu1 %vm171_vm0, %v17764_v31 }
 0x631   : > { %14137 = vmatmul.mubr.msk.f32.gmra.mrb[20].mxu1 %vm171_vm0, %v17768_v32 }
 0x632   : > { %14139 = vmatprep.mubr.msk.f32.mxu1 %vm171_vm0, %v17772_v33 }
 0x635   : > { %14140 = vmatmul.mubr.msk.f32.gmra.mrb[22].mxu1 %vm171_vm0, %v17776_v34 }
 0x636   : > { %14142 = vmatprep.mubr.msk.f32.mxu1 %vm171_vm0, %v17780_v37 }
 0x639   : > { %14143 = vmatmul.mubr.msk.f32.gmra.mrb[24].mxu1 %vm171_vm0, %v17784_v38 }
 0x63a   : > { %14145 = vmatprep.mubr.msk.f32.mxu1 %vm171_vm0, %v17788_v39 }
 0x63d   : > { %14146 = vmatmul.mubr.msk.f32.gmra.mrb[26].mxu1 %vm171_vm0, %v17792_v40 }
 0x63e   : > { %14148 = vmatprep.mubr.msk.f32.mxu1 %vm171_vm0, %v17796_v41 }
 0x641   : > { %14149 = vmatmul.mubr.msk.f32.gmra.mrb[28].mxu1 %vm171_vm0, %v17800_v42 }
 0x642   : > { %14151 = vmatprep.mubr.msk.f32.mxu1 %vm171_vm0, %v6432_v46 }
 0x645   : > { %14152 = vmatmul.mubr.msk.f32.gmra.mrb[30].mxu1 %vm171_vm0, %v6433_v47 }
 0x646   : > { %14156 = vmatprep.mubr.msk.f32.mxu1 %vm171_vm0, %v17692_v44  ;;  %v18044_v44 = vld [vmem:[#allocation2 + $0x1d0] sm:$0xff] }
 0x649   : > { %14157 = vmatmul.mubr.msk.f32.vlgmr.msra.gmra.mrb[0].mxu1 %vm171_vm0, %v17696_v51  ;;  %v18048_v51 = vld [vmem:[#allocation2 + $0x1e8] sm:$0xff] }
 0x64a   : > { %14205 = vmatpush3.msra.mxu1 %v11372_v45  ;;  %14159 = vmatprep.mubr.msk.f32.mxu1 %vm171_vm0, %v17700_v53  ;;  %v18052_v53 = vld [vmem:[#allocation2 + $0x1f0] sm:$0xff] }
 0x64b   : > { %14254 = vmatprep.subr.mxu1 %v11373_v48  ;;  %v18368_v45 = vld [vmem:[#allocation2 + $0xe9] sm:$0xff] }
 0x64d   : > { %14160 = vmatmul.mubr.msk.f32.gmra.mrb[2].mxu1 %vm171_vm0, %v17704_v60  ;;  %v11375_v60 = vld [vmem:[%s18937_s1 + $0xd0] sm:$0xff] }
 0x64e   : > { %14162 = vmatprep.mubr.msk.f32.mxu1 %vm171_vm0, %v17708_v61  ;;  %v18119_v61 = vld [vmem:[#allocation2 + $0x208] sm:$0xff] }
 0x651   : > { %14163 = vmatmul.mubr.msk.f32.gmra.mrb[4].mxu1 %vm171_vm0, %v17712_v4  ;;  %v18123_v4 = vld [vmem:[#allocation2 + $0x210] sm:$0xff] }
 0x652   : > { %14165 = vmatprep.mubr.msk.f32.mxu1 %vm171_vm0, %v17716_v5  ;;  %v11376_v5 = vld [vmem:[%s18937_s1 + $0xd8] sm:$0xff] }
 0x655   : > { %14166 = vmatmul.mubr.msk.f32.gmra.mrb[6].mxu1 %vm171_vm0, %v17720_v15  ;;  %v18190_v15 = vld [vmem:[#allocation2 + $0x228] sm:$0xff] }
 0x656   : > { %14168 = vmatprep.mubr.msk.f32.mxu1 %vm171_vm0, %v17724_v16  ;;  %v18194_v16 = vld [vmem:[#allocation2 + $0x230] sm:$0xff] }
 0x659   : > { %14169 = vmatmul.mubr.msk.f32.gmra.mrb[8].mxu1 %vm171_vm0, %v17728_v18  ;;  %v11377_v18 = vld [vmem:[%s18937_s1 + $0xe0] sm:$0xff] }
 0x65a   : > { %14171 = vmatprep.mubr.msk.f32.mxu1 %vm171_vm0, %v17732_v21  ;;  %v7351_v21 = vld [vmem:[#allocation2 + $0x248] sm:$0xff] }
 0x65d   : > { %14172 = vmatmul.mubr.msk.f32.gmra.mrb[10].mxu1 %vm171_vm0, %v17736_v22  ;;  %v7352_v22 = vld [vmem:[#allocation2 + $0x250] sm:$0xff] }
 0x65e   : > { %14174 = vmatprep.mubr.msk.f32.mxu1 %vm171_vm0, %v17740_v23  ;;  %v11378_v23 = vld [vmem:[%s18937_s1 + $0xe8] sm:$0xff] }
 0x661   : > { %14175 = vmatmul.mubr.msk.f32.gmra.mrb[12].mxu1 %vm171_vm0, %v17744_v24  ;;  %v7353_v24 = vld [vmem:[#allocation2 + $0x268] sm:$0xff] }
 0x662   : > { %14177 = vmatprep.mubr.msk.f32.mxu1 %vm171_vm0, %v17748_v25  ;;  %v7354_v25 = vld [vmem:[#allocation2 + $0x270] sm:$0xff] }
 0x665   : > { %14178 = vmatmul.mubr.msk.f32.gmra.mrb[14].mxu1 %vm171_vm0, %v17752_v26  ;;  %v8760_v26 = vld [vmem:[#allocation2 + $0x29] sm:$0xff] }
 0x666   : > { %14180 = vmatprep.mubr.msk.f32.mxu1 %vm171_vm0, %v17756_v29  ;;  %v8761_v29 = vld [vmem:[#allocation2 + $0x31] sm:$0xff] }
 0x669   : > { %14181 = vmatmul.mubr.msk.f32.gmra.mrb[16].mxu1 %vm171_vm0, %v17760_v30  ;;  %v18330_v30 = vld [vmem:[%s18937_s1 + $0xf0] sm:$0xff] }
 0x66a   : > { %14183 = vmatprep.mubr.msk.f32.mxu1 %vm171_vm0, %v17764_v31  ;;  %v8762_v31 = vld [vmem:[#allocation2 + $0x49] sm:$0xff] }
 0x66d   : > { %14184 = vmatmul.mubr.msk.f32.gmra.mrb[18].mxu1 %vm171_vm0, %v17768_v32  ;;  %v8763_v32 = vld [vmem:[#allocation2 + $0x51] sm:$0xff] }
 0x66e   : > { %14186 = vmatprep.mubr.msk.f32.mxu1 %vm171_vm0, %v17772_v33  ;;  %v18336_v33 = vld [vmem:[#allocation2 + $0x69] sm:$0xff] }
 0x671   : > { %14187 = vmatmul.mubr.msk.f32.gmra.mrb[20].mxu1 %vm171_vm0, %v17776_v34  ;;  %v18340_v34 = vld [vmem:[#allocation2 + $0x71] sm:$0xff] }
 0x672   : > { %14189 = vmatprep.mubr.msk.f32.mxu1 %vm171_vm0, %v17780_v37  ;;  %v18344_v37 = vld [vmem:[#allocation2 + $0x89] sm:$0xff] }
 0x675   : > { %14190 = vmatmul.mubr.msk.f32.gmra.mrb[22].mxu1 %vm171_vm0, %v17784_v38  ;;  %v18348_v38 = vld [vmem:[#allocation2 + $0x91] sm:$0xff] }
 0x676   : > { %14192 = vmatprep.mubr.msk.f32.mxu1 %vm171_vm0, %v17788_v39  ;;  %v18352_v39 = vld [vmem:[#allocation2 + $0xa9] sm:$0xff] }
 0x679   : > { %14193 = vmatmul.mubr.msk.f32.gmra.mrb[24].mxu1 %vm171_vm0, %v17792_v40  ;;  %v18356_v40 = vld [vmem:[#allocation2 + $0xb1] sm:$0xff] }
 0x67a   : > { %14195 = vmatprep.mubr.msk.f32.mxu1 %vm171_vm0, %v17796_v41  ;;  %v18360_v41 = vld [vmem:[#allocation2 + $0xc9] sm:$0xff] }
 0x67d   : > { %14196 = vmatmul.mubr.msk.f32.gmra.mrb[26].mxu1 %vm171_vm0, %v17800_v42  ;;  %v18364_v42 = vld [vmem:[#allocation2 + $0xd1] sm:$0xff] }
 0x67e   : > { %14198 = vmatprep.mubr.msk.f32.mxu1 %vm171_vm0, %v6432_v46  ;;  %v18372_v46 = vld [vmem:[#allocation2 + $0xf1] sm:$0xff] }
 0x681   : > { %14199 = vmatmul.mubr.msk.f32.gmra.mrb[28].mxu1 %vm171_vm0, %v6433_v47  ;;  %v18376_v47 = vld [vmem:[#allocation2 + $0x109] sm:$0xff] }
 0x682   : > { %14201 = vmatprep.mubr.msk.f32.mxu1 %vm171_vm0, %v6434_v49  ;;  %v18384_v49 = vld [vmem:[#allocation2 + $0x129] sm:$0xff] }
 0x685   : > { %14202 = vmatmul.mubr.msk.f32.gmra.mrb[30].mxu1 %vm171_vm0, %v6435_v50  ;;  %v18388_v50 = vld [vmem:[#allocation2 + $0x131] sm:$0xff] }
 0x686   : > { %14206 = vmatprep.mubr.msk.f32.mxu1 %vm171_vm0, %v7315_v54  ;;  %v18392_v54 = vld [vmem:[#allocation2 + $0x149] sm:$0xff] }
 0x689   : > { %14207 = vmatmul.mubr.msk.f32.vlgmr.msra.gmra.mrb[0].mxu1 %vm171_vm0, %v7316_v55  ;;  %v18396_v55 = vld [vmem:[#allocation2 + $0x151] sm:$0xff] }
 0x68a   : > { %14255 = vmatpush3.msra.mxu1 %v11373_v48  ;;  %14209 = vmatprep.mubr.msk.f32.mxu1 %vm171_vm0, %v17932_v56  ;;  %v18380_v48 = vld [vmem:[#allocation2 + $0x111] sm:$0xff] }
 0x68b   : > { %14304 = vmatprep.subr.mxu1 %v17937_v57 }
 0x68d   : > { %14210 = vmatmul.mubr.msk.f32.gmra.mrb[2].mxu1 %vm171_vm0, %v7318_v58 }
 0x68e   : > { %14212 = vmatprep.mubr.msk.f32.mxu1 %vm171_vm0, %v17944_v59 }
 0x691   : > { %14213 = vmatmul.mubr.msk.f32.gmra.mrb[4].mxu1 %vm171_vm0, %v17948_v62 }
 0x692   : > { %14215 = vmatprep.mubr.msk.f32.mxu1 %vm171_vm0, %v17952_v63 }
 0x695   : > { %14216 = vmatmul.mubr.msk.f32.gmra.mrb[6].mxu1 %vm171_vm0, %v17956_v0 }
 0x696   : > { %14218 = vmatprep.mubr.msk.f32.mxu1 %vm171_vm0, %v17960_v1 }
 0x699   : > { %14219 = vmatmul.mubr.msk.f32.gmra.mrb[8].mxu1 %vm171_vm0, %v17964_v2 }
 0x69a   : > { %14221 = vmatprep.mubr.msk.f32.mxu1 %vm171_vm0, %v17968_v52 }
 0x69d   : > { %14222 = vmatmul.mubr.msk.f32.gmra.mrb[10].mxu1 %vm171_vm0, %v17972_v3 }
 0x69e   : > { %14224 = vmatprep.mubr.msk.f32.mxu1 %vm171_vm0, %v17976_v6 }
 0x6a1   : > { %14225 = vmatmul.mubr.msk.f32.gmra.mrb[12].mxu1 %vm171_vm0, %v17980_v7 }
 0x6a2   : > { %14227 = vmatprep.mubr.msk.f32.mxu1 %vm171_vm0, %v17984_v8 }
 0x6a5   : > { %14228 = vmatmul.mubr.msk.f32.gmra.mrb[14].mxu1 %vm171_vm0, %v17988_v9 }
 0x6a6   : > { %14230 = vmatprep.mubr.msk.f32.mxu1 %vm171_vm0, %v17992_v12 }
 0x6a9   : > { %14231 = vmatmul.mubr.msk.f32.gmra.mrb[16].mxu1 %vm171_vm0, %v17996_v14 }
 0x6aa   : > { %14233 = vmatprep.mubr.msk.f32.mxu1 %vm171_vm0, %v18000_v17 }
 0x6ad   : > { %14234 = vmatmul.mubr.msk.f32.gmra.mrb[18].mxu1 %vm171_vm0, %v18004_v10 }
 0x6ae   : > { %14236 = vmatprep.mubr.msk.f32.mxu1 %vm171_vm0, %v18008_v11 }
 0x6b1   : > { %14237 = vmatmul.mubr.msk.f32.gmra.mrb[20].mxu1 %vm171_vm0, %v18012_v13 }
 0x6b2   : > { %14239 = vmatprep.mubr.msk.f32.mxu1 %vm171_vm0, %v18016_v19 }
 0x6b5   : > { %14240 = vmatmul.mubr.msk.f32.gmra.mrb[22].mxu1 %vm171_vm0, %v18020_v20 }
 0x6b6   : > { %14242 = vmatprep.mubr.msk.f32.mxu1 %vm171_vm0, %v18024_v27 }
 0x6b9   : > { %14243 = vmatmul.mubr.msk.f32.gmra.mrb[24].mxu1 %vm171_vm0, %v18028_v28 }
 0x6ba   : > { %14245 = vmatprep.mubr.msk.f32.mxu1 %vm171_vm0, %v18032_v35 }
 0x6bd   : > { %14246 = vmatmul.mubr.msk.f32.gmra.mrb[26].mxu1 %vm171_vm0, %v18036_v36 }
 0x6be   : > { %14248 = vmatprep.mubr.msk.f32.mxu1 %vm171_vm0, %v18040_v43 }
 0x6c1   : > { %14249 = vmatmul.mubr.msk.f32.gmra.mrb[28].mxu1 %vm171_vm0, %v18044_v44 }
 0x6c2   : > { %14251 = vmatprep.mubr.msk.f32.mxu1 %vm171_vm0, %v18048_v51 }
 0x6c5   : > { %14252 = vmatmul.mubr.msk.f32.gmra.mrb[30].mxu1 %vm171_vm0, %v18052_v53 }
 0x6c6   : > { %14256 = vmatprep.mubr.msk.f32.mxu1 %vm171_vm0, %v17932_v56  ;;  %v18400_v56 = vld [vmem:[#allocation2 + $0x169] sm:$0xff] }
 0x6c9   : > { %14257 = vmatmul.mubr.msk.f32.vlgmr.msra.gmra.mrb[0].mxu1 %vm171_vm0, %v7318_v58  ;;  %v18408_v58 = vld [vmem:[#allocation2 + $0x189] sm:$0xff] }
 0x6ca   : > { %14305 = vmatpush3.msra.mxu1 %v17937_v57  ;;  %14259 = vmatprep.mubr.msk.f32.mxu1 %vm171_vm0, %v17944_v59  ;;  %v18404_v57 = vld [vmem:[#allocation2 + $0x171] sm:$0xff] }
 0x6cb   : > { %14354 = vmatprep.subr.mxu1 %v11375_v60 }
 0x6cd   : > { %14260 = vmatmul.mubr.msk.f32.gmra.mrb[2].mxu1 %vm171_vm0, %v17948_v62 }
 0x6ce   : > { %14262 = vmatprep.mubr.msk.f32.mxu1 %vm171_vm0, %v17952_v63 }
 0x6d1   : > { %14263 = vmatmul.mubr.msk.f32.gmra.mrb[4].mxu1 %vm171_vm0, %v17956_v0 }
 0x6d2   : > { %14265 = vmatprep.mubr.msk.f32.mxu1 %vm171_vm0, %v17960_v1 }
 0x6d5   : > { %14266 = vmatmul.mubr.msk.f32.gmra.mrb[6].mxu1 %vm171_vm0, %v17964_v2 }
 0x6d6   : > { %14268 = vmatprep.mubr.msk.f32.mxu1 %vm171_vm0, %v17968_v52 }
 0x6d9   : > { %14269 = vmatmul.mubr.msk.f32.gmra.mrb[8].mxu1 %vm171_vm0, %v17972_v3 }
 0x6da   : > { %14271 = vmatprep.mubr.msk.f32.mxu1 %vm171_vm0, %v17976_v6 }
 0x6dd   : > { %14272 = vmatmul.mubr.msk.f32.gmra.mrb[10].mxu1 %vm171_vm0, %v17980_v7 }
 0x6de   : > { %14274 = vmatprep.mubr.msk.f32.mxu1 %vm171_vm0, %v17984_v8 }
 0x6e1   : > { %14275 = vmatmul.mubr.msk.f32.gmra.mrb[12].mxu1 %vm171_vm0, %v17988_v9 }
 0x6e2   : > { %14277 = vmatprep.mubr.msk.f32.mxu1 %vm171_vm0, %v17992_v12 }
 0x6e5   : > { %14278 = vmatmul.mubr.msk.f32.gmra.mrb[14].mxu1 %vm171_vm0, %v17996_v14 }
 0x6e6   : > { %14280 = vmatprep.mubr.msk.f32.mxu1 %vm171_vm0, %v18000_v17 }
 0x6e9   : > { %14281 = vmatmul.mubr.msk.f32.gmra.mrb[16].mxu1 %vm171_vm0, %v18004_v10 }
 0x6ea   : > { %14283 = vmatprep.mubr.msk.f32.mxu1 %vm171_vm0, %v18008_v11 }
 0x6ed   : > { %14284 = vmatmul.mubr.msk.f32.gmra.mrb[18].mxu1 %vm171_vm0, %v18012_v13 }
 0x6ee   : > { %14286 = vmatprep.mubr.msk.f32.mxu1 %vm171_vm0, %v18016_v19 }
 0x6f1   : > { %14287 = vmatmul.mubr.msk.f32.gmra.mrb[20].mxu1 %vm171_vm0, %v18020_v20 }
 0x6f2   : > { %14289 = vmatprep.mubr.msk.f32.mxu1 %vm171_vm0, %v18024_v27 }
 0x6f5   : > { %14290 = vmatmul.mubr.msk.f32.gmra.mrb[22].mxu1 %vm171_vm0, %v18028_v28 }
 0x6f6   : > { %14292 = vmatprep.mubr.msk.f32.mxu1 %vm171_vm0, %v18032_v35 }
 0x6f9   : > { %14293 = vmatmul.mubr.msk.f32.gmra.mrb[24].mxu1 %vm171_vm0, %v18036_v36 }
 0x6fa   : > { %14295 = vmatprep.mubr.msk.f32.mxu1 %vm171_vm0, %v18040_v43 }
 0x6fd   : > { %14296 = vmatmul.mubr.msk.f32.gmra.mrb[26].mxu1 %vm171_vm0, %v18044_v44 }
 0x6fe   : > { %14298 = vmatprep.mubr.msk.f32.mxu1 %vm171_vm0, %v18048_v51 }
 0x701   : > { %14299 = vmatmul.mubr.msk.f32.gmra.mrb[28].mxu1 %vm171_vm0, %v18052_v53 }
 0x702   : > { %14301 = vmatprep.mubr.msk.f32.mxu1 %vm171_vm0, %v18119_v61 }
 0x705   : > { %14302 = vmatmul.mubr.msk.f32.gmra.mrb[30].mxu1 %vm171_vm0, %v18123_v4 }
 0x706   : > { %14306 = vmatprep.mubr.msk.f32.mxu1 %vm171_vm0, %v17944_v59  ;;  %v18412_v59 = vld [vmem:[#allocation2 + $0x191] sm:$0xff] }
 0x709   : > { %14307 = vmatmul.mubr.msk.f32.vlgmr.msra.gmra.mrb[0].mxu1 %vm171_vm0, %v17948_v62  ;;  %v18416_v62 = vld [vmem:[#allocation2 + $0x1a9] sm:$0xff] }
 0x70a   : > { %14355 = vmatpush3.msra.mxu1 %v11375_v60  ;;  %14309 = vmatprep.mubr.msk.f32.mxu1 %vm171_vm0, %v17952_v63  ;;  %v18605_v60 = vld [vmem:[#allocation2 + $0xca] sm:$0xff] }
 0x70b   : > { %14404 = vmatprep.subr.mxu1 %v11376_v5 }
 0x70d   : > { %14310 = vmatmul.mubr.msk.f32.gmra.mrb[2].mxu1 %vm171_vm0, %v17956_v0 }
 0x70e   : > { %14312 = vmatprep.mubr.msk.f32.mxu1 %vm171_vm0, %v17960_v1 }
 0x711   : > { %14313 = vmatmul.mubr.msk.f32.gmra.mrb[4].mxu1 %vm171_vm0, %v17964_v2 }
 0x712   : > { %14315 = vmatprep.mubr.msk.f32.mxu1 %vm171_vm0, %v17968_v52 }
 0x715   : > { %14316 = vmatmul.mubr.msk.f32.gmra.mrb[6].mxu1 %vm171_vm0, %v17972_v3 }
 0x716   : > { %14318 = vmatprep.mubr.msk.f32.mxu1 %vm171_vm0, %v17976_v6 }
 0x719   : > { %14319 = vmatmul.mubr.msk.f32.gmra.mrb[8].mxu1 %vm171_vm0, %v17980_v7 }
 0x71a   : > { %14321 = vmatprep.mubr.msk.f32.mxu1 %vm171_vm0, %v17984_v8 }
 0x71d   : > { %14322 = vmatmul.mubr.msk.f32.gmra.mrb[10].mxu1 %vm171_vm0, %v17988_v9 }
 0x71e   : > { %14324 = vmatprep.mubr.msk.f32.mxu1 %vm171_vm0, %v17992_v12 }
 0x721   : > { %14325 = vmatmul.mubr.msk.f32.gmra.mrb[12].mxu1 %vm171_vm0, %v17996_v14 }
 0x722   : > { %14327 = vmatprep.mubr.msk.f32.mxu1 %vm171_vm0, %v18000_v17 }
 0x725   : > { %14328 = vmatmul.mubr.msk.f32.gmra.mrb[14].mxu1 %vm171_vm0, %v18004_v10 }
 0x726   : > { %14330 = vmatprep.mubr.msk.f32.mxu1 %vm171_vm0, %v18008_v11 }
 0x729   : > { %14331 = vmatmul.mubr.msk.f32.gmra.mrb[16].mxu1 %vm171_vm0, %v18012_v13 }
 0x72a   : > { %14333 = vmatprep.mubr.msk.f32.mxu1 %vm171_vm0, %v18016_v19 }
 0x72d   : > { %14334 = vmatmul.mubr.msk.f32.gmra.mrb[18].mxu1 %vm171_vm0, %v18020_v20 }
 0x72e   : > { %14336 = vmatprep.mubr.msk.f32.mxu1 %vm171_vm0, %v18024_v27 }
 0x731   : > { %14337 = vmatmul.mubr.msk.f32.gmra.mrb[20].mxu1 %vm171_vm0, %v18028_v28 }
 0x732   : > { %14339 = vmatprep.mubr.msk.f32.mxu1 %vm171_vm0, %v18032_v35 }
 0x735   : > { %14340 = vmatmul.mubr.msk.f32.gmra.mrb[22].mxu1 %vm171_vm0, %v18036_v36 }
 0x736   : > { %14342 = vmatprep.mubr.msk.f32.mxu1 %vm171_vm0, %v18040_v43 }
 0x739   : > { %14343 = vmatmul.mubr.msk.f32.gmra.mrb[24].mxu1 %vm171_vm0, %v18044_v44 }
 0x73a   : > { %14345 = vmatprep.mubr.msk.f32.mxu1 %vm171_vm0, %v18048_v51 }
 0x73d   : > { %14346 = vmatmul.mubr.msk.f32.gmra.mrb[26].mxu1 %vm171_vm0, %v18052_v53 }
 0x73e   : > { %14348 = vmatprep.mubr.msk.f32.mxu1 %vm171_vm0, %v18119_v61 }
 0x741   : > { %14349 = vmatmul.mubr.msk.f32.gmra.mrb[28].mxu1 %vm171_vm0, %v18123_v4 }
 0x742   : > { %14351 = vmatprep.mubr.msk.f32.mxu1 %vm171_vm0, %v18190_v15 }
 0x745   : > { %14352 = vmatmul.mubr.msk.f32.gmra.mrb[30].mxu1 %vm171_vm0, %v18194_v16 }
 0x746   : > { %14356 = vmatprep.mubr.msk.f32.mxu1 %vm171_vm0, %v17952_v63  ;;  %v18420_v63 = vld [vmem:[#allocation2 + $0x1b1] sm:$0xff] }
 0x749   : > { %14357 = vmatmul.mubr.msk.f32.vlgmr.msra.gmra.mrb[0].mxu1 %vm171_vm0, %v17956_v0  ;;  %v18424_v0 = vld [vmem:[#allocation2 + $0x1c9] sm:$0xff] }
 0x74a   : > { %14405 = vmatpush3.msra.mxu1 %v11376_v5  ;;  %14359 = vmatprep.mubr.msk.f32.mxu1 %vm171_vm0, %v17960_v1  ;;  %v18617_v5 = vld [vmem:[#allocation2 + $0xf2] sm:$0xff] }
 0x74b   : > { %14454 = vmatprep.subr.mxu1 %v11377_v18 }
 0x74d   : > { %14360 = vmatmul.mubr.msk.f32.gmra.mrb[2].mxu1 %vm171_vm0, %v17964_v2 }
 0x74e   : > { %14362 = vmatprep.mubr.msk.f32.mxu1 %vm171_vm0, %v17968_v52 }
 0x751   : > { %14363 = vmatmul.mubr.msk.f32.gmra.mrb[4].mxu1 %vm171_vm0, %v17972_v3 }
 0x752   : > { %14365 = vmatprep.mubr.msk.f32.mxu1 %vm171_vm0, %v17976_v6 }
 0x755   : > { %14366 = vmatmul.mubr.msk.f32.gmra.mrb[6].mxu1 %vm171_vm0, %v17980_v7 }
 0x756   : > { %14368 = vmatprep.mubr.msk.f32.mxu1 %vm171_vm0, %v17984_v8 }
 0x759   : > { %14369 = vmatmul.mubr.msk.f32.gmra.mrb[8].mxu1 %vm171_vm0, %v17988_v9 }
 0x75a   : > { %14371 = vmatprep.mubr.msk.f32.mxu1 %vm171_vm0, %v17992_v12 }
 0x75d   : > { %14372 = vmatmul.mubr.msk.f32.gmra.mrb[10].mxu1 %vm171_vm0, %v17996_v14 }
 0x75e   : > { %14374 = vmatprep.mubr.msk.f32.mxu1 %vm171_vm0, %v18000_v17 }
 0x761   : > { %14375 = vmatmul.mubr.msk.f32.gmra.mrb[12].mxu1 %vm171_vm0, %v18004_v10 }
 0x762   : > { %14377 = vmatprep.mubr.msk.f32.mxu1 %vm171_vm0, %v18008_v11 }
 0x765   : > { %14378 = vmatmul.mubr.msk.f32.gmra.mrb[14].mxu1 %vm171_vm0, %v18012_v13 }
 0x766   : > { %14380 = vmatprep.mubr.msk.f32.mxu1 %vm171_vm0, %v18016_v19 }
 0x769   : > { %14381 = vmatmul.mubr.msk.f32.gmra.mrb[16].mxu1 %vm171_vm0, %v18020_v20 }
 0x76a   : > { %14383 = vmatprep.mubr.msk.f32.mxu1 %vm171_vm0, %v18024_v27 }
 0x76d   : > { %14384 = vmatmul.mubr.msk.f32.gmra.mrb[18].mxu1 %vm171_vm0, %v18028_v28 }
 0x76e   : > { %14386 = vmatprep.mubr.msk.f32.mxu1 %vm171_vm0, %v18032_v35 }
 0x771   : > { %14387 = vmatmul.mubr.msk.f32.gmra.mrb[20].mxu1 %vm171_vm0, %v18036_v36 }
 0x772   : > { %14389 = vmatprep.mubr.msk.f32.mxu1 %vm171_vm0, %v18040_v43 }
 0x775   : > { %14390 = vmatmul.mubr.msk.f32.gmra.mrb[22].mxu1 %vm171_vm0, %v18044_v44 }
 0x776   : > { %14392 = vmatprep.mubr.msk.f32.mxu1 %vm171_vm0, %v18048_v51 }
 0x779   : > { %14393 = vmatmul.mubr.msk.f32.gmra.mrb[24].mxu1 %vm171_vm0, %v18052_v53 }
 0x77a   : > { %14395 = vmatprep.mubr.msk.f32.mxu1 %vm171_vm0, %v18119_v61 }
 0x77d   : > { %14396 = vmatmul.mubr.msk.f32.gmra.mrb[26].mxu1 %vm171_vm0, %v18123_v4 }
 0x77e   : > { %14398 = vmatprep.mubr.msk.f32.mxu1 %vm171_vm0, %v18190_v15 }
 0x781   : > { %14399 = vmatmul.mubr.msk.f32.gmra.mrb[28].mxu1 %vm171_vm0, %v18194_v16 }
 0x782   : > { %14401 = vmatprep.mubr.msk.f32.mxu1 %vm171_vm0, %v7351_v21 }
 0x785   : > { %14402 = vmatmul.mubr.msk.f32.gmra.mrb[30].mxu1 %vm171_vm0, %v7352_v22 }
 0x786   : > { %14406 = vmatprep.mubr.msk.f32.mxu1 %vm171_vm0, %v17960_v1  ;;  %v18428_v1 = vld [vmem:[#allocation2 + $0x1d1] sm:$0xff] }
 0x789   : > { %14407 = vmatmul.mubr.msk.f32.vlgmr.msra.gmra.mrb[0].mxu1 %vm171_vm0, %v17964_v2  ;;  %v18432_v2 = vld [vmem:[#allocation2 + $0x1e9] sm:$0xff] }
 0x78a   : > { %14455 = vmatpush3.msra.mxu1 %v11377_v18  ;;  %14409 = vmatprep.mubr.msk.f32.mxu1 %vm171_vm0, %v17968_v52  ;;  %v18436_v52 = vld [vmem:[#allocation2 + $0x1f1] sm:$0xff] }
 0x78b   : > { %14504 = vmatprep.subr.mxu1 %v11378_v23  ;;  %v18629_v18 = vld [vmem:[#allocation2 + $0x12a] sm:$0xff] }
 0x78d   : > { %14410 = vmatmul.mubr.msk.f32.gmra.mrb[2].mxu1 %vm171_vm0, %v17972_v3  ;;  %v18440_v3 = vld [vmem:[#allocation2 + $0x209] sm:$0xff] }
 0x78e   : > { %14412 = vmatprep.mubr.msk.f32.mxu1 %vm171_vm0, %v17976_v6  ;;  %v18444_v6 = vld [vmem:[#allocation2 + $0x211] sm:$0xff] }
 0x791   : > { %14413 = vmatmul.mubr.msk.f32.gmra.mrb[4].mxu1 %vm171_vm0, %v17980_v7  ;;  %v11380_v7 = vld [vmem:[%s18937_s1 + $0xf8] sm:$0xff] }
 0x792   : > { %14415 = vmatprep.mubr.msk.f32.mxu1 %vm171_vm0, %v17984_v8  ;;  %v8792_v8 = vld [vmem:[#allocation2 + $0x229] sm:$0xff] }
 0x795   : > { %14416 = vmatmul.mubr.msk.f32.gmra.mrb[6].mxu1 %vm171_vm0, %v17988_v9  ;;  %v8793_v9 = vld [vmem:[#allocation2 + $0x231] sm:$0xff] }
 0x796   : > { %14418 = vmatprep.mubr.msk.f32.mxu1 %vm171_vm0, %v17992_v12  ;;  %v11381_v12 = vld [vmem:[%s18937_s1 + $0x100] sm:$0xff] }
 0x799   : > { %14419 = vmatmul.mubr.msk.f32.gmra.mrb[8].mxu1 %vm171_vm0, %v17996_v14  ;;  %v8794_v14 = vld [vmem:[#allocation2 + $0x249] sm:$0xff] }
 0x79a   : > { %14421 = vmatprep.mubr.msk.f32.mxu1 %vm171_vm0, %v18000_v17  ;;  %v8795_v17 = vld [vmem:[#allocation2 + $0x251] sm:$0xff] }
 0x79d   : > { %14422 = vmatmul.mubr.msk.f32.gmra.mrb[10].mxu1 %vm171_vm0, %v18004_v10  ;;  %v9675_v10 = vld [vmem:[#allocation2 + $0xa] sm:$0xff] }
 0x79e   : > { %14424 = vmatprep.mubr.msk.f32.mxu1 %vm171_vm0, %v18008_v11  ;;  %v9676_v11 = vld [vmem:[#allocation2 + $0x12] sm:$0xff] }
 0x7a1   : > { %14425 = vmatmul.mubr.msk.f32.gmra.mrb[12].mxu1 %vm171_vm0, %v18012_v13  ;;  %v9677_v13 = vld [vmem:[#allocation2 + $0x2a] sm:$0xff] }
 0x7a2   : > { %14427 = vmatprep.mubr.msk.f32.mxu1 %vm171_vm0, %v18016_v19  ;;  %v18579_v19 = vld [vmem:[%s18937_s1 + $0x108] sm:$0xff] }
 0x7a5   : > { %14428 = vmatmul.mubr.msk.f32.gmra.mrb[14].mxu1 %vm171_vm0, %v18020_v20  ;;  %v9678_v20 = vld [vmem:[#allocation2 + $0x32] sm:$0xff] }
 0x7a6   : > { %14430 = vmatprep.mubr.msk.f32.mxu1 %vm171_vm0, %v18024_v27  ;;  %v9679_v27 = vld [vmem:[#allocation2 + $0x4a] sm:$0xff] }
 0x7a9   : > { %14431 = vmatmul.mubr.msk.f32.gmra.mrb[16].mxu1 %vm171_vm0, %v18028_v28  ;;  %v9680_v28 = vld [vmem:[#allocation2 + $0x52] sm:$0xff] }
 0x7aa   : > { %14433 = vmatprep.mubr.msk.f32.mxu1 %vm171_vm0, %v18032_v35  ;;  %v9681_v35 = vld [vmem:[#allocation2 + $0x6a] sm:$0xff] }
 0x7ad   : > { %14434 = vmatmul.mubr.msk.f32.gmra.mrb[18].mxu1 %vm171_vm0, %v18036_v36  ;;  %v9682_v36 = vld [vmem:[#allocation2 + $0x72] sm:$0xff] }
 0x7ae   : > { %14436 = vmatprep.mubr.msk.f32.mxu1 %vm171_vm0, %v18040_v43  ;;  %v18589_v43 = vld [vmem:[#allocation2 + $0x8a] sm:$0xff] }
 0x7b1   : > { %14437 = vmatmul.mubr.msk.f32.gmra.mrb[20].mxu1 %vm171_vm0, %v18044_v44  ;;  %v18593_v44 = vld [vmem:[#allocation2 + $0x92] sm:$0xff] }
 0x7b2   : > { %14439 = vmatprep.mubr.msk.f32.mxu1 %vm171_vm0, %v18048_v51  ;;  %v18597_v51 = vld [vmem:[#allocation2 + $0xaa] sm:$0xff] }
 0x7b5   : > { %14440 = vmatmul.mubr.msk.f32.gmra.mrb[22].mxu1 %vm171_vm0, %v18052_v53  ;;  %v18601_v53 = vld [vmem:[#allocation2 + $0xb2] sm:$0xff] }
 0x7b6   : > { %14442 = vmatprep.mubr.msk.f32.mxu1 %vm171_vm0, %v18119_v61  ;;  %v18609_v61 = vld [vmem:[#allocation2 + $0xd2] sm:$0xff] }
 0x7b9   : > { %14443 = vmatmul.mubr.msk.f32.gmra.mrb[24].mxu1 %vm171_vm0, %v18123_v4  ;;  %v18613_v4 = vld [vmem:[#allocation2 + $0xea] sm:$0xff] }
 0x7ba   : > { %14445 = vmatprep.mubr.msk.f32.mxu1 %vm171_vm0, %v18190_v15  ;;  %v18621_v15 = vld [vmem:[#allocation2 + $0x10a] sm:$0xff] }
 0x7bd   : > { %14446 = vmatmul.mubr.msk.f32.gmra.mrb[26].mxu1 %vm171_vm0, %v18194_v16  ;;  %v18625_v16 = vld [vmem:[#allocation2 + $0x112] sm:$0xff] }
 0x7be   : > { %14448 = vmatprep.mubr.msk.f32.mxu1 %vm171_vm0, %v7351_v21  ;;  %v18633_v21 = vld [vmem:[#allocation2 + $0x132] sm:$0xff] }
 0x7c1   : > { %14449 = vmatmul.mubr.msk.f32.gmra.mrb[28].mxu1 %vm171_vm0, %v7352_v22  ;;  %v18637_v22 = vld [vmem:[#allocation2 + $0x14a] sm:$0xff] }
 0x7c2   : > { %14451 = vmatprep.mubr.msk.f32.mxu1 %vm171_vm0, %v7353_v24  ;;  %v18645_v24 = vld [vmem:[#allocation2 + $0x16a] sm:$0xff] }
 0x7c5   : > { %14452 = vmatmul.mubr.msk.f32.gmra.mrb[30].mxu1 %vm171_vm0, %v7354_v25  ;;  %v18649_v25 = vld [vmem:[#allocation2 + $0x172] sm:$0xff] }
 0x7c6   : > { %14456 = vmatprep.mubr.msk.f32.mxu1 %vm171_vm0, %v8760_v26  ;;  %v18653_v26 = vld [vmem:[#allocation2 + $0x18a] sm:$0xff] }
 0x7c9   : > { %14457 = vmatmul.mubr.msk.f32.vlgmr.msra.gmra.mrb[0].mxu1 %vm171_vm0, %v8761_v29  ;;  %v18657_v29 = vld [vmem:[#allocation2 + $0x192] sm:$0xff] }
 0x7ca   : > { %14505 = vmatpush3.msra.mxu1 %v11378_v23  ;;  %14459 = vmatprep.mubr.msk.f32.mxu1 %vm171_vm0, %v8762_v31  ;;  %v18641_v23 = vld [vmem:[#allocation2 + $0x152] sm:$0xff] }
 0x7cb   : > { %14554 = vmatprep.subr.mxu1 %v18330_v30 }
 0x7cd   : > { %14460 = vmatmul.mubr.msk.f32.gmra.mrb[2].mxu1 %vm171_vm0, %v8763_v32 }
 0x7ce   : > { %14462 = vmatprep.mubr.msk.f32.mxu1 %vm171_vm0, %v18336_v33 }
 0x7d1   : > { %14463 = vmatmul.mubr.msk.f32.gmra.mrb[4].mxu1 %vm171_vm0, %v18340_v34 }
 0x7d2   : > { %14465 = vmatprep.mubr.msk.f32.mxu1 %vm171_vm0, %v18344_v37 }
 0x7d5   : > { %14466 = vmatmul.mubr.msk.f32.gmra.mrb[6].mxu1 %vm171_vm0, %v18348_v38 }
 0x7d6   : > { %14468 = vmatprep.mubr.msk.f32.mxu1 %vm171_vm0, %v18352_v39 }
 0x7d9   : > { %14469 = vmatmul.mubr.msk.f32.gmra.mrb[8].mxu1 %vm171_vm0, %v18356_v40 }
 0x7da   : > { %14471 = vmatprep.mubr.msk.f32.mxu1 %vm171_vm0, %v18360_v41 }
 0x7dd   : > { %14472 = vmatmul.mubr.msk.f32.gmra.mrb[10].mxu1 %vm171_vm0, %v18364_v42 }
 0x7de   : > { %14474 = vmatprep.mubr.msk.f32.mxu1 %vm171_vm0, %v18368_v45 }
 0x7e1   : > { %14475 = vmatmul.mubr.msk.f32.gmra.mrb[12].mxu1 %vm171_vm0, %v18372_v46 }
 0x7e2   : > { %14477 = vmatprep.mubr.msk.f32.mxu1 %vm171_vm0, %v18376_v47 }
 0x7e5   : > { %14478 = vmatmul.mubr.msk.f32.gmra.mrb[14].mxu1 %vm171_vm0, %v18380_v48 }
 0x7e6   : > { %14480 = vmatprep.mubr.msk.f32.mxu1 %vm171_vm0, %v18384_v49 }
 0x7e9   : > { %14481 = vmatmul.mubr.msk.f32.gmra.mrb[16].mxu1 %vm171_vm0, %v18388_v50 }
 0x7ea   : > { %14483 = vmatprep.mubr.msk.f32.mxu1 %vm171_vm0, %v18392_v54 }
 0x7ed   : > { %14484 = vmatmul.mubr.msk.f32.gmra.mrb[18].mxu1 %vm171_vm0, %v18396_v55 }
 0x7ee   : > { %14486 = vmatprep.mubr.msk.f32.mxu1 %vm171_vm0, %v18400_v56 }
 0x7f1   : > { %14487 = vmatmul.mubr.msk.f32.gmra.mrb[20].mxu1 %vm171_vm0, %v18404_v57 }
 0x7f2   : > { %14489 = vmatprep.mubr.msk.f32.mxu1 %vm171_vm0, %v18408_v58 }
 0x7f5   : > { %14490 = vmatmul.mubr.msk.f32.gmra.mrb[22].mxu1 %vm171_vm0, %v18412_v59 }
 0x7f6   : > { %14492 = vmatprep.mubr.msk.f32.mxu1 %vm171_vm0, %v18416_v62 }
 0x7f9   : > { %14493 = vmatmul.mubr.msk.f32.gmra.mrb[24].mxu1 %vm171_vm0, %v18420_v63 }
 0x7fa   : > { %14495 = vmatprep.mubr.msk.f32.mxu1 %vm171_vm0, %v18424_v0 }
 0x7fd   : > { %14496 = vmatmul.mubr.msk.f32.gmra.mrb[26].mxu1 %vm171_vm0, %v18428_v1 }
 0x7fe   : > { %14498 = vmatprep.mubr.msk.f32.mxu1 %vm171_vm0, %v18432_v2 }
 0x801   : > { %14499 = vmatmul.mubr.msk.f32.gmra.mrb[28].mxu1 %vm171_vm0, %v18436_v52 }
 0x802   : > { %14501 = vmatprep.mubr.msk.f32.mxu1 %vm171_vm0, %v18440_v3 }
 0x805   : > { %14502 = vmatmul.mubr.msk.f32.gmra.mrb[30].mxu1 %vm171_vm0, %v18444_v6 }
 0x806   : > { %14506 = vmatprep.mubr.msk.f32.mxu1 %vm171_vm0, %v8762_v31  ;;  %v18665_v31 = vld [vmem:[#allocation2 + $0x1b2] sm:$0xff] }
 0x809   : > { %14507 = vmatmul.mubr.msk.f32.vlgmr.msra.gmra.mrb[0].mxu1 %vm171_vm0, %v8763_v32  ;;  %v18669_v32 = vld [vmem:[#allocation2 + $0x1ca] sm:$0xff] }
 0x80a   : > { %14555 = vmatpush3.msra.mxu1 %v18330_v30  ;;  %14509 = vmatprep.mubr.msk.f32.mxu1 %vm171_vm0, %v18336_v33  ;;  %v18661_v30 = vld [vmem:[#allocation2 + $0x1aa] sm:$0xff] }
 0x80b   : > { %14604 = vmatprep.subr.mxu1 %v11380_v7 }
 0x80d   : > { %14510 = vmatmul.mubr.msk.f32.gmra.mrb[2].mxu1 %vm171_vm0, %v18340_v34 }
 0x80e   : > { %14512 = vmatprep.mubr.msk.f32.mxu1 %vm171_vm0, %v18344_v37 }
 0x811   : > { %14513 = vmatmul.mubr.msk.f32.gmra.mrb[4].mxu1 %vm171_vm0, %v18348_v38 }
 0x812   : > { %14515 = vmatprep.mubr.msk.f32.mxu1 %vm171_vm0, %v18352_v39 }
 0x815   : > { %14516 = vmatmul.mubr.msk.f32.gmra.mrb[6].mxu1 %vm171_vm0, %v18356_v40 }
 0x816   : > { %14518 = vmatprep.mubr.msk.f32.mxu1 %vm171_vm0, %v18360_v41 }
 0x819   : > { %14519 = vmatmul.mubr.msk.f32.gmra.mrb[8].mxu1 %vm171_vm0, %v18364_v42 }
 0x81a   : > { %14521 = vmatprep.mubr.msk.f32.mxu1 %vm171_vm0, %v18368_v45 }
 0x81d   : > { %14522 = vmatmul.mubr.msk.f32.gmra.mrb[10].mxu1 %vm171_vm0, %v18372_v46 }
 0x81e   : > { %14524 = vmatprep.mubr.msk.f32.mxu1 %vm171_vm0, %v18376_v47 }
 0x821   : > { %14525 = vmatmul.mubr.msk.f32.gmra.mrb[12].mxu1 %vm171_vm0, %v18380_v48 }
 0x822   : > { %14527 = vmatprep.mubr.msk.f32.mxu1 %vm171_vm0, %v18384_v49 }
 0x825   : > { %14528 = vmatmul.mubr.msk.f32.gmra.mrb[14].mxu1 %vm171_vm0, %v18388_v50 }
 0x826   : > { %14530 = vmatprep.mubr.msk.f32.mxu1 %vm171_vm0, %v18392_v54 }
 0x829   : > { %14531 = vmatmul.mubr.msk.f32.gmra.mrb[16].mxu1 %vm171_vm0, %v18396_v55 }
 0x82a   : > { %14533 = vmatprep.mubr.msk.f32.mxu1 %vm171_vm0, %v18400_v56 }
 0x82d   : > { %14534 = vmatmul.mubr.msk.f32.gmra.mrb[18].mxu1 %vm171_vm0, %v18404_v57 }
 0x82e   : > { %14536 = vmatprep.mubr.msk.f32.mxu1 %vm171_vm0, %v18408_v58 }
 0x831   : > { %14537 = vmatmul.mubr.msk.f32.gmra.mrb[20].mxu1 %vm171_vm0, %v18412_v59 }
 0x832   : > { %14539 = vmatprep.mubr.msk.f32.mxu1 %vm171_vm0, %v18416_v62 }
 0x835   : > { %14540 = vmatmul.mubr.msk.f32.gmra.mrb[22].mxu1 %vm171_vm0, %v18420_v63 }
 0x836   : > { %14542 = vmatprep.mubr.msk.f32.mxu1 %vm171_vm0, %v18424_v0 }
 0x839   : > { %14543 = vmatmul.mubr.msk.f32.gmra.mrb[24].mxu1 %vm171_vm0, %v18428_v1 }
 0x83a   : > { %14545 = vmatprep.mubr.msk.f32.mxu1 %vm171_vm0, %v18432_v2 }
 0x83d   : > { %14546 = vmatmul.mubr.msk.f32.gmra.mrb[26].mxu1 %vm171_vm0, %v18436_v52 }
 0x83e   : > { %14548 = vmatprep.mubr.msk.f32.mxu1 %vm171_vm0, %v18440_v3 }
 0x841   : > { %14549 = vmatmul.mubr.msk.f32.gmra.mrb[28].mxu1 %vm171_vm0, %v18444_v6 }
 0x842   : > { %14551 = vmatprep.mubr.msk.f32.mxu1 %vm171_vm0, %v8792_v8 }
 0x845   : > { %14552 = vmatmul.mubr.msk.f32.gmra.mrb[30].mxu1 %vm171_vm0, %v8793_v9 }
 0x846   : > { %14556 = vmatprep.mubr.msk.f32.mxu1 %vm171_vm0, %v18336_v33  ;;  %v18673_v33 = vld [vmem:[#allocation2 + $0x1d2] sm:$0xff] }
 0x849   : > { %14557 = vmatmul.mubr.msk.f32.vlgmr.msra.gmra.mrb[0].mxu1 %vm171_vm0, %v18340_v34  ;;  %v18677_v34 = vld [vmem:[#allocation2 + $0x1ea] sm:$0xff] }
 0x84a   : > { %14605 = vmatpush3.msra.mxu1 %v11380_v7  ;;  %14559 = vmatprep.mubr.msk.f32.mxu1 %vm171_vm0, %v18344_v37  ;;  %v9706_v37 = vld [vmem:[#allocation2 + $0x1f2] sm:$0xff] }
 0x84b   : > { %14654 = vmatprep.subr.mxu1 %v11381_v12 }
 0x84d   : > { %14560 = vmatmul.mubr.msk.f32.gmra.mrb[2].mxu1 %vm171_vm0, %v18348_v38  ;;  %v9707_v38 = vld [vmem:[#allocation2 + $0x20a] sm:$0xff] }
 0x84e   : > { %14562 = vmatprep.mubr.msk.f32.mxu1 %vm171_vm0, %v18352_v39  ;;  %v9708_v39 = vld [vmem:[#allocation2 + $0x212] sm:$0xff] }
 0x851   : > { %14563 = vmatmul.mubr.msk.f32.gmra.mrb[4].mxu1 %vm171_vm0, %v18356_v40  ;;  %v9709_v40 = vld [vmem:[#allocation2 + $0x22a] sm:$0xff] }
 0x852   : > { %14565 = vmatprep.mubr.msk.f32.mxu1 %vm171_vm0, %v18360_v41  ;;  %v9710_v41 = vld [vmem:[#allocation2 + $0x232] sm:$0xff] }
 0x855   : > { %14566 = vmatmul.mubr.msk.f32.gmra.mrb[6].mxu1 %vm171_vm0, %v18364_v42  ;;  %v9711_v42 = vld [vmem:[#allocation2 + $0x24a] sm:$0xff] }
 0x856   : > { %14568 = vmatprep.mubr.msk.f32.mxu1 %vm171_vm0, %v18368_v45  ;;  %v9712_v45 = vld [vmem:[#allocation2 + $0x252] sm:$0xff] }
 0x859   : > { %14569 = vmatmul.mubr.msk.f32.gmra.mrb[8].mxu1 %vm171_vm0, %v18372_v46  ;;  %v9713_v46 = vld [vmem:[#allocation2 + $0x26a] sm:$0xff] }
 0x85a   : > { %14571 = vmatprep.mubr.msk.f32.mxu1 %vm171_vm0, %v18376_v47  ;;  %v9714_v47 = vld [vmem:[#allocation2 + $0x272] sm:$0xff] }
 0x85d   : > { %14572 = vmatmul.mubr.msk.f32.gmra.mrb[10].mxu1 %vm171_vm0, %v18380_v48  ;;  %v18796_v48 = vld [vmem:[%s18938_s2 + $0x1] ss:$0 sm:$0xff] }
 0x85e   : > { %14574 = vmatprep.mubr.msk.f32.mxu1 %vm171_vm0, %v18384_v49 }
 0x861   : > { %14575 = vmatmul.mubr.msk.f32.gmra.mrb[12].mxu1 %vm171_vm0, %v18388_v50  ;;  %v10645_v50 = vld [vmem:[%s15899_s22 + $0x8] sm:$0xff] }
 0x862   : > { %14577 = vmatprep.mubr.msk.f32.mxu1 %vm171_vm0, %v18392_v54 }
 0x865   : > { %14578 = vmatmul.mubr.msk.f32.gmra.mrb[14].mxu1 %vm171_vm0, %v18396_v55 }
 0x866   : > { %14580 = vmatprep.mubr.msk.f32.mxu1 %vm171_vm0, %v18400_v56  ;;  %v10644_v56 = vld [vmem:[%s15899_s22] sm:$0xff] }
 0x869   : > { %14581 = vmatmul.mubr.msk.f32.gmra.mrb[16].mxu1 %vm171_vm0, %v18404_v57 }
 0x86a   : > { %14583 = vmatprep.mubr.msk.f32.mxu1 %vm171_vm0, %v18408_v58 }
 0x86d   : > { %14584 = vmatmul.mubr.msk.f32.gmra.mrb[18].mxu1 %vm171_vm0, %v18412_v59 }
 0x86e   : > { %14586 = vmatprep.mubr.msk.f32.mxu1 %vm171_vm0, %v18416_v62 }
 0x871   : > { %14587 = vmatmul.mubr.msk.f32.gmra.mrb[20].mxu1 %vm171_vm0, %v18420_v63  ;;  %v10647_v63 = vld [vmem:[%s15899_s22 + $0x18] sm:$0xff] }
 0x872   : > { %14589 = vmatprep.mubr.msk.f32.mxu1 %vm171_vm0, %v18424_v0 }
 0x875   : > { %14590 = vmatmul.mubr.msk.f32.gmra.mrb[22].mxu1 %vm171_vm0, %v18428_v1 }
 0x876   : > { %14592 = vmatprep.mubr.msk.f32.mxu1 %vm171_vm0, %v18432_v2  ;;  %v10646_v2 = vld [vmem:[%s15899_s22 + $0x10] sm:$0xff] }
 0x879   : > { %14593 = vmatmul.mubr.msk.f32.gmra.mrb[24].mxu1 %vm171_vm0, %v18436_v52 }
 0x87a   : > { %14595 = vmatprep.mubr.msk.f32.mxu1 %vm171_vm0, %v18440_v3 }
 0x87d   : > { %14596 = vmatmul.mubr.msk.f32.gmra.mrb[26].mxu1 %vm171_vm0, %v18444_v6 }
 0x87e   : > { %14598 = vmatprep.mubr.msk.f32.mxu1 %vm171_vm0, %v8792_v8  ;;  %v10649_v8 = vld [vmem:[%s15899_s22 + $0x28] sm:$0xff] }
 0x881   : > { %14599 = vmatmul.mubr.msk.f32.gmra.mrb[28].mxu1 %vm171_vm0, %v8793_v9 }
 0x882   : > { %14601 = vmatprep.mubr.msk.f32.mxu1 %vm171_vm0, %v8794_v14  ;;  %v10648_v14 = vld [vmem:[%s15899_s22 + $0x20] sm:$0xff] }
 0x885   : > { %14602 = vmatmul.mubr.msk.f32.gmra.mrb[30].mxu1 %vm171_vm0, %v8795_v17 }
 0x886   : > { %14606 = vmatprep.mubr.msk.f32.mxu1 %vm171_vm0, %v9675_v10 }
 0x889   : > { %14607 = vmatmul.mubr.msk.f32.vlgmr.msra.gmra.mrb[0].mxu1 %vm171_vm0, %v9676_v11 }
 0x88a   : > { %14655 = vmatpush3.msra.mxu1 %v11381_v12  ;;  %14609 = vmatprep.mubr.msk.f32.mxu1 %vm171_vm0, %v9677_v13 }
 0x88b   : > { %14704 = vmatprep.subr.mxu1 %v18579_v19 }
 0x88d   : > { %14610 = vmatmul.mubr.msk.f32.gmra.mrb[2].mxu1 %vm171_vm0, %v9678_v20 }
 0x88e   : > { %14612 = vmatprep.mubr.msk.f32.mxu1 %vm171_vm0, %v9679_v27 }
 0x891   : > { %14613 = vmatmul.mubr.msk.f32.gmra.mrb[4].mxu1 %vm171_vm0, %v9680_v28 }
 0x892   : > { %14615 = vmatprep.mubr.msk.f32.mxu1 %vm171_vm0, %v9681_v35 }
 0x895   : > { %14616 = vmatmul.mubr.msk.f32.gmra.mrb[6].mxu1 %vm171_vm0, %v9682_v36 }
 0x896   : > { %14618 = vmatprep.mubr.msk.f32.mxu1 %vm171_vm0, %v18589_v43 }
 0x899   : > { %14619 = vmatmul.mubr.msk.f32.gmra.mrb[8].mxu1 %vm171_vm0, %v18593_v44 }
 0x89a   : > { %14621 = vmatprep.mubr.msk.f32.mxu1 %vm171_vm0, %v18597_v51 }
 0x89d   : > { %14622 = vmatmul.mubr.msk.f32.gmra.mrb[10].mxu1 %vm171_vm0, %v18601_v53 }
 0x89e   : > { %14624 = vmatprep.mubr.msk.f32.mxu1 %vm171_vm0, %v18605_v60 }
 0x8a1   : > { %14625 = vmatmul.mubr.msk.f32.gmra.mrb[12].mxu1 %vm171_vm0, %v18609_v61 }
 0x8a2   : > { %14627 = vmatprep.mubr.msk.f32.mxu1 %vm171_vm0, %v18613_v4 }
 0x8a5   : > { %14628 = vmatmul.mubr.msk.f32.gmra.mrb[14].mxu1 %vm171_vm0, %v18617_v5 }
 0x8a6   : > { %14630 = vmatprep.mubr.msk.f32.mxu1 %vm171_vm0, %v18621_v15 }
 0x8a9   : > { %14631 = vmatmul.mubr.msk.f32.gmra.mrb[16].mxu1 %vm171_vm0, %v18625_v16 }
 0x8aa   : > { %14633 = vmatprep.mubr.msk.f32.mxu1 %vm171_vm0, %v18629_v18 }
 0x8ad   : > { %14634 = vmatmul.mubr.msk.f32.gmra.mrb[18].mxu1 %vm171_vm0, %v18633_v21 }
 0x8ae   : > { %14636 = vmatprep.mubr.msk.f32.mxu1 %vm171_vm0, %v18637_v22 }
 0x8b1   : > { %14637 = vmatmul.mubr.msk.f32.gmra.mrb[20].mxu1 %vm171_vm0, %v18641_v23 }
 0x8b2   : > { %14639 = vmatprep.mubr.msk.f32.mxu1 %vm171_vm0, %v18645_v24 }
 0x8b5   : > { %14640 = vmatmul.mubr.msk.f32.gmra.mrb[22].mxu1 %vm171_vm0, %v18649_v25 }
 0x8b6   : > { %14642 = vmatprep.mubr.msk.f32.mxu1 %vm171_vm0, %v18653_v26 }
 0x8b9   : > { %14643 = vmatmul.mubr.msk.f32.gmra.mrb[24].mxu1 %vm171_vm0, %v18657_v29 }
 0x8ba   : > { %14645 = vmatprep.mubr.msk.f32.mxu1 %vm171_vm0, %v18661_v30 }
 0x8bd   : > { %14646 = vmatmul.mubr.msk.f32.gmra.mrb[26].mxu1 %vm171_vm0, %v18665_v31 }
 0x8be   : > { %14648 = vmatprep.mubr.msk.f32.mxu1 %vm171_vm0, %v18669_v32 }
 0x8c1   : > { %14649 = vmatmul.mubr.msk.f32.gmra.mrb[28].mxu1 %vm171_vm0, %v18673_v33 }
 0x8c2   : > { %14651 = vmatprep.mubr.msk.f32.mxu1 %vm171_vm0, %v18677_v34 }
 0x8c5   : > { %14652 = vmatmul.mubr.msk.f32.gmra.mrb[30].mxu1 %vm171_vm0, %v9706_v37 }
 0x8c6   : > { %14656 = vmatprep.mubr.msk.f32.mxu1 %vm171_vm0, %v9679_v27 }
 0x8c9   : > { %14657 = vmatmul.mubr.msk.f32.vlgmr.msra.gmra.mrb[0].mxu1 %vm171_vm0, %v9680_v28  ;;  %v10650_v28 = vld [vmem:[%s15899_s22 + $0x30] sm:$0xff] }
 0x8ca   : > { %14705 = vmatpush3.msra.mxu1 %v18579_v19  ;;  %14659 = vmatprep.mubr.msk.f32.mxu1 %vm171_vm0, %v9681_v35  ;;  %v10651_v19 = vld [vmem:[%s15899_s22 + $0x38] sm:$0xff] }
 0x8cd   : > { %14660 = vmatmul.mubr.msk.f32.gmra.mrb[2].mxu1 %vm171_vm0, %v9682_v36 }
 0x8ce   : > { %14662 = vmatprep.mubr.msk.f32.mxu1 %vm171_vm0, %v18589_v43 }
 0x8d1   : > { %14663 = vmatmul.mubr.msk.f32.gmra.mrb[4].mxu1 %vm171_vm0, %v18593_v44 }
 0x8d2   : > { %14665 = vmatprep.mubr.msk.f32.mxu1 %vm171_vm0, %v18597_v51 }
 0x8d5   : > { %14666 = vmatmul.mubr.msk.f32.gmra.mrb[6].mxu1 %vm171_vm0, %v18601_v53 }
 0x8d6   : > { %14668 = vmatprep.mubr.msk.f32.mxu1 %vm171_vm0, %v18605_v60 }
 0x8d9   : > { %14669 = vmatmul.mubr.msk.f32.gmra.mrb[8].mxu1 %vm171_vm0, %v18609_v61 }
 0x8da   : > { %14671 = vmatprep.mubr.msk.f32.mxu1 %vm171_vm0, %v18613_v4 }
 0x8dd   : > { %14672 = vmatmul.mubr.msk.f32.gmra.mrb[10].mxu1 %vm171_vm0, %v18617_v5 }
 0x8de   : > { %14674 = vmatprep.mubr.msk.f32.mxu1 %vm171_vm0, %v18621_v15 }
 0x8e1   : > { %14675 = vmatmul.mubr.msk.f32.gmra.mrb[12].mxu1 %vm171_vm0, %v18625_v16 }
 0x8e2   : > { %14677 = vmatprep.mubr.msk.f32.mxu1 %vm171_vm0, %v18629_v18 }
 0x8e5   : > { %14678 = vmatmul.mubr.msk.f32.gmra.mrb[14].mxu1 %vm171_vm0, %v18633_v21 }
 0x8e6   : > { %14680 = vmatprep.mubr.msk.f32.mxu1 %vm171_vm0, %v18637_v22 }
 0x8e9   : > { %14681 = vmatmul.mubr.msk.f32.gmra.mrb[16].mxu1 %vm171_vm0, %v18641_v23 }
 0x8ea   : > { %14683 = vmatprep.mubr.msk.f32.mxu1 %vm171_vm0, %v18645_v24 }
 0x8ed   : > { %14684 = vmatmul.mubr.msk.f32.gmra.mrb[18].mxu1 %vm171_vm0, %v18649_v25 }
 0x8ee   : > { %14686 = vmatprep.mubr.msk.f32.mxu1 %vm171_vm0, %v18653_v26 }
 0x8f1   : > { %14687 = vmatmul.mubr.msk.f32.gmra.mrb[20].mxu1 %vm171_vm0, %v18657_v29 }
 0x8f2   : > { %14689 = vmatprep.mubr.msk.f32.mxu1 %vm171_vm0, %v18661_v30 }
 0x8f5   : > { %14690 = vmatmul.mubr.msk.f32.gmra.mrb[22].mxu1 %vm171_vm0, %v18665_v31 }
 0x8f6   : > { %14692 = vmatprep.mubr.msk.f32.mxu1 %vm171_vm0, %v18669_v32 }
 0x8f9   : > { %14693 = vmatmul.mubr.msk.f32.gmra.mrb[24].mxu1 %vm171_vm0, %v18673_v33 }
 0x8fa   : > { %14695 = vmatprep.mubr.msk.f32.mxu1 %vm171_vm0, %v18677_v34 }
 0x8fd   : > { %14696 = vmatmul.mubr.msk.f32.gmra.mrb[26].mxu1 %vm171_vm0, %v9706_v37 }
 0x8fe   : > { %14698 = vmatprep.mubr.msk.f32.mxu1 %vm171_vm0, %v9707_v38 }
 0x901   : > { %14699 = vmatmul.mubr.msk.f32.gmra.mrb[28].mxu1 %vm171_vm0, %v9708_v39 }
 0x902   : > { %14701 = vmatprep.mubr.msk.f32.mxu1 %vm171_vm0, %v9709_v40 }
 0x905   : > { %14702 = vmatmul.mubr.msk.f32.gmra.mrb[30].mxu1 %vm171_vm0, %v9710_v41 }
 0x906   : > { %14706 = vmatprep.mubr.msk.f32.mxu1 %vm171_vm0, %v18589_v43 }
 0x909   : > { %14707 = vmatmul.mubr.msk.f32.vlgmr.msra.gmra.mrb[0].mxu1 %vm171_vm0, %v18593_v44 }
 0x90a   : > { %14709 = vmatprep.mubr.msk.f32.mxu1 %vm171_vm0, %v18597_v51  ;;  %v10653_v51 = vld [vmem:[%s15899_s22 + $0x48] sm:$0xff] }
 0x90d   : > { %14710 = vmatmul.mubr.msk.f32.gmra.mrb[2].mxu1 %vm171_vm0, %v18601_v53 }
 0x90e   : > { %14712 = vmatprep.mubr.msk.f32.mxu1 %vm171_vm0, %v18605_v60 }
 0x911   : > { %14713 = vmatmul.mubr.msk.f32.gmra.mrb[4].mxu1 %vm171_vm0, %v18609_v61  ;;  %v10652_v61 = vld [vmem:[%s15899_s22 + $0x40] sm:$0xff] }
 0x912   : > { %14715 = vmatprep.mubr.msk.f32.mxu1 %vm171_vm0, %v18613_v4 }
 0x915   : > { %14716 = vmatmul.mubr.msk.f32.gmra.mrb[6].mxu1 %vm171_vm0, %v18617_v5 }
 0x916   : > { %14718 = vmatprep.mubr.msk.f32.mxu1 %vm171_vm0, %v18621_v15 }
 0x919   : > { %14719 = vmatmul.mubr.msk.f32.gmra.mrb[8].mxu1 %vm171_vm0, %v18625_v16 }
 0x91a   : > { %14721 = vmatprep.mubr.msk.f32.mxu1 %vm171_vm0, %v18629_v18  ;;  %v10655_v18 = vld [vmem:[%s15899_s22 + $0x58] sm:$0xff] }
 0x91d   : > { %14722 = vmatmul.mubr.msk.f32.gmra.mrb[10].mxu1 %vm171_vm0, %v18633_v21 }
 0x91e   : > { %14724 = vmatprep.mubr.msk.f32.mxu1 %vm171_vm0, %v18637_v22 }
 0x921   : > { %14725 = vmatmul.mubr.msk.f32.gmra.mrb[12].mxu1 %vm171_vm0, %v18641_v23  ;;  %v10654_v23 = vld [vmem:[%s15899_s22 + $0x50] sm:$0xff] }
 0x922   : > { %14727 = vmatprep.mubr.msk.f32.mxu1 %vm171_vm0, %v18645_v24 }
 0x925   : > { %14728 = vmatmul.mubr.msk.f32.gmra.mrb[14].mxu1 %vm171_vm0, %v18649_v25 }
 0x926   : > { %14730 = vmatprep.mubr.msk.f32.mxu1 %vm171_vm0, %v18653_v26 }
 0x929   : > { %14731 = vmatmul.mubr.msk.f32.gmra.mrb[16].mxu1 %vm171_vm0, %v18657_v29 }
 0x92a   : > { %14733 = vmatprep.mubr.msk.f32.mxu1 %vm171_vm0, %v18661_v30  ;;  %v10657_v30 = vld [vmem:[%s15899_s22 + $0x68] sm:$0xff] }
 0x92d   : > { %14734 = vmatmul.mubr.msk.f32.gmra.mrb[18].mxu1 %vm171_vm0, %v18665_v31 }
 0x92e   : > { %14736 = vmatprep.mubr.msk.f32.mxu1 %vm171_vm0, %v18669_v32 }
 0x931   : > { %14737 = vmatmul.mubr.msk.f32.gmra.mrb[20].mxu1 %vm171_vm0, %v18673_v33  ;;  %v10656_v33 = vld [vmem:[%s15899_s22 + $0x60] sm:$0xff] }
 0x932   : > { %14739 = vmatprep.mubr.msk.f32.mxu1 %vm171_vm0, %v18677_v34 }
 0x935   : > { %14740 = vmatmul.mubr.msk.f32.gmra.mrb[22].mxu1 %vm171_vm0, %v9706_v37 }
 0x936   : > { %14742 = vmatprep.mubr.msk.f32.mxu1 %vm171_vm0, %v9707_v38 }
 0x939   : > { %14743 = vmatmul.mubr.msk.f32.gmra.mrb[24].mxu1 %vm171_vm0, %v9708_v39 }
 0x93a   : > { %14745 = vmatprep.mubr.msk.f32.mxu1 %vm171_vm0, %v9709_v40  ;;  %v10659_v40 = vld [vmem:[%s15899_s22 + $0x78] sm:$0xff] }
 0x93d   : > { %14746 = vmatmul.mubr.msk.f32.gmra.mrb[26].mxu1 %vm171_vm0, %v9710_v41 }
 0x93e   : > { %14748 = vmatprep.mubr.msk.f32.mxu1 %vm171_vm0, %v9711_v42 }
 0x941   : > { %14749 = vmatmul.mubr.msk.f32.gmra.mrb[28].mxu1 %vm171_vm0, %v9712_v45  ;;  %v10658_v45 = vld [vmem:[%s15899_s22 + $0x70] sm:$0xff] }
 0x942   : > { %14751 = vmatprep.mubr.msk.f32.mxu1 %vm171_vm0, %v9713_v46 }
 0x945   : > { %14752 = vmatmul.mubr.msk.f32.gmra.mrb[30].mxu1 %vm171_vm0, %v9714_v47 }
 0x9dc   : > { %v14708_v49 = vpop.f32.mrb[0].mxu1 }
 0x9dd   : > { %v10613_v54 = vadd.f32 %v14708_v49, %v18796_v48  ;;  %v10415_v55 = vpop.f32.mrb[1].mxu1 }
 0x9de   : > { %v10612_v57 = vadd.f32 %v18796_v48, %v10415_v55 }
 0x9df   : > { %v10677_v58 = vadd.f32 %v10645_v50, %v10613_v54  ;;  %v10661_v54 = vld [vmem:[%s15899_s22 + $0x88] sm:$0xff] }
 0x9e0   : > { %v10676_v59 = vadd.f32 %v10644_v56, %v10612_v57  ;;  %v14711_v62 = vpop.f32.mrb[2].mxu1  ;;  %v10660_v57 = vld [vmem:[%s15899_s22 + $0x80] sm:$0xff] }
 0x9e1   : > { %10709 = vst.msk [vmem:[%s18806_s24 + $0x8] sm:$0xff] %vm171_vm0, %v10677_v58  ;;  %v10615_v0 = vadd.f32 %v14711_v62, %v18796_v48  ;;  %v10425_v1 = vpop.f32.mrb[3].mxu1 }
 0x9e2   : > { %10708 = vst.msk [vmem:[%s18806_s24] sm:$0xff] %vm171_vm0, %v10676_v59  ;;  %v10614_v52 = vadd.f32 %v18796_v48, %v10425_v1 }
 0x9e3   : > { %v10679_v3 = vadd.f32 %v10647_v63, %v10615_v0  ;;  %v10663_v0 = vld [vmem:[%s15899_s22 + $0x98] sm:$0xff] }
 0x9e4   : > { %v10678_v6 = vadd.f32 %v10646_v2, %v10614_v52  ;;  %v14714_v7 = vpop.f32.mrb[4].mxu1  ;;  %v10662_v52 = vld [vmem:[%s15899_s22 + $0x90] sm:$0xff] }
 0x9e5   : > { %10711 = vst.msk [vmem:[%s18806_s24 + $0x18] sm:$0xff] %vm171_vm0, %v10679_v3  ;;  %v10617_v9 = vadd.f32 %v14714_v7, %v18796_v48  ;;  %v10435_v12 = vpop.f32.mrb[5].mxu1 }
 0x9e6   : > { %10710 = vst.msk [vmem:[%s18806_s24 + $0x10] sm:$0xff] %vm171_vm0, %v10678_v6  ;;  %v10616_v17 = vadd.f32 %v18796_v48, %v10435_v12 }
 0x9e7   : > { %v10681_v10 = vadd.f32 %v10649_v8, %v10617_v9  ;;  %v10665_v9 = vld [vmem:[%s15899_s22 + $0xa8] sm:$0xff] }
 0x9e8   : > { %v10680_v11 = vadd.f32 %v10648_v14, %v10616_v17  ;;  %v14717_v13 = vpop.f32.mrb[6].mxu1  ;;  %v10664_v17 = vld [vmem:[%s15899_s22 + $0xa0] sm:$0xff] }
 0x9e9   : > { %10713 = vst.msk [vmem:[%s18806_s24 + $0x28] sm:$0xff] %vm171_vm0, %v10681_v10  ;;  %v10619_v20 = vadd.f32 %v14717_v13, %v18796_v48  ;;  %v10445_v27 = vpop.f32.mrb[7].mxu1 }
 0x9ea   : > { %10712 = vst.msk [vmem:[%s18806_s24 + $0x20] sm:$0xff] %vm171_vm0, %v10680_v11  ;;  %v10618_v35 = vadd.f32 %v18796_v48, %v10445_v27 }
 0x9eb   : > { %v10683_v36 = vadd.f32 %v10651_v19, %v10619_v20  ;;  %v10667_v20 = vld [vmem:[%s15899_s22 + $0xb8] sm:$0xff] }
 0x9ec   : > { %v10682_v43 = vadd.f32 %v10650_v28, %v10618_v35  ;;  %v14720_v44 = vpop.f32.mrb[8].mxu1  ;;  %v10666_v35 = vld [vmem:[%s15899_s22 + $0xb0] sm:$0xff] }
 0x9ed   : > { %10715 = vst.msk [vmem:[%s18806_s24 + $0x38] sm:$0xff] %vm171_vm0, %v10683_v36  ;;  %v10621_v53 = vadd.f32 %v14720_v44, %v18796_v48  ;;  %v10455_v60 = vpop.f32.mrb[9].mxu1 }
 0x9ee   : > { %10714 = vst.msk [vmem:[%s18806_s24 + $0x30] sm:$0xff] %vm171_vm0, %v10682_v43  ;;  %v10620_v4 = vadd.f32 %v18796_v48, %v10455_v60 }
 0x9ef   : > { %v10685_v5 = vadd.f32 %v10653_v51, %v10621_v53  ;;  %v10669_v53 = vld [vmem:[%s15899_s22 + $0xc8] sm:$0xff] }
 0x9f0   : > { %v10684_v15 = vadd.f32 %v10652_v61, %v10620_v4  ;;  %v14723_v16 = vpop.f32.mrb[10].mxu1  ;;  %v10668_v4 = vld [vmem:[%s15899_s22 + $0xc0] sm:$0xff] }
 0x9f1   : > { %10717 = vst.msk [vmem:[%s18806_s24 + $0x48] sm:$0xff] %vm171_vm0, %v10685_v5  ;;  %v10623_v21 = vadd.f32 %v14723_v16, %v18796_v48  ;;  %v10465_v22 = vpop.f32.mrb[11].mxu1 }
 0x9f2   : > { %10716 = vst.msk [vmem:[%s18806_s24 + $0x40] sm:$0xff] %vm171_vm0, %v10684_v15  ;;  %v10622_v24 = vadd.f32 %v18796_v48, %v10465_v22 }
 0x9f3   : > { %v10687_v25 = vadd.f32 %v10655_v18, %v10623_v21  ;;  %v10671_v21 = vld [vmem:[%s15899_s22 + $0xd8] sm:$0xff] }
 0x9f4   : > { %v10686_v26 = vadd.f32 %v10654_v23, %v10622_v24  ;;  %v14726_v29 = vpop.f32.mrb[12].mxu1  ;;  %v10670_v24 = vld [vmem:[%s15899_s22 + $0xd0] sm:$0xff] }
 0x9f5   : > { %10719 = vst.msk [vmem:[%s18806_s24 + $0x58] sm:$0xff] %vm171_vm0, %v10687_v25  ;;  %v10625_v31 = vadd.f32 %v14726_v29, %v18796_v48  ;;  %v10475_v32 = vpop.f32.mrb[13].mxu1 }
 0x9f6   : > { %10718 = vst.msk [vmem:[%s18806_s24 + $0x50] sm:$0xff] %vm171_vm0, %v10686_v26  ;;  %v10624_v34 = vadd.f32 %v18796_v48, %v10475_v32 }
 0x9f7   : > { %v10689_v37 = vadd.f32 %v10657_v30, %v10625_v31  ;;  %v10673_v31 = vld [vmem:[%s15899_s22 + $0xe8] sm:$0xff] }
 0x9f8   : > { %v10688_v38 = vadd.f32 %v10656_v33, %v10624_v34  ;;  %v14729_v39 = vpop.f32.mrb[14].mxu1  ;;  %v10672_v34 = vld [vmem:[%s15899_s22 + $0xe0] sm:$0xff] }
 0x9f9   : > { %10721 = vst.msk [vmem:[%s18806_s24 + $0x68] sm:$0xff] %vm171_vm0, %v10689_v37  ;;  %v10627_v41 = vadd.f32 %v14729_v39, %v18796_v48  ;;  %v10485_v42 = vpop.f32.mrb[15].mxu1 }
 0x9fa   : > { %10720 = vst.msk [vmem:[%s18806_s24 + $0x60] sm:$0xff] %vm171_vm0, %v10688_v38  ;;  %v10626_v46 = vadd.f32 %v18796_v48, %v10485_v42 }
 0x9fb   : > { %v10691_v47 = vadd.f32 %v10659_v40, %v10627_v41  ;;  %v10675_v41 = vld [vmem:[%s15899_s22 + $0xf8] sm:$0xff] }
 0x9fc   : > { %v10690_v49 = vadd.f32 %v10658_v45, %v10626_v46  ;;  %v14732_v50 = vpop.f32.mrb[16].mxu1  ;;  %v10674_v46 = vld [vmem:[%s15899_s22 + $0xf0] sm:$0xff] }
 0x9fd   : > { %10723 = vst.msk [vmem:[%s18806_s24 + $0x78] sm:$0xff] %vm171_vm0, %v10691_v47  ;;  %v10629_v55 = vadd.f32 %v14732_v50, %v18796_v48  ;;  %v10495_v56 = vpop.f32.mrb[17].mxu1 }
 0x9fe   : > { %10722 = vst.msk [vmem:[%s18806_s24 + $0x70] sm:$0xff] %vm171_vm0, %v10690_v49  ;;  %v10628_v58 = vadd.f32 %v18796_v48, %v10495_v56 }
 0x9ff   : > { %v10693_v59 = vadd.f32 %v10661_v54, %v10629_v55 }
 0xa00   : > { %v10692_v62 = vadd.f32 %v10660_v57, %v10628_v58  ;;  %v14735_v63 = vpop.f32.mrb[18].mxu1 }
 0xa01   : > { %10725 = vst.msk [vmem:[%s18806_s24 + $0x88] sm:$0xff] %vm171_vm0, %v10693_v59  ;;  %v10631_v1 = vadd.f32 %v14735_v63, %v18796_v48  ;;  %v10505_v2 = vpop.f32.mrb[19].mxu1 }
 0xa02   : > { %10724 = vst.msk [vmem:[%s18806_s24 + $0x80] sm:$0xff] %vm171_vm0, %v10692_v62  ;;  %v10630_v3 = vadd.f32 %v18796_v48, %v10505_v2 }
 0xa03   : > { %v10695_v6 = vadd.f32 %v10663_v0, %v10631_v1 }
 0xa04   : > { %v10694_v7 = vadd.f32 %v10662_v52, %v10630_v3  ;;  %v14738_v8 = vpop.f32.mrb[20].mxu1 }
 0xa05   : > { %10727 = vst.msk [vmem:[%s18806_s24 + $0x98] sm:$0xff] %vm171_vm0, %v10695_v6  ;;  %v10633_v12 = vadd.f32 %v14738_v8, %v18796_v48  ;;  %v10515_v14 = vpop.f32.mrb[21].mxu1 }
 0xa06   : > { %10726 = vst.msk [vmem:[%s18806_s24 + $0x90] sm:$0xff] %vm171_vm0, %v10694_v7  ;;  %v10632_v10 = vadd.f32 %v18796_v48, %v10515_v14 }
 0xa07   : > { %v10697_v11 = vadd.f32 %v10665_v9, %v10633_v12 }
 0xa08   : > { %v10696_v13 = vadd.f32 %v10664_v17, %v10632_v10  ;;  %v14741_v19 = vpop.f32.mrb[22].mxu1 }
 0xa09   : > { %10729 = vst.msk [vmem:[%s18806_s24 + $0xa8] sm:$0xff] %vm171_vm0, %v10697_v11  ;;  %v10635_v27 = vadd.f32 %v14741_v19, %v18796_v48  ;;  %v10525_v28 = vpop.f32.mrb[23].mxu1 }
 0xa0a   : > { %10728 = vst.msk [vmem:[%s18806_s24 + $0xa0] sm:$0xff] %vm171_vm0, %v10696_v13  ;;  %v10634_v36 = vadd.f32 %v18796_v48, %v10525_v28 }
 0xa0b   : > { %v10699_v43 = vadd.f32 %v10667_v20, %v10635_v27 }
 0xa0c   : > { %v10698_v44 = vadd.f32 %v10666_v35, %v10634_v36  ;;  %v14744_v51 = vpop.f32.mrb[24].mxu1 }
 0xa0d   : > { %10731 = vst.msk [vmem:[%s18806_s24 + $0xb8] sm:$0xff] %vm171_vm0, %v10699_v43  ;;  %v10637_v60 = vadd.f32 %v14744_v51, %v18796_v48  ;;  %v10535_v61 = vpop.f32.mrb[25].mxu1 }
 0xa0e   : > { %10730 = vst.msk [vmem:[%s18806_s24 + $0xb0] sm:$0xff] %vm171_vm0, %v10698_v44  ;;  %v10636_v5 = vadd.f32 %v18796_v48, %v10535_v61 }
 0xa0f   : > { %v10701_v15 = vadd.f32 %v10669_v53, %v10637_v60 }
 0xa10   : > { %v10700_v16 = vadd.f32 %v10668_v4, %v10636_v5  ;;  %v14747_v18 = vpop.f32.mrb[26].mxu1 }
 0xa11   : > { %10733 = vst.msk [vmem:[%s18806_s24 + $0xc8] sm:$0xff] %vm171_vm0, %v10701_v15  ;;  %v10639_v22 = vadd.f32 %v14747_v18, %v18796_v48  ;;  %v10545_v23 = vpop.f32.mrb[27].mxu1 }
 0xa12   : > { %10732 = vst.msk [vmem:[%s18806_s24 + $0xc0] sm:$0xff] %vm171_vm0, %v10700_v16  ;;  %v10638_v25 = vadd.f32 %v18796_v48, %v10545_v23 }
 0xa13   : > { %v10703_v26 = vadd.f32 %v10671_v21, %v10639_v22 }
 0xa14   : > { %v10702_v29 = vadd.f32 %v10670_v24, %v10638_v25  ;;  %v14750_v30 = vpop.f32.mrb[28].mxu1 }
 0xa15   : > { %10735 = vst.msk [vmem:[%s18806_s24 + $0xd8] sm:$0xff] %vm171_vm0, %v10703_v26  ;;  %v10641_v32 = vadd.f32 %v14750_v30, %v18796_v48  ;;  %v10555_v33 = vpop.f32.mrb[29].mxu1 }
 0xa16   : > { %10734 = vst.msk [vmem:[%s18806_s24 + $0xd0] sm:$0xff] %vm171_vm0, %v10702_v29  ;;  %v10640_v37 = vadd.f32 %v18796_v48, %v10555_v33 }
 0xa17   : > { %v10705_v38 = vadd.f32 %v10673_v31, %v10641_v32 }
 0xa18   : > { %v10704_v39 = vadd.f32 %v10672_v34, %v10640_v37  ;;  %v14753_v40 = vpop.f32.mrb[30].mxu1 }
 0xa19   : > { %10737 = vst.msk [vmem:[%s18806_s24 + $0xe8] sm:$0xff] %vm171_vm0, %v10705_v38  ;;  %v10643_v42 = vadd.f32 %v14753_v40, %v18796_v48  ;;  %v10565_v45 = vpop.f32.mrb[31].mxu1 }
 0xa1a   : > { %10736 = vst.msk [vmem:[%s18806_s24 + $0xe0] sm:$0xff] %vm171_vm0, %v10704_v39  ;;  %v10642_v47 = vadd.f32 %v18796_v48, %v10565_v45 }
 0xa1b   : > { %v10707_v49 = vadd.f32 %v10675_v41, %v10643_v42 }
 0xa1c   : > { %v10706_v50 = vadd.f32 %v10674_v46, %v10642_v47 }
 0xa1d   : > { %10739 = vst.msk [vmem:[%s18806_s24 + $0xf8] sm:$0xff] %vm171_vm0, %v10707_v49 }
 0xa1e   : > { %10738 = vst.msk [vmem:[%s18806_s24 + $0xf0] sm:$0xff] %vm171_vm0, %v10706_v50 }
 0xa1f PF: > { %s13_s12 = sadd.s32 1, %s15793_s12  }
 0xa20   : > { %p10_p4 = scmp.ge.s32.totalorder %s13_s12, 4  }
 0xa22   :  { %12 = sbr.rel (!%p10_p4) target bundleno = 1 (0x1), region = 99 }

</bundles_post_ra>
